<compile_context>
chip_gen: v6e
topology: v6e:2x2x1
jax: 0.10.0
libtpu: 0.0.40
codegen_flags: <defaults>
</compile_context>

<pallas_src>
import numpy as np

import jax
import jax.numpy as jnp
from jax.experimental import pallas as pl
from jax.experimental.pallas import tpu as pltpu


# ---------------------------------------------------------------------------
# Host-built constant matrices (depend only on static shapes)
# ---------------------------------------------------------------------------
def _conv_masks(H, W):
    """(9, H*W) 0/1 masks; row k = 3*(di+1)+(dj+1) is 1 where (h+di, w+dj)
    lies inside the image (implements the zero padding of a 3x3/s1/p1 conv)."""
    hh = np.repeat(np.arange(H), W)
    ww = np.tile(np.arange(W), H)
    m = np.zeros((9, H * W), np.float32)
    k = 0
    for di in (-1, 0, 1):
        for dj in (-1, 0, 1):
            ok = (hh + di >= 0) & (hh + di < H) & (ww + dj >= 0) & (ww + dj < W)
            m[k] = ok.astype(np.float32)
            k += 1
    return m


def _embed(M, G):
    """(M, M+2G) 0/1 matrix: drops an M-column activation into the interior of
    a margin-extended layout (margins are don't-care)."""
    e = np.zeros((M, M + 2 * G), np.float32)
    e[np.arange(M), G + np.arange(M)] = 1.0
    return e


def _pool_select(H, W, G_next):
    """(4, H*W, (H//2)*(W//2)+2*G_next) selection matrices: matrix d picks the
    d-th element of every non-overlapping 2x2 window and places it at the
    pooled position, shifted by G_next into the next layer's extended layout."""
    Hp, Wp = H // 2, W // 2
    T = Hp * Wp + 2 * G_next
    s = np.zeros((4, H * W, T), np.float32)
    d = 0
    for dh in (0, 1):
        for dw in (0, 1):
            for hp in range(Hp):
                for wp in range(Wp):
                    s[d, (2 * hp + dh) * W + (2 * wp + dw),
                      G_next + hp * Wp + wp] = 1.0
            d += 1
    return s


# ---------------------------------------------------------------------------
# Fused Pallas forward
# ---------------------------------------------------------------------------
def fused_forward(x, conv_params, dense_params):
    N, Cin, H, W = x.shape
    assert H % 8 == 0 and W % 8 == 0, "needs three 2x2 pools"

    # Geometry per conv stage (3x3, stride 1, pad 1 preserves HxW; pool halves).
    W1, W2, W3 = W, W // 2, W // 4
    H1, H2, H3 = H, H // 2, H // 4
    M1, M2, M3 = H1 * W1, H2 * W2, H3 * W3
    G1, G2, G3 = W1 + 1, W2 + 1, W3 + 1            # margin: any 3x3 shift is a static slice
    E1, E2, E3 = M1 + 2 * G1, M2 + 2 * G2, M3 + 2 * G3
    S3P = (H3 // 2) * (W3 // 2)                    # spatial positions after the last pool

    # ---- fold eval-mode BatchNorm into each conv, reorder weights for the kernel ----
    wk, bk = [], []
    for (w, b, g, be, mu, var) in conv_params:
        s = g / jnp.sqrt(var + 1e-5)
        wf = w * s[:, None, None, None]
        bf = s * (b - mu) + be
        co, ci, kh, kw = w.shape
        wk.append(wf.transpose(2, 3, 0, 1).reshape(kh * kw, co, ci).astype(jnp.float32))
        bk.append(bf.reshape(co, 1).astype(jnp.float32))

    wd1, bd1, wd2, bd2 = dense_params
    C3 = wk[4].shape[1]
    D, O = wd1.shape[1], wd2.shape[1]
    # PyTorch flattens as (c, h, w); the kernel keeps channels on sublanes, so
    # reorder the first dense weight to (spatial, D, C3).
    wd1_k = jnp.transpose(wd1.reshape(C3, S3P, D), (1, 2, 0)).astype(jnp.float32)
    bd1_k = bd1.reshape(D, 1).astype(jnp.float32)
    wd2_k = wd2.T.astype(jnp.float32)              # (O, D)
    bd2_k = bd2.reshape(O, 1).astype(jnp.float32)

    # ---- host-built constants ----
    m1 = jnp.asarray(_conv_masks(H1, W1))
    m2 = jnp.asarray(_conv_masks(H2, W2))
    m3 = jnp.asarray(_conv_masks(H3, W3))
    e2 = jnp.asarray(_embed(M2, G2))
    e3 = jnp.asarray(_embed(M3, G3))
    p1 = jnp.asarray(_pool_select(H1, W1, G2))
    p2 = jnp.asarray(_pool_select(H2, W2, G3))
    p3 = jnp.asarray(_pool_select(H3, W3, 0))

    # margin-extended, flattened input: (N, Cin, E1)
    x_ext = jnp.pad(x.reshape(N, Cin, M1).astype(jnp.float32),
                    ((0, 0), (0, 0), (G1, G1)))

    # ---- in-kernel building blocks (all static slices / 2-D matmuls) ----
    def conv3x3_relu(x_e, w_ref, b_ref, m_ref, Wg, Mg, Gg):
        cout = w_ref.shape[1]
        acc = jnp.zeros((cout, Mg), jnp.float32)
        k = 0
        for di in (-1, 0, 1):
            for dj in (-1, 0, 1):
                s = di * Wg + dj
                win = x_e[:, Gg + s:Gg + s + Mg] * m_ref[k:k + 1, :]
                acc = acc + jnp.dot(w_ref[k], win,
                                    preferred_element_type=jnp.float32)
                k += 1
        return jnp.maximum(acc + b_ref[...], 0.0)

    def maxpool2x2(y, s_ref):
        r = jnp.dot(y, s_ref[0], preferred_element_type=jnp.float32)
        for d in range(1, 4):
            r = jnp.maximum(r, jnp.dot(y, s_ref[d],
                                       preferred_element_type=jnp.float32))
        return r

    def kernel(x_ref, w1_ref, b1_ref, w2a_ref, b2a_ref, w2b_ref, b2b_ref,
               w3a_ref, b3a_ref, w3b_ref, b3b_ref,
               m1_ref, m2_ref, m3_ref, e2_ref, e3_ref,
               p1_ref, p2_ref, p3_ref,
               wd1_ref, bd1_ref, wd2_ref, bd2_ref, o_ref):
        # one batch sample per grid program; everything below lives in VMEM
        a = conv3x3_relu(x_ref[0], w1_ref, b1_ref, m1_ref, W1, M1, G1)     # (C1, M1)
        a = maxpool2x2(a, p1_ref)                                          # (C1, E2)
        a = conv3x3_relu(a, w2a_ref, b2a_ref, m2_ref, W2, M2, G2)          # (C2, M2)
        a = jnp.dot(a, e2_ref[...], preferred_element_type=jnp.float32)    # (C2, E2)
        a = conv3x3_relu(a, w2b_ref, b2b_ref, m2_ref, W2, M2, G2)          # (C2, M2)
        a = maxpool2x2(a, p2_ref)                                          # (C2, E3)
        a = conv3x3_relu(a, w3a_ref, b3a_ref, m3_ref, W3, M3, G3)          # (C3, M3)
        a = jnp.dot(a, e3_ref[...], preferred_element_type=jnp.float32)    # (C3, E3)
        a = conv3x3_relu(a, w3b_ref, b3b_ref, m3_ref, W3, M3, G3)          # (C3, M3)
        a = maxpool2x2(a, p3_ref)                                          # (C3, S3P)
        # TODO(synk): Dropout2d / Dropout are identity (inference).
        h = jnp.zeros((D, 1), jnp.float32)
        for s in range(S3P):
            h = h + jnp.dot(wd1_ref[s], a[:, s:s + 1],
                            preferred_element_type=jnp.float32)
        h = jnp.maximum(h + bd1_ref[...], 0.0)
        logits = jnp.dot(wd2_ref[...], h,
                         preferred_element_type=jnp.float32) + bd2_ref[...]
        o_ref[0] = logits

    args = [x_ext,
            wk[0], bk[0], wk[1], bk[1], wk[2], bk[2], wk[3], bk[3], wk[4], bk[4],
            m1, m2, m3, e2, e3, p1, p2, p3,
            wd1_k, bd1_k, wd2_k, bd2_k]

    def _full(a):
        return pl.BlockSpec(a.shape, lambda n, _nd=a.ndim: (0,) * _nd)

    in_specs = [pl.BlockSpec((1, Cin, E1), lambda n: (n, 0, 0))]
    in_specs += [_full(a) for a in args[1:]]

    out = pl.pallas_call(
        kernel,
        out_shape=jax.ShapeDtypeStruct((N, O, 1), jnp.float32),
        grid=(N,),
        in_specs=in_specs,
        out_specs=pl.BlockSpec((1, O, 1), lambda n: (n, 0, 0)),
        compiler_params=pltpu.CompilerParams(
            dimension_semantics=("parallel",)),
        cost_estimate=pl.CostEstimate(flops=4_000_000, transcendentals=0,
                                      bytes_accessed=500_000),
    )(*args)
    return out.reshape(N, O)


# ---------------------------------------------------------------------------
# Pure-JAX reference (mirrors the PyTorch module in eval mode)
# ---------------------------------------------------------------------------
def reference_forward(x, conv_params, dense_params, eps=1e-5):
    dn = ("NCHW", "OIHW", "NCHW")
    hp = jax.lax.Precision.HIGHEST

    def conv_bn_relu(y, w, b, g, be, mu, var):
        y = jax.lax.conv_general_dilated(y, w, (1, 1), [(1, 1), (1, 1)],
                                         dimension_numbers=dn, precision=hp)
        y = y + b[None, :, None, None]
        y = (y - mu[None, :, None, None]) * (
            g[None, :, None, None] / jnp.sqrt(var[None, :, None, None] + eps)
        ) + be[None, :, None, None]
        return jnp.maximum(y, 0.0)

    def pool(y):
        return jax.lax.reduce_window(y, -jnp.inf, jax.lax.max,
                                     (1, 1, 2, 2), (1, 1, 2, 2), "VALID")

    y = conv_bn_relu(x, *conv_params[0]); y = pool(y)
    y = conv_bn_relu(y, *conv_params[1])
    y = conv_bn_relu(y, *conv_params[2]); y = pool(y)
    y = conv_bn_relu(y, *conv_params[3])
    y = conv_bn_relu(y, *conv_params[4]); y = pool(y)
    wd1, bd1, wd2, bd2 = dense_params
    y = y.reshape(y.shape[0], -1)
    y = jnp.maximum(jnp.dot(y, wd1, precision=hp) + bd1, 0.0)
    return jnp.dot(y, wd2, precision=hp) + bd2


def init_params(key, cin, conv_dims, flat, dense_neuron, output_logit):
    c1, c2, c3 = conv_dims
    layer_io = [(cin, c1), (c1, c2), (c2, c2), (c2, c3), (c3, c3)]
    keys = jax.random.split(key, 5 * 6 + 4)
    i = 0

    def u(k, shape, fan_in):
        b = 1.0 / jnp.sqrt(fan_in)
        return jax.random.uniform(k, shape, jnp.float32, -b, b)

    conv_params = []
    for (ci, co) in layer_io:
        fan = ci * 9
        w = u(keys[i], (co, ci, 3, 3), fan); i += 1
        b = u(keys[i], (co,), fan); i += 1
        g = jax.random.uniform(keys[i], (co,), jnp.float32, 0.5, 1.5); i += 1
        be = jax.random.uniform(keys[i], (co,), jnp.float32, -0.5, 0.5); i += 1
        mu = 0.1 * jax.random.normal(keys[i], (co,), jnp.float32); i += 1
        var = jax.random.uniform(keys[i], (co,), jnp.float32, 0.5, 1.5); i += 1
        conv_params.append((w, b, g, be, mu, var))
    wd1 = u(keys[i], (flat, dense_neuron), flat); i += 1
    bd1 = u(keys[i], (dense_neuron,), flat); i += 1
    wd2 = u(keys[i], (dense_neuron, output_logit), dense_neuron); i += 1
    bd2 = u(keys[i], (output_logit,), dense_neuron); i += 1
    return conv_params, (wd1, bd1, wd2, bd2)


if __name__ == "__main__":
    # Hyper-parameters consistent with the three_layer_conv_network __init__ contract.
    input_dimension = [2, 4, 16, 16]            # (N, C, H, W)
    conv_dimensions = [8, 8, 16]
    kernel_sizes = [(3, 3)] * 3
    strides = [1, 1, 1]
    pool_sizes = [(2, 2)] * 3
    pool_strides = [(2, 2)] * 3
    paddings = [1, 1, 1]
    dense_neuron = 32
    output_logit = 10

    N, Cin, H, W = input_dimension
    # 3x3/s1/p1 convs keep HxW; the three 2x2 pools shrink 16 -> 2.
    size_after_flatten = conv_dimensions[2] * (H // 8) * (W // 8)   # 16*2*2 = 64

    key = jax.random.PRNGKey(0)
    kx, kp = jax.random.split(key)
    x = jax.random.normal(kx, (N, Cin, H, W), jnp.float32)
    conv_params, dense_params = init_params(
        kp, Cin, conv_dimensions, size_after_flatten, dense_neuron, output_logit)

    fwd = jax.jit(fused_forward)
    out = jax.block_until_ready(fwd(x, conv_params, dense_params))

    ref = reference_forward(x, conv_params, dense_params)
    assert out.shape == (N, output_logit)
    err = float(jnp.max(jnp.abs(out - ref)))
    assert jnp.allclose(out, ref, rtol=2e-3, atol=2e-3), err

    print("KERNEL_OK")
</pallas_src>

<mosaic_0001>
module attributes {stable_mosaic.version = 11 : i64} {
  func.func @kernel(%arg0: i32, %arg1: memref<1x4x290xf32, #tpu.memory_space<vmem>>, %arg2: memref<9x8x4xf32, #tpu.memory_space<vmem>>, %arg3: memref<8x1xf32, #tpu.memory_space<vmem>>, %arg4: memref<9x8x8xf32, #tpu.memory_space<vmem>>, %arg5: memref<8x1xf32, #tpu.memory_space<vmem>>, %arg6: memref<9x8x8xf32, #tpu.memory_space<vmem>>, %arg7: memref<8x1xf32, #tpu.memory_space<vmem>>, %arg8: memref<9x16x8xf32, #tpu.memory_space<vmem>>, %arg9: memref<16x1xf32, #tpu.memory_space<vmem>>, %arg10: memref<9x16x16xf32, #tpu.memory_space<vmem>>, %arg11: memref<16x1xf32, #tpu.memory_space<vmem>>, %arg12: memref<9x256xf32, #tpu.memory_space<vmem>>, %arg13: memref<9x64xf32, #tpu.memory_space<vmem>>, %arg14: memref<9x16xf32, #tpu.memory_space<vmem>>, %arg15: memref<64x82xf32, #tpu.memory_space<vmem>>, %arg16: memref<16x26xf32, #tpu.memory_space<vmem>>, %arg17: memref<4x256x82xf32, #tpu.memory_space<vmem>>, %arg18: memref<4x64x26xf32, #tpu.memory_space<vmem>>, %arg19: memref<4x16x4xf32, #tpu.memory_space<vmem>>, %arg20: memref<4x32x16xf32, #tpu.memory_space<vmem>>, %arg21: memref<32x1xf32, #tpu.memory_space<vmem>>, %arg22: memref<10x32xf32, #tpu.memory_space<vmem>>, %arg23: memref<10x1xf32, #tpu.memory_space<vmem>>, %arg24: memref<1x10x1xf32, #tpu.memory_space<vmem>>) attributes {dimension_semantics = [#tpu.dimension_semantics<parallel>], iteration_bounds = array<i64: 2>, scalar_prefetch = 0 : i64, scratch_operands = 0 : i64, tpu.core_type = #tpu.core_type<tc>, window_params = [{transform_indices = @transform_0, window_bounds = array<i64: 1, 4, 290>}, {pipeline_mode = #tpu.pipeline_mode<synchronous>, transform_indices = @transform_1, window_bounds = array<i64: 9, 8, 4>}, {pipeline_mode = #tpu.pipeline_mode<synchronous>, transform_indices = @transform_2, window_bounds = array<i64: 8, 1>}, {pipeline_mode = #tpu.pipeline_mode<synchronous>, transform_indices = @transform_3, window_bounds = array<i64: 9, 8, 8>}, {pipeline_mode = #tpu.pipeline_mode<synchronous>, transform_indices = @transform_4, window_bounds = array<i64: 8, 1>}, {pipeline_mode = #tpu.pipeline_mode<synchronous>, transform_indices = @transform_5, window_bounds = array<i64: 9, 8, 8>}, {pipeline_mode = #tpu.pipeline_mode<synchronous>, transform_indices = @transform_6, window_bounds = array<i64: 8, 1>}, {pipeline_mode = #tpu.pipeline_mode<synchronous>, transform_indices = @transform_7, window_bounds = array<i64: 9, 16, 8>}, {pipeline_mode = #tpu.pipeline_mode<synchronous>, transform_indices = @transform_8, window_bounds = array<i64: 16, 1>}, {pipeline_mode = #tpu.pipeline_mode<synchronous>, transform_indices = @transform_9, window_bounds = array<i64: 9, 16, 16>}, {pipeline_mode = #tpu.pipeline_mode<synchronous>, transform_indices = @transform_10, window_bounds = array<i64: 16, 1>}, {pipeline_mode = #tpu.pipeline_mode<synchronous>, transform_indices = @transform_11, window_bounds = array<i64: 9, 256>}, {pipeline_mode = #tpu.pipeline_mode<synchronous>, transform_indices = @transform_12, window_bounds = array<i64: 9, 64>}, {pipeline_mode = #tpu.pipeline_mode<synchronous>, transform_indices = @transform_13, window_bounds = array<i64: 9, 16>}, {pipeline_mode = #tpu.pipeline_mode<synchronous>, transform_indices = @transform_14, window_bounds = array<i64: 64, 82>}, {pipeline_mode = #tpu.pipeline_mode<synchronous>, transform_indices = @transform_15, window_bounds = array<i64: 16, 26>}, {pipeline_mode = #tpu.pipeline_mode<synchronous>, transform_indices = @transform_16, window_bounds = array<i64: 4, 256, 82>}, {pipeline_mode = #tpu.pipeline_mode<synchronous>, transform_indices = @transform_17, window_bounds = array<i64: 4, 64, 26>}, {pipeline_mode = #tpu.pipeline_mode<synchronous>, transform_indices = @transform_18, window_bounds = array<i64: 4, 16, 4>}, {pipeline_mode = #tpu.pipeline_mode<synchronous>, transform_indices = @transform_19, window_bounds = array<i64: 4, 32, 16>}, {pipeline_mode = #tpu.pipeline_mode<synchronous>, transform_indices = @transform_20, window_bounds = array<i64: 32, 1>}, {pipeline_mode = #tpu.pipeline_mode<synchronous>, transform_indices = @transform_21, window_bounds = array<i64: 10, 32>}, {pipeline_mode = #tpu.pipeline_mode<synchronous>, transform_indices = @transform_22, window_bounds = array<i64: 10, 1>}, {transform_indices = @transform_23, window_bounds = array<i64: 1, 10, 1>}]} {
    %c0 = arith.constant 0 : index
    %c0_0 = arith.constant 0 : index
    %c0_1 = arith.constant 0 : index
    %0 = vector.load %arg1[%c0, %c0_0, %c0_1] : memref<1x4x290xf32, #tpu.memory_space<vmem>>, vector<1x4x290xf32>
    %1 = vector.shape_cast %0 : vector<1x4x290xf32> to vector<4x290xf32>
    %cst = arith.constant 0.000000e+00 : f32
    %2 = vector.broadcast %cst : f32 to vector<8x256xf32>
    %3 = vector.extract_strided_slice %1 {offsets = [0, 0], sizes = [4, 256], strides = [1, 1]} : vector<4x290xf32> to vector<4x256xf32>
    %c0_2 = arith.constant 0 : index
    %c0_3 = arith.constant 0 : index
    %4 = vector.load %arg12[%c0_2, %c0_3] : memref<9x256xf32, #tpu.memory_space<vmem>>, vector<1x256xf32>
    %5 = vector.broadcast %4 : vector<1x256xf32> to vector<4x256xf32>
    %6 = arith.mulf %3, %5 : vector<4x256xf32>
    %c0_4 = arith.constant 0 : index
    %c0_5 = arith.constant 0 : index
    %c0_6 = arith.constant 0 : index
    %7 = vector.load %arg2[%c0_4, %c0_5, %c0_6] : memref<9x8x4xf32, #tpu.memory_space<vmem>>, vector<1x8x4xf32>
    %8 = vector.shape_cast %7 : vector<1x8x4xf32> to vector<8x4xf32>
    %cst_7 = arith.constant dense<0.000000e+00> : vector<8x256xf32>
    %9 = tpu.matmul %8, %6, %cst_7 {dimension_numbers = #tpu.dot_dimension_numbers<[1], [0], [0], [1], [0, 0, 1, 1], [], []>} : vector<8x4xf32>, vector<4x256xf32>, vector<8x256xf32> -> vector<8x256xf32>
    %10 = arith.addf %2, %9 : vector<8x256xf32>
    %11 = vector.extract_strided_slice %1 {offsets = [0, 1], sizes = [4, 256], strides = [1, 1]} : vector<4x290xf32> to vector<4x256xf32>
    %c1 = arith.constant 1 : index
    %c0_8 = arith.constant 0 : index
    %12 = vector.load %arg12[%c1, %c0_8] : memref<9x256xf32, #tpu.memory_space<vmem>>, vector<1x256xf32>
    %13 = vector.broadcast %12 : vector<1x256xf32> to vector<4x256xf32>
    %14 = arith.mulf %11, %13 : vector<4x256xf32>
    %c1_9 = arith.constant 1 : index
    %c0_10 = arith.constant 0 : index
    %c0_11 = arith.constant 0 : index
    %15 = vector.load %arg2[%c1_9, %c0_10, %c0_11] : memref<9x8x4xf32, #tpu.memory_space<vmem>>, vector<1x8x4xf32>
    %16 = vector.shape_cast %15 : vector<1x8x4xf32> to vector<8x4xf32>
    %cst_12 = arith.constant dense<0.000000e+00> : vector<8x256xf32>
    %17 = tpu.matmul %16, %14, %cst_12 {dimension_numbers = #tpu.dot_dimension_numbers<[1], [0], [0], [1], [0, 0, 1, 1], [], []>} : vector<8x4xf32>, vector<4x256xf32>, vector<8x256xf32> -> vector<8x256xf32>
    %18 = arith.addf %10, %17 : vector<8x256xf32>
    %19 = vector.extract_strided_slice %1 {offsets = [0, 2], sizes = [4, 256], strides = [1, 1]} : vector<4x290xf32> to vector<4x256xf32>
    %c2 = arith.constant 2 : index
    %c0_13 = arith.constant 0 : index
    %20 = vector.load %arg12[%c2, %c0_13] : memref<9x256xf32, #tpu.memory_space<vmem>>, vector<1x256xf32>
    %21 = vector.broadcast %20 : vector<1x256xf32> to vector<4x256xf32>
    %22 = arith.mulf %19, %21 : vector<4x256xf32>
    %c2_14 = arith.constant 2 : index
    %c0_15 = arith.constant 0 : index
    %c0_16 = arith.constant 0 : index
    %23 = vector.load %arg2[%c2_14, %c0_15, %c0_16] : memref<9x8x4xf32, #tpu.memory_space<vmem>>, vector<1x8x4xf32>
    %24 = vector.shape_cast %23 : vector<1x8x4xf32> to vector<8x4xf32>
    %cst_17 = arith.constant dense<0.000000e+00> : vector<8x256xf32>
    %25 = tpu.matmul %24, %22, %cst_17 {dimension_numbers = #tpu.dot_dimension_numbers<[1], [0], [0], [1], [0, 0, 1, 1], [], []>} : vector<8x4xf32>, vector<4x256xf32>, vector<8x256xf32> -> vector<8x256xf32>
    %26 = arith.addf %18, %25 : vector<8x256xf32>
    %27 = vector.extract_strided_slice %1 {offsets = [0, 16], sizes = [4, 256], strides = [1, 1]} : vector<4x290xf32> to vector<4x256xf32>
    %c3 = arith.constant 3 : index
    %c0_18 = arith.constant 0 : index
    %28 = vector.load %arg12[%c3, %c0_18] : memref<9x256xf32, #tpu.memory_space<vmem>>, vector<1x256xf32>
    %29 = vector.broadcast %28 : vector<1x256xf32> to vector<4x256xf32>
    %30 = arith.mulf %27, %29 : vector<4x256xf32>
    %c3_19 = arith.constant 3 : index
    %c0_20 = arith.constant 0 : index
    %c0_21 = arith.constant 0 : index
    %31 = vector.load %arg2[%c3_19, %c0_20, %c0_21] : memref<9x8x4xf32, #tpu.memory_space<vmem>>, vector<1x8x4xf32>
    %32 = vector.shape_cast %31 : vector<1x8x4xf32> to vector<8x4xf32>
    %cst_22 = arith.constant dense<0.000000e+00> : vector<8x256xf32>
    %33 = tpu.matmul %32, %30, %cst_22 {dimension_numbers = #tpu.dot_dimension_numbers<[1], [0], [0], [1], [0, 0, 1, 1], [], []>} : vector<8x4xf32>, vector<4x256xf32>, vector<8x256xf32> -> vector<8x256xf32>
    %34 = arith.addf %26, %33 : vector<8x256xf32>
    %35 = vector.extract_strided_slice %1 {offsets = [0, 17], sizes = [4, 256], strides = [1, 1]} : vector<4x290xf32> to vector<4x256xf32>
    %c4 = arith.constant 4 : index
    %c0_23 = arith.constant 0 : index
    %36 = vector.load %arg12[%c4, %c0_23] : memref<9x256xf32, #tpu.memory_space<vmem>>, vector<1x256xf32>
    %37 = vector.broadcast %36 : vector<1x256xf32> to vector<4x256xf32>
    %38 = arith.mulf %35, %37 : vector<4x256xf32>
    %c4_24 = arith.constant 4 : index
    %c0_25 = arith.constant 0 : index
    %c0_26 = arith.constant 0 : index
    %39 = vector.load %arg2[%c4_24, %c0_25, %c0_26] : memref<9x8x4xf32, #tpu.memory_space<vmem>>, vector<1x8x4xf32>
    %40 = vector.shape_cast %39 : vector<1x8x4xf32> to vector<8x4xf32>
    %cst_27 = arith.constant dense<0.000000e+00> : vector<8x256xf32>
    %41 = tpu.matmul %40, %38, %cst_27 {dimension_numbers = #tpu.dot_dimension_numbers<[1], [0], [0], [1], [0, 0, 1, 1], [], []>} : vector<8x4xf32>, vector<4x256xf32>, vector<8x256xf32> -> vector<8x256xf32>
    %42 = arith.addf %34, %41 : vector<8x256xf32>
    %43 = vector.extract_strided_slice %1 {offsets = [0, 18], sizes = [4, 256], strides = [1, 1]} : vector<4x290xf32> to vector<4x256xf32>
    %c5 = arith.constant 5 : index
    %c0_28 = arith.constant 0 : index
    %44 = vector.load %arg12[%c5, %c0_28] : memref<9x256xf32, #tpu.memory_space<vmem>>, vector<1x256xf32>
    %45 = vector.broadcast %44 : vector<1x256xf32> to vector<4x256xf32>
    %46 = arith.mulf %43, %45 : vector<4x256xf32>
    %c5_29 = arith.constant 5 : index
    %c0_30 = arith.constant 0 : index
    %c0_31 = arith.constant 0 : index
    %47 = vector.load %arg2[%c5_29, %c0_30, %c0_31] : memref<9x8x4xf32, #tpu.memory_space<vmem>>, vector<1x8x4xf32>
    %48 = vector.shape_cast %47 : vector<1x8x4xf32> to vector<8x4xf32>
    %cst_32 = arith.constant dense<0.000000e+00> : vector<8x256xf32>
    %49 = tpu.matmul %48, %46, %cst_32 {dimension_numbers = #tpu.dot_dimension_numbers<[1], [0], [0], [1], [0, 0, 1, 1], [], []>} : vector<8x4xf32>, vector<4x256xf32>, vector<8x256xf32> -> vector<8x256xf32>
    %50 = arith.addf %42, %49 : vector<8x256xf32>
    %51 = vector.extract_strided_slice %1 {offsets = [0, 32], sizes = [4, 256], strides = [1, 1]} : vector<4x290xf32> to vector<4x256xf32>
    %c6 = arith.constant 6 : index
    %c0_33 = arith.constant 0 : index
    %52 = vector.load %arg12[%c6, %c0_33] : memref<9x256xf32, #tpu.memory_space<vmem>>, vector<1x256xf32>
    %53 = vector.broadcast %52 : vector<1x256xf32> to vector<4x256xf32>
    %54 = arith.mulf %51, %53 : vector<4x256xf32>
    %c6_34 = arith.constant 6 : index
    %c0_35 = arith.constant 0 : index
    %c0_36 = arith.constant 0 : index
    %55 = vector.load %arg2[%c6_34, %c0_35, %c0_36] : memref<9x8x4xf32, #tpu.memory_space<vmem>>, vector<1x8x4xf32>
    %56 = vector.shape_cast %55 : vector<1x8x4xf32> to vector<8x4xf32>
    %cst_37 = arith.constant dense<0.000000e+00> : vector<8x256xf32>
    %57 = tpu.matmul %56, %54, %cst_37 {dimension_numbers = #tpu.dot_dimension_numbers<[1], [0], [0], [1], [0, 0, 1, 1], [], []>} : vector<8x4xf32>, vector<4x256xf32>, vector<8x256xf32> -> vector<8x256xf32>
    %58 = arith.addf %50, %57 : vector<8x256xf32>
    %59 = vector.extract_strided_slice %1 {offsets = [0, 33], sizes = [4, 256], strides = [1, 1]} : vector<4x290xf32> to vector<4x256xf32>
    %c7 = arith.constant 7 : index
    %c0_38 = arith.constant 0 : index
    %60 = vector.load %arg12[%c7, %c0_38] : memref<9x256xf32, #tpu.memory_space<vmem>>, vector<1x256xf32>
    %61 = vector.broadcast %60 : vector<1x256xf32> to vector<4x256xf32>
    %62 = arith.mulf %59, %61 : vector<4x256xf32>
    %c7_39 = arith.constant 7 : index
    %c0_40 = arith.constant 0 : index
    %c0_41 = arith.constant 0 : index
    %63 = vector.load %arg2[%c7_39, %c0_40, %c0_41] : memref<9x8x4xf32, #tpu.memory_space<vmem>>, vector<1x8x4xf32>
    %64 = vector.shape_cast %63 : vector<1x8x4xf32> to vector<8x4xf32>
    %cst_42 = arith.constant dense<0.000000e+00> : vector<8x256xf32>
    %65 = tpu.matmul %64, %62, %cst_42 {dimension_numbers = #tpu.dot_dimension_numbers<[1], [0], [0], [1], [0, 0, 1, 1], [], []>} : vector<8x4xf32>, vector<4x256xf32>, vector<8x256xf32> -> vector<8x256xf32>
    %66 = arith.addf %58, %65 : vector<8x256xf32>
    %67 = vector.extract_strided_slice %1 {offsets = [0, 34], sizes = [4, 256], strides = [1, 1]} : vector<4x290xf32> to vector<4x256xf32>
    %c8 = arith.constant 8 : index
    %c0_43 = arith.constant 0 : index
    %68 = vector.load %arg12[%c8, %c0_43] : memref<9x256xf32, #tpu.memory_space<vmem>>, vector<1x256xf32>
    %69 = vector.broadcast %68 : vector<1x256xf32> to vector<4x256xf32>
    %70 = arith.mulf %67, %69 : vector<4x256xf32>
    %c8_44 = arith.constant 8 : index
    %c0_45 = arith.constant 0 : index
    %c0_46 = arith.constant 0 : index
    %71 = vector.load %arg2[%c8_44, %c0_45, %c0_46] : memref<9x8x4xf32, #tpu.memory_space<vmem>>, vector<1x8x4xf32>
    %72 = vector.shape_cast %71 : vector<1x8x4xf32> to vector<8x4xf32>
    %cst_47 = arith.constant dense<0.000000e+00> : vector<8x256xf32>
    %73 = tpu.matmul %72, %70, %cst_47 {dimension_numbers = #tpu.dot_dimension_numbers<[1], [0], [0], [1], [0, 0, 1, 1], [], []>} : vector<8x4xf32>, vector<4x256xf32>, vector<8x256xf32> -> vector<8x256xf32>
    %74 = arith.addf %66, %73 : vector<8x256xf32>
    %c0_48 = arith.constant 0 : index
    %c0_49 = arith.constant 0 : index
    %75 = vector.load %arg3[%c0_48, %c0_49] : memref<8x1xf32, #tpu.memory_space<vmem>>, vector<8x1xf32>
    %76 = vector.broadcast %75 : vector<8x1xf32> to vector<8x256xf32>
    %77 = arith.addf %74, %76 : vector<8x256xf32>
    %cst_50 = arith.constant 0.000000e+00 : f32
    %78 = vector.broadcast %cst_50 : f32 to vector<8x256xf32>
    %79 = arith.maximumf %77, %78 : vector<8x256xf32>
    %c0_51 = arith.constant 0 : index
    %c0_52 = arith.constant 0 : index
    %c0_53 = arith.constant 0 : index
    %80 = vector.load %arg17[%c0_51, %c0_52, %c0_53] : memref<4x256x82xf32, #tpu.memory_space<vmem>>, vector<1x256x82xf32>
    %81 = vector.shape_cast %80 : vector<1x256x82xf32> to vector<256x82xf32>
    %cst_54 = arith.constant dense<0.000000e+00> : vector<8x82xf32>
    %82 = tpu.matmul %79, %81, %cst_54 {dimension_numbers = #tpu.dot_dimension_numbers<[1], [0], [0], [1], [0, 0, 1, 1], [], []>} : vector<8x256xf32>, vector<256x82xf32>, vector<8x82xf32> -> vector<8x82xf32>
    %c1_55 = arith.constant 1 : index
    %c0_56 = arith.constant 0 : index
    %c0_57 = arith.constant 0 : index
    %83 = vector.load %arg17[%c1_55, %c0_56, %c0_57] : memref<4x256x82xf32, #tpu.memory_space<vmem>>, vector<1x256x82xf32>
    %84 = vector.shape_cast %83 : vector<1x256x82xf32> to vector<256x82xf32>
    %cst_58 = arith.constant dense<0.000000e+00> : vector<8x82xf32>
    %85 = tpu.matmul %79, %84, %cst_58 {dimension_numbers = #tpu.dot_dimension_numbers<[1], [0], [0], [1], [0, 0, 1, 1], [], []>} : vector<8x256xf32>, vector<256x82xf32>, vector<8x82xf32> -> vector<8x82xf32>
    %86 = arith.maximumf %82, %85 : vector<8x82xf32>
    %c2_59 = arith.constant 2 : index
    %c0_60 = arith.constant 0 : index
    %c0_61 = arith.constant 0 : index
    %87 = vector.load %arg17[%c2_59, %c0_60, %c0_61] : memref<4x256x82xf32, #tpu.memory_space<vmem>>, vector<1x256x82xf32>
    %88 = vector.shape_cast %87 : vector<1x256x82xf32> to vector<256x82xf32>
    %cst_62 = arith.constant dense<0.000000e+00> : vector<8x82xf32>
    %89 = tpu.matmul %79, %88, %cst_62 {dimension_numbers = #tpu.dot_dimension_numbers<[1], [0], [0], [1], [0, 0, 1, 1], [], []>} : vector<8x256xf32>, vector<256x82xf32>, vector<8x82xf32> -> vector<8x82xf32>
    %90 = arith.maximumf %86, %89 : vector<8x82xf32>
    %c3_63 = arith.constant 3 : index
    %c0_64 = arith.constant 0 : index
    %c0_65 = arith.constant 0 : index
    %91 = vector.load %arg17[%c3_63, %c0_64, %c0_65] : memref<4x256x82xf32, #tpu.memory_space<vmem>>, vector<1x256x82xf32>
    %92 = vector.shape_cast %91 : vector<1x256x82xf32> to vector<256x82xf32>
    %cst_66 = arith.constant dense<0.000000e+00> : vector<8x82xf32>
    %93 = tpu.matmul %79, %92, %cst_66 {dimension_numbers = #tpu.dot_dimension_numbers<[1], [0], [0], [1], [0, 0, 1, 1], [], []>} : vector<8x256xf32>, vector<256x82xf32>, vector<8x82xf32> -> vector<8x82xf32>
    %94 = arith.maximumf %90, %93 : vector<8x82xf32>
    %cst_67 = arith.constant 0.000000e+00 : f32
    %95 = vector.broadcast %cst_67 : f32 to vector<8x64xf32>
    %96 = vector.extract_strided_slice %94 {offsets = [0, 0], sizes = [8, 64], strides = [1, 1]} : vector<8x82xf32> to vector<8x64xf32>
    %c0_68 = arith.constant 0 : index
    %c0_69 = arith.constant 0 : index
    %97 = vector.load %arg13[%c0_68, %c0_69] : memref<9x64xf32, #tpu.memory_space<vmem>>, vector<1x64xf32>
    %98 = vector.broadcast %97 : vector<1x64xf32> to vector<8x64xf32>
    %99 = arith.mulf %96, %98 : vector<8x64xf32>
    %c0_70 = arith.constant 0 : index
    %c0_71 = arith.constant 0 : index
    %c0_72 = arith.constant 0 : index
    %100 = vector.load %arg4[%c0_70, %c0_71, %c0_72] : memref<9x8x8xf32, #tpu.memory_space<vmem>>, vector<1x8x8xf32>
    %101 = vector.shape_cast %100 : vector<1x8x8xf32> to vector<8x8xf32>
    %cst_73 = arith.constant dense<0.000000e+00> : vector<8x64xf32>
    %102 = tpu.matmul %101, %99, %cst_73 {dimension_numbers = #tpu.dot_dimension_numbers<[1], [0], [0], [1], [0, 0, 1, 1], [], []>} : vector<8x8xf32>, vector<8x64xf32>, vector<8x64xf32> -> vector<8x64xf32>
    %103 = arith.addf %95, %102 : vector<8x64xf32>
    %104 = vector.extract_strided_slice %94 {offsets = [0, 1], sizes = [8, 64], strides = [1, 1]} : vector<8x82xf32> to vector<8x64xf32>
    %c1_74 = arith.constant 1 : index
    %c0_75 = arith.constant 0 : index
    %105 = vector.load %arg13[%c1_74, %c0_75] : memref<9x64xf32, #tpu.memory_space<vmem>>, vector<1x64xf32>
    %106 = vector.broadcast %105 : vector<1x64xf32> to vector<8x64xf32>
    %107 = arith.mulf %104, %106 : vector<8x64xf32>
    %c1_76 = arith.constant 1 : index
    %c0_77 = arith.constant 0 : index
    %c0_78 = arith.constant 0 : index
    %108 = vector.load %arg4[%c1_76, %c0_77, %c0_78] : memref<9x8x8xf32, #tpu.memory_space<vmem>>, vector<1x8x8xf32>
    %109 = vector.shape_cast %108 : vector<1x8x8xf32> to vector<8x8xf32>
    %cst_79 = arith.constant dense<0.000000e+00> : vector<8x64xf32>
    %110 = tpu.matmul %109, %107, %cst_79 {dimension_numbers = #tpu.dot_dimension_numbers<[1], [0], [0], [1], [0, 0, 1, 1], [], []>} : vector<8x8xf32>, vector<8x64xf32>, vector<8x64xf32> -> vector<8x64xf32>
    %111 = arith.addf %103, %110 : vector<8x64xf32>
    %112 = vector.extract_strided_slice %94 {offsets = [0, 2], sizes = [8, 64], strides = [1, 1]} : vector<8x82xf32> to vector<8x64xf32>
    %c2_80 = arith.constant 2 : index
    %c0_81 = arith.constant 0 : index
    %113 = vector.load %arg13[%c2_80, %c0_81] : memref<9x64xf32, #tpu.memory_space<vmem>>, vector<1x64xf32>
    %114 = vector.broadcast %113 : vector<1x64xf32> to vector<8x64xf32>
    %115 = arith.mulf %112, %114 : vector<8x64xf32>
    %c2_82 = arith.constant 2 : index
    %c0_83 = arith.constant 0 : index
    %c0_84 = arith.constant 0 : index
    %116 = vector.load %arg4[%c2_82, %c0_83, %c0_84] : memref<9x8x8xf32, #tpu.memory_space<vmem>>, vector<1x8x8xf32>
    %117 = vector.shape_cast %116 : vector<1x8x8xf32> to vector<8x8xf32>
    %cst_85 = arith.constant dense<0.000000e+00> : vector<8x64xf32>
    %118 = tpu.matmul %117, %115, %cst_85 {dimension_numbers = #tpu.dot_dimension_numbers<[1], [0], [0], [1], [0, 0, 1, 1], [], []>} : vector<8x8xf32>, vector<8x64xf32>, vector<8x64xf32> -> vector<8x64xf32>
    %119 = arith.addf %111, %118 : vector<8x64xf32>
    %120 = vector.extract_strided_slice %94 {offsets = [0, 8], sizes = [8, 64], strides = [1, 1]} : vector<8x82xf32> to vector<8x64xf32>
    %c3_86 = arith.constant 3 : index
    %c0_87 = arith.constant 0 : index
    %121 = vector.load %arg13[%c3_86, %c0_87] : memref<9x64xf32, #tpu.memory_space<vmem>>, vector<1x64xf32>
    %122 = vector.broadcast %121 : vector<1x64xf32> to vector<8x64xf32>
    %123 = arith.mulf %120, %122 : vector<8x64xf32>
    %c3_88 = arith.constant 3 : index
    %c0_89 = arith.constant 0 : index
    %c0_90 = arith.constant 0 : index
    %124 = vector.load %arg4[%c3_88, %c0_89, %c0_90] : memref<9x8x8xf32, #tpu.memory_space<vmem>>, vector<1x8x8xf32>
    %125 = vector.shape_cast %124 : vector<1x8x8xf32> to vector<8x8xf32>
    %cst_91 = arith.constant dense<0.000000e+00> : vector<8x64xf32>
    %126 = tpu.matmul %125, %123, %cst_91 {dimension_numbers = #tpu.dot_dimension_numbers<[1], [0], [0], [1], [0, 0, 1, 1], [], []>} : vector<8x8xf32>, vector<8x64xf32>, vector<8x64xf32> -> vector<8x64xf32>
    %127 = arith.addf %119, %126 : vector<8x64xf32>
    %128 = vector.extract_strided_slice %94 {offsets = [0, 9], sizes = [8, 64], strides = [1, 1]} : vector<8x82xf32> to vector<8x64xf32>
    %c4_92 = arith.constant 4 : index
    %c0_93 = arith.constant 0 : index
    %129 = vector.load %arg13[%c4_92, %c0_93] : memref<9x64xf32, #tpu.memory_space<vmem>>, vector<1x64xf32>
    %130 = vector.broadcast %129 : vector<1x64xf32> to vector<8x64xf32>
    %131 = arith.mulf %128, %130 : vector<8x64xf32>
    %c4_94 = arith.constant 4 : index
    %c0_95 = arith.constant 0 : index
    %c0_96 = arith.constant 0 : index
    %132 = vector.load %arg4[%c4_94, %c0_95, %c0_96] : memref<9x8x8xf32, #tpu.memory_space<vmem>>, vector<1x8x8xf32>
    %133 = vector.shape_cast %132 : vector<1x8x8xf32> to vector<8x8xf32>
    %cst_97 = arith.constant dense<0.000000e+00> : vector<8x64xf32>
    %134 = tpu.matmul %133, %131, %cst_97 {dimension_numbers = #tpu.dot_dimension_numbers<[1], [0], [0], [1], [0, 0, 1, 1], [], []>} : vector<8x8xf32>, vector<8x64xf32>, vector<8x64xf32> -> vector<8x64xf32>
    %135 = arith.addf %127, %134 : vector<8x64xf32>
    %136 = vector.extract_strided_slice %94 {offsets = [0, 10], sizes = [8, 64], strides = [1, 1]} : vector<8x82xf32> to vector<8x64xf32>
    %c5_98 = arith.constant 5 : index
    %c0_99 = arith.constant 0 : index
    %137 = vector.load %arg13[%c5_98, %c0_99] : memref<9x64xf32, #tpu.memory_space<vmem>>, vector<1x64xf32>
    %138 = vector.broadcast %137 : vector<1x64xf32> to vector<8x64xf32>
    %139 = arith.mulf %136, %138 : vector<8x64xf32>
    %c5_100 = arith.constant 5 : index
    %c0_101 = arith.constant 0 : index
    %c0_102 = arith.constant 0 : index
    %140 = vector.load %arg4[%c5_100, %c0_101, %c0_102] : memref<9x8x8xf32, #tpu.memory_space<vmem>>, vector<1x8x8xf32>
    %141 = vector.shape_cast %140 : vector<1x8x8xf32> to vector<8x8xf32>
    %cst_103 = arith.constant dense<0.000000e+00> : vector<8x64xf32>
    %142 = tpu.matmul %141, %139, %cst_103 {dimension_numbers = #tpu.dot_dimension_numbers<[1], [0], [0], [1], [0, 0, 1, 1], [], []>} : vector<8x8xf32>, vector<8x64xf32>, vector<8x64xf32> -> vector<8x64xf32>
    %143 = arith.addf %135, %142 : vector<8x64xf32>
    %144 = vector.extract_strided_slice %94 {offsets = [0, 16], sizes = [8, 64], strides = [1, 1]} : vector<8x82xf32> to vector<8x64xf32>
    %c6_104 = arith.constant 6 : index
    %c0_105 = arith.constant 0 : index
    %145 = vector.load %arg13[%c6_104, %c0_105] : memref<9x64xf32, #tpu.memory_space<vmem>>, vector<1x64xf32>
    %146 = vector.broadcast %145 : vector<1x64xf32> to vector<8x64xf32>
    %147 = arith.mulf %144, %146 : vector<8x64xf32>
    %c6_106 = arith.constant 6 : index
    %c0_107 = arith.constant 0 : index
    %c0_108 = arith.constant 0 : index
    %148 = vector.load %arg4[%c6_106, %c0_107, %c0_108] : memref<9x8x8xf32, #tpu.memory_space<vmem>>, vector<1x8x8xf32>
    %149 = vector.shape_cast %148 : vector<1x8x8xf32> to vector<8x8xf32>
    %cst_109 = arith.constant dense<0.000000e+00> : vector<8x64xf32>
    %150 = tpu.matmul %149, %147, %cst_109 {dimension_numbers = #tpu.dot_dimension_numbers<[1], [0], [0], [1], [0, 0, 1, 1], [], []>} : vector<8x8xf32>, vector<8x64xf32>, vector<8x64xf32> -> vector<8x64xf32>
    %151 = arith.addf %143, %150 : vector<8x64xf32>
    %152 = vector.extract_strided_slice %94 {offsets = [0, 17], sizes = [8, 64], strides = [1, 1]} : vector<8x82xf32> to vector<8x64xf32>
    %c7_110 = arith.constant 7 : index
    %c0_111 = arith.constant 0 : index
    %153 = vector.load %arg13[%c7_110, %c0_111] : memref<9x64xf32, #tpu.memory_space<vmem>>, vector<1x64xf32>
    %154 = vector.broadcast %153 : vector<1x64xf32> to vector<8x64xf32>
    %155 = arith.mulf %152, %154 : vector<8x64xf32>
    %c7_112 = arith.constant 7 : index
    %c0_113 = arith.constant 0 : index
    %c0_114 = arith.constant 0 : index
    %156 = vector.load %arg4[%c7_112, %c0_113, %c0_114] : memref<9x8x8xf32, #tpu.memory_space<vmem>>, vector<1x8x8xf32>
    %157 = vector.shape_cast %156 : vector<1x8x8xf32> to vector<8x8xf32>
    %cst_115 = arith.constant dense<0.000000e+00> : vector<8x64xf32>
    %158 = tpu.matmul %157, %155, %cst_115 {dimension_numbers = #tpu.dot_dimension_numbers<[1], [0], [0], [1], [0, 0, 1, 1], [], []>} : vector<8x8xf32>, vector<8x64xf32>, vector<8x64xf32> -> vector<8x64xf32>
    %159 = arith.addf %151, %158 : vector<8x64xf32>
    %160 = vector.extract_strided_slice %94 {offsets = [0, 18], sizes = [8, 64], strides = [1, 1]} : vector<8x82xf32> to vector<8x64xf32>
    %c8_116 = arith.constant 8 : index
    %c0_117 = arith.constant 0 : index
    %161 = vector.load %arg13[%c8_116, %c0_117] : memref<9x64xf32, #tpu.memory_space<vmem>>, vector<1x64xf32>
    %162 = vector.broadcast %161 : vector<1x64xf32> to vector<8x64xf32>
    %163 = arith.mulf %160, %162 : vector<8x64xf32>
    %c8_118 = arith.constant 8 : index
    %c0_119 = arith.constant 0 : index
    %c0_120 = arith.constant 0 : index
    %164 = vector.load %arg4[%c8_118, %c0_119, %c0_120] : memref<9x8x8xf32, #tpu.memory_space<vmem>>, vector<1x8x8xf32>
    %165 = vector.shape_cast %164 : vector<1x8x8xf32> to vector<8x8xf32>
    %cst_121 = arith.constant dense<0.000000e+00> : vector<8x64xf32>
    %166 = tpu.matmul %165, %163, %cst_121 {dimension_numbers = #tpu.dot_dimension_numbers<[1], [0], [0], [1], [0, 0, 1, 1], [], []>} : vector<8x8xf32>, vector<8x64xf32>, vector<8x64xf32> -> vector<8x64xf32>
    %167 = arith.addf %159, %166 : vector<8x64xf32>
    %c0_122 = arith.constant 0 : index
    %c0_123 = arith.constant 0 : index
    %168 = vector.load %arg5[%c0_122, %c0_123] : memref<8x1xf32, #tpu.memory_space<vmem>>, vector<8x1xf32>
    %169 = vector.broadcast %168 : vector<8x1xf32> to vector<8x64xf32>
    %170 = arith.addf %167, %169 : vector<8x64xf32>
    %cst_124 = arith.constant 0.000000e+00 : f32
    %171 = vector.broadcast %cst_124 : f32 to vector<8x64xf32>
    %172 = arith.maximumf %170, %171 : vector<8x64xf32>
    %c0_125 = arith.constant 0 : index
    %c0_126 = arith.constant 0 : index
    %173 = vector.load %arg15[%c0_125, %c0_126] : memref<64x82xf32, #tpu.memory_space<vmem>>, vector<64x82xf32>
    %cst_127 = arith.constant dense<0.000000e+00> : vector<8x82xf32>
    %174 = tpu.matmul %172, %173, %cst_127 {dimension_numbers = #tpu.dot_dimension_numbers<[1], [0], [0], [1], [0, 0, 1, 1], [], []>} : vector<8x64xf32>, vector<64x82xf32>, vector<8x82xf32> -> vector<8x82xf32>
    %cst_128 = arith.constant 0.000000e+00 : f32
    %175 = vector.broadcast %cst_128 : f32 to vector<8x64xf32>
    %176 = vector.extract_strided_slice %174 {offsets = [0, 0], sizes = [8, 64], strides = [1, 1]} : vector<8x82xf32> to vector<8x64xf32>
    %c0_129 = arith.constant 0 : index
    %c0_130 = arith.constant 0 : index
    %177 = vector.load %arg13[%c0_129, %c0_130] : memref<9x64xf32, #tpu.memory_space<vmem>>, vector<1x64xf32>
    %178 = vector.broadcast %177 : vector<1x64xf32> to vector<8x64xf32>
    %179 = arith.mulf %176, %178 : vector<8x64xf32>
    %c0_131 = arith.constant 0 : index
    %c0_132 = arith.constant 0 : index
    %c0_133 = arith.constant 0 : index
    %180 = vector.load %arg6[%c0_131, %c0_132, %c0_133] : memref<9x8x8xf32, #tpu.memory_space<vmem>>, vector<1x8x8xf32>
    %181 = vector.shape_cast %180 : vector<1x8x8xf32> to vector<8x8xf32>
    %cst_134 = arith.constant dense<0.000000e+00> : vector<8x64xf32>
    %182 = tpu.matmul %181, %179, %cst_134 {dimension_numbers = #tpu.dot_dimension_numbers<[1], [0], [0], [1], [0, 0, 1, 1], [], []>} : vector<8x8xf32>, vector<8x64xf32>, vector<8x64xf32> -> vector<8x64xf32>
    %183 = arith.addf %175, %182 : vector<8x64xf32>
    %184 = vector.extract_strided_slice %174 {offsets = [0, 1], sizes = [8, 64], strides = [1, 1]} : vector<8x82xf32> to vector<8x64xf32>
    %c1_135 = arith.constant 1 : index
    %c0_136 = arith.constant 0 : index
    %185 = vector.load %arg13[%c1_135, %c0_136] : memref<9x64xf32, #tpu.memory_space<vmem>>, vector<1x64xf32>
    %186 = vector.broadcast %185 : vector<1x64xf32> to vector<8x64xf32>
    %187 = arith.mulf %184, %186 : vector<8x64xf32>
    %c1_137 = arith.constant 1 : index
    %c0_138 = arith.constant 0 : index
    %c0_139 = arith.constant 0 : index
    %188 = vector.load %arg6[%c1_137, %c0_138, %c0_139] : memref<9x8x8xf32, #tpu.memory_space<vmem>>, vector<1x8x8xf32>
    %189 = vector.shape_cast %188 : vector<1x8x8xf32> to vector<8x8xf32>
    %cst_140 = arith.constant dense<0.000000e+00> : vector<8x64xf32>
    %190 = tpu.matmul %189, %187, %cst_140 {dimension_numbers = #tpu.dot_dimension_numbers<[1], [0], [0], [1], [0, 0, 1, 1], [], []>} : vector<8x8xf32>, vector<8x64xf32>, vector<8x64xf32> -> vector<8x64xf32>
    %191 = arith.addf %183, %190 : vector<8x64xf32>
    %192 = vector.extract_strided_slice %174 {offsets = [0, 2], sizes = [8, 64], strides = [1, 1]} : vector<8x82xf32> to vector<8x64xf32>
    %c2_141 = arith.constant 2 : index
    %c0_142 = arith.constant 0 : index
    %193 = vector.load %arg13[%c2_141, %c0_142] : memref<9x64xf32, #tpu.memory_space<vmem>>, vector<1x64xf32>
    %194 = vector.broadcast %193 : vector<1x64xf32> to vector<8x64xf32>
    %195 = arith.mulf %192, %194 : vector<8x64xf32>
    %c2_143 = arith.constant 2 : index
    %c0_144 = arith.constant 0 : index
    %c0_145 = arith.constant 0 : index
    %196 = vector.load %arg6[%c2_143, %c0_144, %c0_145] : memref<9x8x8xf32, #tpu.memory_space<vmem>>, vector<1x8x8xf32>
    %197 = vector.shape_cast %196 : vector<1x8x8xf32> to vector<8x8xf32>
    %cst_146 = arith.constant dense<0.000000e+00> : vector<8x64xf32>
    %198 = tpu.matmul %197, %195, %cst_146 {dimension_numbers = #tpu.dot_dimension_numbers<[1], [0], [0], [1], [0, 0, 1, 1], [], []>} : vector<8x8xf32>, vector<8x64xf32>, vector<8x64xf32> -> vector<8x64xf32>
    %199 = arith.addf %191, %198 : vector<8x64xf32>
    %200 = vector.extract_strided_slice %174 {offsets = [0, 8], sizes = [8, 64], strides = [1, 1]} : vector<8x82xf32> to vector<8x64xf32>
    %c3_147 = arith.constant 3 : index
    %c0_148 = arith.constant 0 : index
    %201 = vector.load %arg13[%c3_147, %c0_148] : memref<9x64xf32, #tpu.memory_space<vmem>>, vector<1x64xf32>
    %202 = vector.broadcast %201 : vector<1x64xf32> to vector<8x64xf32>
    %203 = arith.mulf %200, %202 : vector<8x64xf32>
    %c3_149 = arith.constant 3 : index
    %c0_150 = arith.constant 0 : index
    %c0_151 = arith.constant 0 : index
    %204 = vector.load %arg6[%c3_149, %c0_150, %c0_151] : memref<9x8x8xf32, #tpu.memory_space<vmem>>, vector<1x8x8xf32>
    %205 = vector.shape_cast %204 : vector<1x8x8xf32> to vector<8x8xf32>
    %cst_152 = arith.constant dense<0.000000e+00> : vector<8x64xf32>
    %206 = tpu.matmul %205, %203, %cst_152 {dimension_numbers = #tpu.dot_dimension_numbers<[1], [0], [0], [1], [0, 0, 1, 1], [], []>} : vector<8x8xf32>, vector<8x64xf32>, vector<8x64xf32> -> vector<8x64xf32>
    %207 = arith.addf %199, %206 : vector<8x64xf32>
    %208 = vector.extract_strided_slice %174 {offsets = [0, 9], sizes = [8, 64], strides = [1, 1]} : vector<8x82xf32> to vector<8x64xf32>
    %c4_153 = arith.constant 4 : index
    %c0_154 = arith.constant 0 : index
    %209 = vector.load %arg13[%c4_153, %c0_154] : memref<9x64xf32, #tpu.memory_space<vmem>>, vector<1x64xf32>
    %210 = vector.broadcast %209 : vector<1x64xf32> to vector<8x64xf32>
    %211 = arith.mulf %208, %210 : vector<8x64xf32>
    %c4_155 = arith.constant 4 : index
    %c0_156 = arith.constant 0 : index
    %c0_157 = arith.constant 0 : index
    %212 = vector.load %arg6[%c4_155, %c0_156, %c0_157] : memref<9x8x8xf32, #tpu.memory_space<vmem>>, vector<1x8x8xf32>
    %213 = vector.shape_cast %212 : vector<1x8x8xf32> to vector<8x8xf32>
    %cst_158 = arith.constant dense<0.000000e+00> : vector<8x64xf32>
    %214 = tpu.matmul %213, %211, %cst_158 {dimension_numbers = #tpu.dot_dimension_numbers<[1], [0], [0], [1], [0, 0, 1, 1], [], []>} : vector<8x8xf32>, vector<8x64xf32>, vector<8x64xf32> -> vector<8x64xf32>
    %215 = arith.addf %207, %214 : vector<8x64xf32>
    %216 = vector.extract_strided_slice %174 {offsets = [0, 10], sizes = [8, 64], strides = [1, 1]} : vector<8x82xf32> to vector<8x64xf32>
    %c5_159 = arith.constant 5 : index
    %c0_160 = arith.constant 0 : index
    %217 = vector.load %arg13[%c5_159, %c0_160] : memref<9x64xf32, #tpu.memory_space<vmem>>, vector<1x64xf32>
    %218 = vector.broadcast %217 : vector<1x64xf32> to vector<8x64xf32>
    %219 = arith.mulf %216, %218 : vector<8x64xf32>
    %c5_161 = arith.constant 5 : index
    %c0_162 = arith.constant 0 : index
    %c0_163 = arith.constant 0 : index
    %220 = vector.load %arg6[%c5_161, %c0_162, %c0_163] : memref<9x8x8xf32, #tpu.memory_space<vmem>>, vector<1x8x8xf32>
    %221 = vector.shape_cast %220 : vector<1x8x8xf32> to vector<8x8xf32>
    %cst_164 = arith.constant dense<0.000000e+00> : vector<8x64xf32>
    %222 = tpu.matmul %221, %219, %cst_164 {dimension_numbers = #tpu.dot_dimension_numbers<[1], [0], [0], [1], [0, 0, 1, 1], [], []>} : vector<8x8xf32>, vector<8x64xf32>, vector<8x64xf32> -> vector<8x64xf32>
    %223 = arith.addf %215, %222 : vector<8x64xf32>
    %224 = vector.extract_strided_slice %174 {offsets = [0, 16], sizes = [8, 64], strides = [1, 1]} : vector<8x82xf32> to vector<8x64xf32>
    %c6_165 = arith.constant 6 : index
    %c0_166 = arith.constant 0 : index
    %225 = vector.load %arg13[%c6_165, %c0_166] : memref<9x64xf32, #tpu.memory_space<vmem>>, vector<1x64xf32>
    %226 = vector.broadcast %225 : vector<1x64xf32> to vector<8x64xf32>
    %227 = arith.mulf %224, %226 : vector<8x64xf32>
    %c6_167 = arith.constant 6 : index
    %c0_168 = arith.constant 0 : index
    %c0_169 = arith.constant 0 : index
    %228 = vector.load %arg6[%c6_167, %c0_168, %c0_169] : memref<9x8x8xf32, #tpu.memory_space<vmem>>, vector<1x8x8xf32>
    %229 = vector.shape_cast %228 : vector<1x8x8xf32> to vector<8x8xf32>
    %cst_170 = arith.constant dense<0.000000e+00> : vector<8x64xf32>
    %230 = tpu.matmul %229, %227, %cst_170 {dimension_numbers = #tpu.dot_dimension_numbers<[1], [0], [0], [1], [0, 0, 1, 1], [], []>} : vector<8x8xf32>, vector<8x64xf32>, vector<8x64xf32> -> vector<8x64xf32>
    %231 = arith.addf %223, %230 : vector<8x64xf32>
    %232 = vector.extract_strided_slice %174 {offsets = [0, 17], sizes = [8, 64], strides = [1, 1]} : vector<8x82xf32> to vector<8x64xf32>
    %c7_171 = arith.constant 7 : index
    %c0_172 = arith.constant 0 : index
    %233 = vector.load %arg13[%c7_171, %c0_172] : memref<9x64xf32, #tpu.memory_space<vmem>>, vector<1x64xf32>
    %234 = vector.broadcast %233 : vector<1x64xf32> to vector<8x64xf32>
    %235 = arith.mulf %232, %234 : vector<8x64xf32>
    %c7_173 = arith.constant 7 : index
    %c0_174 = arith.constant 0 : index
    %c0_175 = arith.constant 0 : index
    %236 = vector.load %arg6[%c7_173, %c0_174, %c0_175] : memref<9x8x8xf32, #tpu.memory_space<vmem>>, vector<1x8x8xf32>
    %237 = vector.shape_cast %236 : vector<1x8x8xf32> to vector<8x8xf32>
    %cst_176 = arith.constant dense<0.000000e+00> : vector<8x64xf32>
    %238 = tpu.matmul %237, %235, %cst_176 {dimension_numbers = #tpu.dot_dimension_numbers<[1], [0], [0], [1], [0, 0, 1, 1], [], []>} : vector<8x8xf32>, vector<8x64xf32>, vector<8x64xf32> -> vector<8x64xf32>
    %239 = arith.addf %231, %238 : vector<8x64xf32>
    %240 = vector.extract_strided_slice %174 {offsets = [0, 18], sizes = [8, 64], strides = [1, 1]} : vector<8x82xf32> to vector<8x64xf32>
    %c8_177 = arith.constant 8 : index
    %c0_178 = arith.constant 0 : index
    %241 = vector.load %arg13[%c8_177, %c0_178] : memref<9x64xf32, #tpu.memory_space<vmem>>, vector<1x64xf32>
    %242 = vector.broadcast %241 : vector<1x64xf32> to vector<8x64xf32>
    %243 = arith.mulf %240, %242 : vector<8x64xf32>
    %c8_179 = arith.constant 8 : index
    %c0_180 = arith.constant 0 : index
    %c0_181 = arith.constant 0 : index
    %244 = vector.load %arg6[%c8_179, %c0_180, %c0_181] : memref<9x8x8xf32, #tpu.memory_space<vmem>>, vector<1x8x8xf32>
    %245 = vector.shape_cast %244 : vector<1x8x8xf32> to vector<8x8xf32>
    %cst_182 = arith.constant dense<0.000000e+00> : vector<8x64xf32>
    %246 = tpu.matmul %245, %243, %cst_182 {dimension_numbers = #tpu.dot_dimension_numbers<[1], [0], [0], [1], [0, 0, 1, 1], [], []>} : vector<8x8xf32>, vector<8x64xf32>, vector<8x64xf32> -> vector<8x64xf32>
    %247 = arith.addf %239, %246 : vector<8x64xf32>
    %c0_183 = arith.constant 0 : index
    %c0_184 = arith.constant 0 : index
    %248 = vector.load %arg7[%c0_183, %c0_184] : memref<8x1xf32, #tpu.memory_space<vmem>>, vector<8x1xf32>
    %249 = vector.broadcast %248 : vector<8x1xf32> to vector<8x64xf32>
    %250 = arith.addf %247, %249 : vector<8x64xf32>
    %cst_185 = arith.constant 0.000000e+00 : f32
    %251 = vector.broadcast %cst_185 : f32 to vector<8x64xf32>
    %252 = arith.maximumf %250, %251 : vector<8x64xf32>
    %c0_186 = arith.constant 0 : index
    %c0_187 = arith.constant 0 : index
    %c0_188 = arith.constant 0 : index
    %253 = vector.load %arg18[%c0_186, %c0_187, %c0_188] : memref<4x64x26xf32, #tpu.memory_space<vmem>>, vector<1x64x26xf32>
    %254 = vector.shape_cast %253 : vector<1x64x26xf32> to vector<64x26xf32>
    %cst_189 = arith.constant dense<0.000000e+00> : vector<8x26xf32>
    %255 = tpu.matmul %252, %254, %cst_189 {dimension_numbers = #tpu.dot_dimension_numbers<[1], [0], [0], [1], [0, 0, 1, 1], [], []>} : vector<8x64xf32>, vector<64x26xf32>, vector<8x26xf32> -> vector<8x26xf32>
    %c1_190 = arith.constant 1 : index
    %c0_191 = arith.constant 0 : index
    %c0_192 = arith.constant 0 : index
    %256 = vector.load %arg18[%c1_190, %c0_191, %c0_192] : memref<4x64x26xf32, #tpu.memory_space<vmem>>, vector<1x64x26xf32>
    %257 = vector.shape_cast %256 : vector<1x64x26xf32> to vector<64x26xf32>
    %cst_193 = arith.constant dense<0.000000e+00> : vector<8x26xf32>
    %258 = tpu.matmul %252, %257, %cst_193 {dimension_numbers = #tpu.dot_dimension_numbers<[1], [0], [0], [1], [0, 0, 1, 1], [], []>} : vector<8x64xf32>, vector<64x26xf32>, vector<8x26xf32> -> vector<8x26xf32>
    %259 = arith.maximumf %255, %258 : vector<8x26xf32>
    %c2_194 = arith.constant 2 : index
    %c0_195 = arith.constant 0 : index
    %c0_196 = arith.constant 0 : index
    %260 = vector.load %arg18[%c2_194, %c0_195, %c0_196] : memref<4x64x26xf32, #tpu.memory_space<vmem>>, vector<1x64x26xf32>
    %261 = vector.shape_cast %260 : vector<1x64x26xf32> to vector<64x26xf32>
    %cst_197 = arith.constant dense<0.000000e+00> : vector<8x26xf32>
    %262 = tpu.matmul %252, %261, %cst_197 {dimension_numbers = #tpu.dot_dimension_numbers<[1], [0], [0], [1], [0, 0, 1, 1], [], []>} : vector<8x64xf32>, vector<64x26xf32>, vector<8x26xf32> -> vector<8x26xf32>
    %263 = arith.maximumf %259, %262 : vector<8x26xf32>
    %c3_198 = arith.constant 3 : index
    %c0_199 = arith.constant 0 : index
    %c0_200 = arith.constant 0 : index
    %264 = vector.load %arg18[%c3_198, %c0_199, %c0_200] : memref<4x64x26xf32, #tpu.memory_space<vmem>>, vector<1x64x26xf32>
    %265 = vector.shape_cast %264 : vector<1x64x26xf32> to vector<64x26xf32>
    %cst_201 = arith.constant dense<0.000000e+00> : vector<8x26xf32>
    %266 = tpu.matmul %252, %265, %cst_201 {dimension_numbers = #tpu.dot_dimension_numbers<[1], [0], [0], [1], [0, 0, 1, 1], [], []>} : vector<8x64xf32>, vector<64x26xf32>, vector<8x26xf32> -> vector<8x26xf32>
    %267 = arith.maximumf %263, %266 : vector<8x26xf32>
    %cst_202 = arith.constant 0.000000e+00 : f32
    %268 = vector.broadcast %cst_202 : f32 to vector<16x16xf32>
    %269 = vector.extract_strided_slice %267 {offsets = [0, 0], sizes = [8, 16], strides = [1, 1]} : vector<8x26xf32> to vector<8x16xf32>
    %c0_203 = arith.constant 0 : index
    %c0_204 = arith.constant 0 : index
    %270 = vector.load %arg14[%c0_203, %c0_204] : memref<9x16xf32, #tpu.memory_space<vmem>>, vector<1x16xf32>
    %271 = vector.broadcast %270 : vector<1x16xf32> to vector<8x16xf32>
    %272 = arith.mulf %269, %271 : vector<8x16xf32>
    %c0_205 = arith.constant 0 : index
    %c0_206 = arith.constant 0 : index
    %c0_207 = arith.constant 0 : index
    %273 = vector.load %arg8[%c0_205, %c0_206, %c0_207] : memref<9x16x8xf32, #tpu.memory_space<vmem>>, vector<1x16x8xf32>
    %274 = vector.shape_cast %273 : vector<1x16x8xf32> to vector<16x8xf32>
    %cst_208 = arith.constant dense<0.000000e+00> : vector<16x16xf32>
    %275 = tpu.matmul %274, %272, %cst_208 {dimension_numbers = #tpu.dot_dimension_numbers<[1], [0], [0], [1], [0, 0, 1, 1], [], []>} : vector<16x8xf32>, vector<8x16xf32>, vector<16x16xf32> -> vector<16x16xf32>
    %276 = arith.addf %268, %275 : vector<16x16xf32>
    %277 = vector.extract_strided_slice %267 {offsets = [0, 1], sizes = [8, 16], strides = [1, 1]} : vector<8x26xf32> to vector<8x16xf32>
    %c1_209 = arith.constant 1 : index
    %c0_210 = arith.constant 0 : index
    %278 = vector.load %arg14[%c1_209, %c0_210] : memref<9x16xf32, #tpu.memory_space<vmem>>, vector<1x16xf32>
    %279 = vector.broadcast %278 : vector<1x16xf32> to vector<8x16xf32>
    %280 = arith.mulf %277, %279 : vector<8x16xf32>
    %c1_211 = arith.constant 1 : index
    %c0_212 = arith.constant 0 : index
    %c0_213 = arith.constant 0 : index
    %281 = vector.load %arg8[%c1_211, %c0_212, %c0_213] : memref<9x16x8xf32, #tpu.memory_space<vmem>>, vector<1x16x8xf32>
    %282 = vector.shape_cast %281 : vector<1x16x8xf32> to vector<16x8xf32>
    %cst_214 = arith.constant dense<0.000000e+00> : vector<16x16xf32>
    %283 = tpu.matmul %282, %280, %cst_214 {dimension_numbers = #tpu.dot_dimension_numbers<[1], [0], [0], [1], [0, 0, 1, 1], [], []>} : vector<16x8xf32>, vector<8x16xf32>, vector<16x16xf32> -> vector<16x16xf32>
    %284 = arith.addf %276, %283 : vector<16x16xf32>
    %285 = vector.extract_strided_slice %267 {offsets = [0, 2], sizes = [8, 16], strides = [1, 1]} : vector<8x26xf32> to vector<8x16xf32>
    %c2_215 = arith.constant 2 : index
    %c0_216 = arith.constant 0 : index
    %286 = vector.load %arg14[%c2_215, %c0_216] : memref<9x16xf32, #tpu.memory_space<vmem>>, vector<1x16xf32>
    %287 = vector.broadcast %286 : vector<1x16xf32> to vector<8x16xf32>
    %288 = arith.mulf %285, %287 : vector<8x16xf32>
    %c2_217 = arith.constant 2 : index
    %c0_218 = arith.constant 0 : index
    %c0_219 = arith.constant 0 : index
    %289 = vector.load %arg8[%c2_217, %c0_218, %c0_219] : memref<9x16x8xf32, #tpu.memory_space<vmem>>, vector<1x16x8xf32>
    %290 = vector.shape_cast %289 : vector<1x16x8xf32> to vector<16x8xf32>
    %cst_220 = arith.constant dense<0.000000e+00> : vector<16x16xf32>
    %291 = tpu.matmul %290, %288, %cst_220 {dimension_numbers = #tpu.dot_dimension_numbers<[1], [0], [0], [1], [0, 0, 1, 1], [], []>} : vector<16x8xf32>, vector<8x16xf32>, vector<16x16xf32> -> vector<16x16xf32>
    %292 = arith.addf %284, %291 : vector<16x16xf32>
    %293 = vector.extract_strided_slice %267 {offsets = [0, 4], sizes = [8, 16], strides = [1, 1]} : vector<8x26xf32> to vector<8x16xf32>
    %c3_221 = arith.constant 3 : index
    %c0_222 = arith.constant 0 : index
    %294 = vector.load %arg14[%c3_221, %c0_222] : memref<9x16xf32, #tpu.memory_space<vmem>>, vector<1x16xf32>
    %295 = vector.broadcast %294 : vector<1x16xf32> to vector<8x16xf32>
    %296 = arith.mulf %293, %295 : vector<8x16xf32>
    %c3_223 = arith.constant 3 : index
    %c0_224 = arith.constant 0 : index
    %c0_225 = arith.constant 0 : index
    %297 = vector.load %arg8[%c3_223, %c0_224, %c0_225] : memref<9x16x8xf32, #tpu.memory_space<vmem>>, vector<1x16x8xf32>
    %298 = vector.shape_cast %297 : vector<1x16x8xf32> to vector<16x8xf32>
    %cst_226 = arith.constant dense<0.000000e+00> : vector<16x16xf32>
    %299 = tpu.matmul %298, %296, %cst_226 {dimension_numbers = #tpu.dot_dimension_numbers<[1], [0], [0], [1], [0, 0, 1, 1], [], []>} : vector<16x8xf32>, vector<8x16xf32>, vector<16x16xf32> -> vector<16x16xf32>
    %300 = arith.addf %292, %299 : vector<16x16xf32>
    %301 = vector.extract_strided_slice %267 {offsets = [0, 5], sizes = [8, 16], strides = [1, 1]} : vector<8x26xf32> to vector<8x16xf32>
    %c4_227 = arith.constant 4 : index
    %c0_228 = arith.constant 0 : index
    %302 = vector.load %arg14[%c4_227, %c0_228] : memref<9x16xf32, #tpu.memory_space<vmem>>, vector<1x16xf32>
    %303 = vector.broadcast %302 : vector<1x16xf32> to vector<8x16xf32>
    %304 = arith.mulf %301, %303 : vector<8x16xf32>
    %c4_229 = arith.constant 4 : index
    %c0_230 = arith.constant 0 : index
    %c0_231 = arith.constant 0 : index
    %305 = vector.load %arg8[%c4_229, %c0_230, %c0_231] : memref<9x16x8xf32, #tpu.memory_space<vmem>>, vector<1x16x8xf32>
    %306 = vector.shape_cast %305 : vector<1x16x8xf32> to vector<16x8xf32>
    %cst_232 = arith.constant dense<0.000000e+00> : vector<16x16xf32>
    %307 = tpu.matmul %306, %304, %cst_232 {dimension_numbers = #tpu.dot_dimension_numbers<[1], [0], [0], [1], [0, 0, 1, 1], [], []>} : vector<16x8xf32>, vector<8x16xf32>, vector<16x16xf32> -> vector<16x16xf32>
    %308 = arith.addf %300, %307 : vector<16x16xf32>
    %309 = vector.extract_strided_slice %267 {offsets = [0, 6], sizes = [8, 16], strides = [1, 1]} : vector<8x26xf32> to vector<8x16xf32>
    %c5_233 = arith.constant 5 : index
    %c0_234 = arith.constant 0 : index
    %310 = vector.load %arg14[%c5_233, %c0_234] : memref<9x16xf32, #tpu.memory_space<vmem>>, vector<1x16xf32>
    %311 = vector.broadcast %310 : vector<1x16xf32> to vector<8x16xf32>
    %312 = arith.mulf %309, %311 : vector<8x16xf32>
    %c5_235 = arith.constant 5 : index
    %c0_236 = arith.constant 0 : index
    %c0_237 = arith.constant 0 : index
    %313 = vector.load %arg8[%c5_235, %c0_236, %c0_237] : memref<9x16x8xf32, #tpu.memory_space<vmem>>, vector<1x16x8xf32>
    %314 = vector.shape_cast %313 : vector<1x16x8xf32> to vector<16x8xf32>
    %cst_238 = arith.constant dense<0.000000e+00> : vector<16x16xf32>
    %315 = tpu.matmul %314, %312, %cst_238 {dimension_numbers = #tpu.dot_dimension_numbers<[1], [0], [0], [1], [0, 0, 1, 1], [], []>} : vector<16x8xf32>, vector<8x16xf32>, vector<16x16xf32> -> vector<16x16xf32>
    %316 = arith.addf %308, %315 : vector<16x16xf32>
    %317 = vector.extract_strided_slice %267 {offsets = [0, 8], sizes = [8, 16], strides = [1, 1]} : vector<8x26xf32> to vector<8x16xf32>
    %c6_239 = arith.constant 6 : index
    %c0_240 = arith.constant 0 : index
    %318 = vector.load %arg14[%c6_239, %c0_240] : memref<9x16xf32, #tpu.memory_space<vmem>>, vector<1x16xf32>
    %319 = vector.broadcast %318 : vector<1x16xf32> to vector<8x16xf32>
    %320 = arith.mulf %317, %319 : vector<8x16xf32>
    %c6_241 = arith.constant 6 : index
    %c0_242 = arith.constant 0 : index
    %c0_243 = arith.constant 0 : index
    %321 = vector.load %arg8[%c6_241, %c0_242, %c0_243] : memref<9x16x8xf32, #tpu.memory_space<vmem>>, vector<1x16x8xf32>
    %322 = vector.shape_cast %321 : vector<1x16x8xf32> to vector<16x8xf32>
    %cst_244 = arith.constant dense<0.000000e+00> : vector<16x16xf32>
    %323 = tpu.matmul %322, %320, %cst_244 {dimension_numbers = #tpu.dot_dimension_numbers<[1], [0], [0], [1], [0, 0, 1, 1], [], []>} : vector<16x8xf32>, vector<8x16xf32>, vector<16x16xf32> -> vector<16x16xf32>
    %324 = arith.addf %316, %323 : vector<16x16xf32>
    %325 = vector.extract_strided_slice %267 {offsets = [0, 9], sizes = [8, 16], strides = [1, 1]} : vector<8x26xf32> to vector<8x16xf32>
    %c7_245 = arith.constant 7 : index
    %c0_246 = arith.constant 0 : index
    %326 = vector.load %arg14[%c7_245, %c0_246] : memref<9x16xf32, #tpu.memory_space<vmem>>, vector<1x16xf32>
    %327 = vector.broadcast %326 : vector<1x16xf32> to vector<8x16xf32>
    %328 = arith.mulf %325, %327 : vector<8x16xf32>
    %c7_247 = arith.constant 7 : index
    %c0_248 = arith.constant 0 : index
    %c0_249 = arith.constant 0 : index
    %329 = vector.load %arg8[%c7_247, %c0_248, %c0_249] : memref<9x16x8xf32, #tpu.memory_space<vmem>>, vector<1x16x8xf32>
    %330 = vector.shape_cast %329 : vector<1x16x8xf32> to vector<16x8xf32>
    %cst_250 = arith.constant dense<0.000000e+00> : vector<16x16xf32>
    %331 = tpu.matmul %330, %328, %cst_250 {dimension_numbers = #tpu.dot_dimension_numbers<[1], [0], [0], [1], [0, 0, 1, 1], [], []>} : vector<16x8xf32>, vector<8x16xf32>, vector<16x16xf32> -> vector<16x16xf32>
    %332 = arith.addf %324, %331 : vector<16x16xf32>
    %333 = vector.extract_strided_slice %267 {offsets = [0, 10], sizes = [8, 16], strides = [1, 1]} : vector<8x26xf32> to vector<8x16xf32>
    %c8_251 = arith.constant 8 : index
    %c0_252 = arith.constant 0 : index
    %334 = vector.load %arg14[%c8_251, %c0_252] : memref<9x16xf32, #tpu.memory_space<vmem>>, vector<1x16xf32>
    %335 = vector.broadcast %334 : vector<1x16xf32> to vector<8x16xf32>
    %336 = arith.mulf %333, %335 : vector<8x16xf32>
    %c8_253 = arith.constant 8 : index
    %c0_254 = arith.constant 0 : index
    %c0_255 = arith.constant 0 : index
    %337 = vector.load %arg8[%c8_253, %c0_254, %c0_255] : memref<9x16x8xf32, #tpu.memory_space<vmem>>, vector<1x16x8xf32>
    %338 = vector.shape_cast %337 : vector<1x16x8xf32> to vector<16x8xf32>
    %cst_256 = arith.constant dense<0.000000e+00> : vector<16x16xf32>
    %339 = tpu.matmul %338, %336, %cst_256 {dimension_numbers = #tpu.dot_dimension_numbers<[1], [0], [0], [1], [0, 0, 1, 1], [], []>} : vector<16x8xf32>, vector<8x16xf32>, vector<16x16xf32> -> vector<16x16xf32>
    %340 = arith.addf %332, %339 : vector<16x16xf32>
    %c0_257 = arith.constant 0 : index
    %c0_258 = arith.constant 0 : index
    %341 = vector.load %arg9[%c0_257, %c0_258] : memref<16x1xf32, #tpu.memory_space<vmem>>, vector<16x1xf32>
    %342 = vector.broadcast %341 : vector<16x1xf32> to vector<16x16xf32>
    %343 = arith.addf %340, %342 : vector<16x16xf32>
    %cst_259 = arith.constant 0.000000e+00 : f32
    %344 = vector.broadcast %cst_259 : f32 to vector<16x16xf32>
    %345 = arith.maximumf %343, %344 : vector<16x16xf32>
    %c0_260 = arith.constant 0 : index
    %c0_261 = arith.constant 0 : index
    %346 = vector.load %arg16[%c0_260, %c0_261] : memref<16x26xf32, #tpu.memory_space<vmem>>, vector<16x26xf32>
    %cst_262 = arith.constant dense<0.000000e+00> : vector<16x26xf32>
    %347 = tpu.matmul %345, %346, %cst_262 {dimension_numbers = #tpu.dot_dimension_numbers<[1], [0], [0], [1], [0, 0, 1, 1], [], []>} : vector<16x16xf32>, vector<16x26xf32>, vector<16x26xf32> -> vector<16x26xf32>
    %cst_263 = arith.constant 0.000000e+00 : f32
    %348 = vector.broadcast %cst_263 : f32 to vector<16x16xf32>
    %349 = vector.extract_strided_slice %347 {offsets = [0, 0], sizes = [16, 16], strides = [1, 1]} : vector<16x26xf32> to vector<16x16xf32>
    %c0_264 = arith.constant 0 : index
    %c0_265 = arith.constant 0 : index
    %350 = vector.load %arg14[%c0_264, %c0_265] : memref<9x16xf32, #tpu.memory_space<vmem>>, vector<1x16xf32>
    %351 = vector.broadcast %350 : vector<1x16xf32> to vector<16x16xf32>
    %352 = arith.mulf %349, %351 : vector<16x16xf32>
    %c0_266 = arith.constant 0 : index
    %c0_267 = arith.constant 0 : index
    %c0_268 = arith.constant 0 : index
    %353 = vector.load %arg10[%c0_266, %c0_267, %c0_268] : memref<9x16x16xf32, #tpu.memory_space<vmem>>, vector<1x16x16xf32>
    %354 = vector.shape_cast %353 : vector<1x16x16xf32> to vector<16x16xf32>
    %cst_269 = arith.constant dense<0.000000e+00> : vector<16x16xf32>
    %355 = tpu.matmul %354, %352, %cst_269 {dimension_numbers = #tpu.dot_dimension_numbers<[1], [0], [0], [1], [0, 0, 1, 1], [], []>} : vector<16x16xf32>, vector<16x16xf32>, vector<16x16xf32> -> vector<16x16xf32>
    %356 = arith.addf %348, %355 : vector<16x16xf32>
    %357 = vector.extract_strided_slice %347 {offsets = [0, 1], sizes = [16, 16], strides = [1, 1]} : vector<16x26xf32> to vector<16x16xf32>
    %c1_270 = arith.constant 1 : index
    %c0_271 = arith.constant 0 : index
    %358 = vector.load %arg14[%c1_270, %c0_271] : memref<9x16xf32, #tpu.memory_space<vmem>>, vector<1x16xf32>
    %359 = vector.broadcast %358 : vector<1x16xf32> to vector<16x16xf32>
    %360 = arith.mulf %357, %359 : vector<16x16xf32>
    %c1_272 = arith.constant 1 : index
    %c0_273 = arith.constant 0 : index
    %c0_274 = arith.constant 0 : index
    %361 = vector.load %arg10[%c1_272, %c0_273, %c0_274] : memref<9x16x16xf32, #tpu.memory_space<vmem>>, vector<1x16x16xf32>
    %362 = vector.shape_cast %361 : vector<1x16x16xf32> to vector<16x16xf32>
    %cst_275 = arith.constant dense<0.000000e+00> : vector<16x16xf32>
    %363 = tpu.matmul %362, %360, %cst_275 {dimension_numbers = #tpu.dot_dimension_numbers<[1], [0], [0], [1], [0, 0, 1, 1], [], []>} : vector<16x16xf32>, vector<16x16xf32>, vector<16x16xf32> -> vector<16x16xf32>
    %364 = arith.addf %356, %363 : vector<16x16xf32>
    %365 = vector.extract_strided_slice %347 {offsets = [0, 2], sizes = [16, 16], strides = [1, 1]} : vector<16x26xf32> to vector<16x16xf32>
    %c2_276 = arith.constant 2 : index
    %c0_277 = arith.constant 0 : index
    %366 = vector.load %arg14[%c2_276, %c0_277] : memref<9x16xf32, #tpu.memory_space<vmem>>, vector<1x16xf32>
    %367 = vector.broadcast %366 : vector<1x16xf32> to vector<16x16xf32>
    %368 = arith.mulf %365, %367 : vector<16x16xf32>
    %c2_278 = arith.constant 2 : index
    %c0_279 = arith.constant 0 : index
    %c0_280 = arith.constant 0 : index
    %369 = vector.load %arg10[%c2_278, %c0_279, %c0_280] : memref<9x16x16xf32, #tpu.memory_space<vmem>>, vector<1x16x16xf32>
    %370 = vector.shape_cast %369 : vector<1x16x16xf32> to vector<16x16xf32>
    %cst_281 = arith.constant dense<0.000000e+00> : vector<16x16xf32>
    %371 = tpu.matmul %370, %368, %cst_281 {dimension_numbers = #tpu.dot_dimension_numbers<[1], [0], [0], [1], [0, 0, 1, 1], [], []>} : vector<16x16xf32>, vector<16x16xf32>, vector<16x16xf32> -> vector<16x16xf32>
    %372 = arith.addf %364, %371 : vector<16x16xf32>
    %373 = vector.extract_strided_slice %347 {offsets = [0, 4], sizes = [16, 16], strides = [1, 1]} : vector<16x26xf32> to vector<16x16xf32>
    %c3_282 = arith.constant 3 : index
    %c0_283 = arith.constant 0 : index
    %374 = vector.load %arg14[%c3_282, %c0_283] : memref<9x16xf32, #tpu.memory_space<vmem>>, vector<1x16xf32>
    %375 = vector.broadcast %374 : vector<1x16xf32> to vector<16x16xf32>
    %376 = arith.mulf %373, %375 : vector<16x16xf32>
    %c3_284 = arith.constant 3 : index
    %c0_285 = arith.constant 0 : index
    %c0_286 = arith.constant 0 : index
    %377 = vector.load %arg10[%c3_284, %c0_285, %c0_286] : memref<9x16x16xf32, #tpu.memory_space<vmem>>, vector<1x16x16xf32>
    %378 = vector.shape_cast %377 : vector<1x16x16xf32> to vector<16x16xf32>
    %cst_287 = arith.constant dense<0.000000e+00> : vector<16x16xf32>
    %379 = tpu.matmul %378, %376, %cst_287 {dimension_numbers = #tpu.dot_dimension_numbers<[1], [0], [0], [1], [0, 0, 1, 1], [], []>} : vector<16x16xf32>, vector<16x16xf32>, vector<16x16xf32> -> vector<16x16xf32>
    %380 = arith.addf %372, %379 : vector<16x16xf32>
    %381 = vector.extract_strided_slice %347 {offsets = [0, 5], sizes = [16, 16], strides = [1, 1]} : vector<16x26xf32> to vector<16x16xf32>
    %c4_288 = arith.constant 4 : index
    %c0_289 = arith.constant 0 : index
    %382 = vector.load %arg14[%c4_288, %c0_289] : memref<9x16xf32, #tpu.memory_space<vmem>>, vector<1x16xf32>
    %383 = vector.broadcast %382 : vector<1x16xf32> to vector<16x16xf32>
    %384 = arith.mulf %381, %383 : vector<16x16xf32>
    %c4_290 = arith.constant 4 : index
    %c0_291 = arith.constant 0 : index
    %c0_292 = arith.constant 0 : index
    %385 = vector.load %arg10[%c4_290, %c0_291, %c0_292] : memref<9x16x16xf32, #tpu.memory_space<vmem>>, vector<1x16x16xf32>
    %386 = vector.shape_cast %385 : vector<1x16x16xf32> to vector<16x16xf32>
    %cst_293 = arith.constant dense<0.000000e+00> : vector<16x16xf32>
    %387 = tpu.matmul %386, %384, %cst_293 {dimension_numbers = #tpu.dot_dimension_numbers<[1], [0], [0], [1], [0, 0, 1, 1], [], []>} : vector<16x16xf32>, vector<16x16xf32>, vector<16x16xf32> -> vector<16x16xf32>
    %388 = arith.addf %380, %387 : vector<16x16xf32>
    %389 = vector.extract_strided_slice %347 {offsets = [0, 6], sizes = [16, 16], strides = [1, 1]} : vector<16x26xf32> to vector<16x16xf32>
    %c5_294 = arith.constant 5 : index
    %c0_295 = arith.constant 0 : index
    %390 = vector.load %arg14[%c5_294, %c0_295] : memref<9x16xf32, #tpu.memory_space<vmem>>, vector<1x16xf32>
    %391 = vector.broadcast %390 : vector<1x16xf32> to vector<16x16xf32>
    %392 = arith.mulf %389, %391 : vector<16x16xf32>
    %c5_296 = arith.constant 5 : index
    %c0_297 = arith.constant 0 : index
    %c0_298 = arith.constant 0 : index
    %393 = vector.load %arg10[%c5_296, %c0_297, %c0_298] : memref<9x16x16xf32, #tpu.memory_space<vmem>>, vector<1x16x16xf32>
    %394 = vector.shape_cast %393 : vector<1x16x16xf32> to vector<16x16xf32>
    %cst_299 = arith.constant dense<0.000000e+00> : vector<16x16xf32>
    %395 = tpu.matmul %394, %392, %cst_299 {dimension_numbers = #tpu.dot_dimension_numbers<[1], [0], [0], [1], [0, 0, 1, 1], [], []>} : vector<16x16xf32>, vector<16x16xf32>, vector<16x16xf32> -> vector<16x16xf32>
    %396 = arith.addf %388, %395 : vector<16x16xf32>
    %397 = vector.extract_strided_slice %347 {offsets = [0, 8], sizes = [16, 16], strides = [1, 1]} : vector<16x26xf32> to vector<16x16xf32>
    %c6_300 = arith.constant 6 : index
    %c0_301 = arith.constant 0 : index
    %398 = vector.load %arg14[%c6_300, %c0_301] : memref<9x16xf32, #tpu.memory_space<vmem>>, vector<1x16xf32>
    %399 = vector.broadcast %398 : vector<1x16xf32> to vector<16x16xf32>
    %400 = arith.mulf %397, %399 : vector<16x16xf32>
    %c6_302 = arith.constant 6 : index
    %c0_303 = arith.constant 0 : index
    %c0_304 = arith.constant 0 : index
    %401 = vector.load %arg10[%c6_302, %c0_303, %c0_304] : memref<9x16x16xf32, #tpu.memory_space<vmem>>, vector<1x16x16xf32>
    %402 = vector.shape_cast %401 : vector<1x16x16xf32> to vector<16x16xf32>
    %cst_305 = arith.constant dense<0.000000e+00> : vector<16x16xf32>
    %403 = tpu.matmul %402, %400, %cst_305 {dimension_numbers = #tpu.dot_dimension_numbers<[1], [0], [0], [1], [0, 0, 1, 1], [], []>} : vector<16x16xf32>, vector<16x16xf32>, vector<16x16xf32> -> vector<16x16xf32>
    %404 = arith.addf %396, %403 : vector<16x16xf32>
    %405 = vector.extract_strided_slice %347 {offsets = [0, 9], sizes = [16, 16], strides = [1, 1]} : vector<16x26xf32> to vector<16x16xf32>
    %c7_306 = arith.constant 7 : index
    %c0_307 = arith.constant 0 : index
    %406 = vector.load %arg14[%c7_306, %c0_307] : memref<9x16xf32, #tpu.memory_space<vmem>>, vector<1x16xf32>
    %407 = vector.broadcast %406 : vector<1x16xf32> to vector<16x16xf32>
    %408 = arith.mulf %405, %407 : vector<16x16xf32>
    %c7_308 = arith.constant 7 : index
    %c0_309 = arith.constant 0 : index
    %c0_310 = arith.constant 0 : index
    %409 = vector.load %arg10[%c7_308, %c0_309, %c0_310] : memref<9x16x16xf32, #tpu.memory_space<vmem>>, vector<1x16x16xf32>
    %410 = vector.shape_cast %409 : vector<1x16x16xf32> to vector<16x16xf32>
    %cst_311 = arith.constant dense<0.000000e+00> : vector<16x16xf32>
    %411 = tpu.matmul %410, %408, %cst_311 {dimension_numbers = #tpu.dot_dimension_numbers<[1], [0], [0], [1], [0, 0, 1, 1], [], []>} : vector<16x16xf32>, vector<16x16xf32>, vector<16x16xf32> -> vector<16x16xf32>
    %412 = arith.addf %404, %411 : vector<16x16xf32>
    %413 = vector.extract_strided_slice %347 {offsets = [0, 10], sizes = [16, 16], strides = [1, 1]} : vector<16x26xf32> to vector<16x16xf32>
    %c8_312 = arith.constant 8 : index
    %c0_313 = arith.constant 0 : index
    %414 = vector.load %arg14[%c8_312, %c0_313] : memref<9x16xf32, #tpu.memory_space<vmem>>, vector<1x16xf32>
    %415 = vector.broadcast %414 : vector<1x16xf32> to vector<16x16xf32>
    %416 = arith.mulf %413, %415 : vector<16x16xf32>
    %c8_314 = arith.constant 8 : index
    %c0_315 = arith.constant 0 : index
    %c0_316 = arith.constant 0 : index
    %417 = vector.load %arg10[%c8_314, %c0_315, %c0_316] : memref<9x16x16xf32, #tpu.memory_space<vmem>>, vector<1x16x16xf32>
    %418 = vector.shape_cast %417 : vector<1x16x16xf32> to vector<16x16xf32>
    %cst_317 = arith.constant dense<0.000000e+00> : vector<16x16xf32>
    %419 = tpu.matmul %418, %416, %cst_317 {dimension_numbers = #tpu.dot_dimension_numbers<[1], [0], [0], [1], [0, 0, 1, 1], [], []>} : vector<16x16xf32>, vector<16x16xf32>, vector<16x16xf32> -> vector<16x16xf32>
    %420 = arith.addf %412, %419 : vector<16x16xf32>
    %c0_318 = arith.constant 0 : index
    %c0_319 = arith.constant 0 : index
    %421 = vector.load %arg11[%c0_318, %c0_319] : memref<16x1xf32, #tpu.memory_space<vmem>>, vector<16x1xf32>
    %422 = vector.broadcast %421 : vector<16x1xf32> to vector<16x16xf32>
    %423 = arith.addf %420, %422 : vector<16x16xf32>
    %cst_320 = arith.constant 0.000000e+00 : f32
    %424 = vector.broadcast %cst_320 : f32 to vector<16x16xf32>
    %425 = arith.maximumf %423, %424 : vector<16x16xf32>
    %c0_321 = arith.constant 0 : index
    %c0_322 = arith.constant 0 : index
    %c0_323 = arith.constant 0 : index
    %426 = vector.load %arg19[%c0_321, %c0_322, %c0_323] : memref<4x16x4xf32, #tpu.memory_space<vmem>>, vector<1x16x4xf32>
    %427 = vector.shape_cast %426 : vector<1x16x4xf32> to vector<16x4xf32>
    %cst_324 = arith.constant dense<0.000000e+00> : vector<16x4xf32>
    %428 = tpu.matmul %425, %427, %cst_324 {dimension_numbers = #tpu.dot_dimension_numbers<[1], [0], [0], [1], [0, 0, 1, 1], [], []>} : vector<16x16xf32>, vector<16x4xf32>, vector<16x4xf32> -> vector<16x4xf32>
    %c1_325 = arith.constant 1 : index
    %c0_326 = arith.constant 0 : index
    %c0_327 = arith.constant 0 : index
    %429 = vector.load %arg19[%c1_325, %c0_326, %c0_327] : memref<4x16x4xf32, #tpu.memory_space<vmem>>, vector<1x16x4xf32>
    %430 = vector.shape_cast %429 : vector<1x16x4xf32> to vector<16x4xf32>
    %cst_328 = arith.constant dense<0.000000e+00> : vector<16x4xf32>
    %431 = tpu.matmul %425, %430, %cst_328 {dimension_numbers = #tpu.dot_dimension_numbers<[1], [0], [0], [1], [0, 0, 1, 1], [], []>} : vector<16x16xf32>, vector<16x4xf32>, vector<16x4xf32> -> vector<16x4xf32>
    %432 = arith.maximumf %428, %431 : vector<16x4xf32>
    %c2_329 = arith.constant 2 : index
    %c0_330 = arith.constant 0 : index
    %c0_331 = arith.constant 0 : index
    %433 = vector.load %arg19[%c2_329, %c0_330, %c0_331] : memref<4x16x4xf32, #tpu.memory_space<vmem>>, vector<1x16x4xf32>
    %434 = vector.shape_cast %433 : vector<1x16x4xf32> to vector<16x4xf32>
    %cst_332 = arith.constant dense<0.000000e+00> : vector<16x4xf32>
    %435 = tpu.matmul %425, %434, %cst_332 {dimension_numbers = #tpu.dot_dimension_numbers<[1], [0], [0], [1], [0, 0, 1, 1], [], []>} : vector<16x16xf32>, vector<16x4xf32>, vector<16x4xf32> -> vector<16x4xf32>
    %436 = arith.maximumf %432, %435 : vector<16x4xf32>
    %c3_333 = arith.constant 3 : index
    %c0_334 = arith.constant 0 : index
    %c0_335 = arith.constant 0 : index
    %437 = vector.load %arg19[%c3_333, %c0_334, %c0_335] : memref<4x16x4xf32, #tpu.memory_space<vmem>>, vector<1x16x4xf32>
    %438 = vector.shape_cast %437 : vector<1x16x4xf32> to vector<16x4xf32>
    %cst_336 = arith.constant dense<0.000000e+00> : vector<16x4xf32>
    %439 = tpu.matmul %425, %438, %cst_336 {dimension_numbers = #tpu.dot_dimension_numbers<[1], [0], [0], [1], [0, 0, 1, 1], [], []>} : vector<16x16xf32>, vector<16x4xf32>, vector<16x4xf32> -> vector<16x4xf32>
    %440 = arith.maximumf %436, %439 : vector<16x4xf32>
    %cst_337 = arith.constant 0.000000e+00 : f32
    %441 = vector.broadcast %cst_337 : f32 to vector<32x1xf32>
    %c0_338 = arith.constant 0 : index
    %c0_339 = arith.constant 0 : index
    %c0_340 = arith.constant 0 : index
    %442 = vector.load %arg20[%c0_338, %c0_339, %c0_340] : memref<4x32x16xf32, #tpu.memory_space<vmem>>, vector<1x32x16xf32>
    %443 = vector.shape_cast %442 : vector<1x32x16xf32> to vector<32x16xf32>
    %444 = vector.extract_strided_slice %440 {offsets = [0, 0], sizes = [16, 1], strides = [1, 1]} : vector<16x4xf32> to vector<16x1xf32>
    %cst_341 = arith.constant dense<0.000000e+00> : vector<32x1xf32>
    %445 = tpu.matmul %443, %444, %cst_341 {dimension_numbers = #tpu.dot_dimension_numbers<[1], [0], [0], [1], [0, 0, 1, 1], [], []>} : vector<32x16xf32>, vector<16x1xf32>, vector<32x1xf32> -> vector<32x1xf32>
    %446 = arith.addf %441, %445 : vector<32x1xf32>
    %c1_342 = arith.constant 1 : index
    %c0_343 = arith.constant 0 : index
    %c0_344 = arith.constant 0 : index
    %447 = vector.load %arg20[%c1_342, %c0_343, %c0_344] : memref<4x32x16xf32, #tpu.memory_space<vmem>>, vector<1x32x16xf32>
    %448 = vector.shape_cast %447 : vector<1x32x16xf32> to vector<32x16xf32>
    %449 = vector.extract_strided_slice %440 {offsets = [0, 1], sizes = [16, 1], strides = [1, 1]} : vector<16x4xf32> to vector<16x1xf32>
    %cst_345 = arith.constant dense<0.000000e+00> : vector<32x1xf32>
    %450 = tpu.matmul %448, %449, %cst_345 {dimension_numbers = #tpu.dot_dimension_numbers<[1], [0], [0], [1], [0, 0, 1, 1], [], []>} : vector<32x16xf32>, vector<16x1xf32>, vector<32x1xf32> -> vector<32x1xf32>
    %451 = arith.addf %446, %450 : vector<32x1xf32>
    %c2_346 = arith.constant 2 : index
    %c0_347 = arith.constant 0 : index
    %c0_348 = arith.constant 0 : index
    %452 = vector.load %arg20[%c2_346, %c0_347, %c0_348] : memref<4x32x16xf32, #tpu.memory_space<vmem>>, vector<1x32x16xf32>
    %453 = vector.shape_cast %452 : vector<1x32x16xf32> to vector<32x16xf32>
    %454 = vector.extract_strided_slice %440 {offsets = [0, 2], sizes = [16, 1], strides = [1, 1]} : vector<16x4xf32> to vector<16x1xf32>
    %cst_349 = arith.constant dense<0.000000e+00> : vector<32x1xf32>
    %455 = tpu.matmul %453, %454, %cst_349 {dimension_numbers = #tpu.dot_dimension_numbers<[1], [0], [0], [1], [0, 0, 1, 1], [], []>} : vector<32x16xf32>, vector<16x1xf32>, vector<32x1xf32> -> vector<32x1xf32>
    %456 = arith.addf %451, %455 : vector<32x1xf32>
    %c3_350 = arith.constant 3 : index
    %c0_351 = arith.constant 0 : index
    %c0_352 = arith.constant 0 : index
    %457 = vector.load %arg20[%c3_350, %c0_351, %c0_352] : memref<4x32x16xf32, #tpu.memory_space<vmem>>, vector<1x32x16xf32>
    %458 = vector.shape_cast %457 : vector<1x32x16xf32> to vector<32x16xf32>
    %459 = vector.extract_strided_slice %440 {offsets = [0, 3], sizes = [16, 1], strides = [1, 1]} : vector<16x4xf32> to vector<16x1xf32>
    %cst_353 = arith.constant dense<0.000000e+00> : vector<32x1xf32>
    %460 = tpu.matmul %458, %459, %cst_353 {dimension_numbers = #tpu.dot_dimension_numbers<[1], [0], [0], [1], [0, 0, 1, 1], [], []>} : vector<32x16xf32>, vector<16x1xf32>, vector<32x1xf32> -> vector<32x1xf32>
    %461 = arith.addf %456, %460 : vector<32x1xf32>
    %c0_354 = arith.constant 0 : index
    %c0_355 = arith.constant 0 : index
    %462 = vector.load %arg21[%c0_354, %c0_355] : memref<32x1xf32, #tpu.memory_space<vmem>>, vector<32x1xf32>
    %463 = arith.addf %461, %462 : vector<32x1xf32>
    %cst_356 = arith.constant 0.000000e+00 : f32
    %464 = vector.broadcast %cst_356 : f32 to vector<32x1xf32>
    %465 = arith.maximumf %463, %464 : vector<32x1xf32>
    %c0_357 = arith.constant 0 : index
    %c0_358 = arith.constant 0 : index
    %466 = vector.load %arg22[%c0_357, %c0_358] : memref<10x32xf32, #tpu.memory_space<vmem>>, vector<10x32xf32>
    %cst_359 = arith.constant dense<0.000000e+00> : vector<10x1xf32>
    %467 = tpu.matmul %466, %465, %cst_359 {dimension_numbers = #tpu.dot_dimension_numbers<[1], [0], [0], [1], [0, 0, 1, 1], [], []>} : vector<10x32xf32>, vector<32x1xf32>, vector<10x1xf32> -> vector<10x1xf32>
    %c0_360 = arith.constant 0 : index
    %c0_361 = arith.constant 0 : index
    %468 = vector.load %arg23[%c0_360, %c0_361] : memref<10x1xf32, #tpu.memory_space<vmem>>, vector<10x1xf32>
    %469 = arith.addf %467, %468 : vector<10x1xf32>
    %c0_362 = arith.constant 0 : index
    %c0_363 = arith.constant 0 : index
    %c0_364 = arith.constant 0 : index
    %470 = vector.load %arg24[%c0_362, %c0_363, %c0_364] : memref<1x10x1xf32, #tpu.memory_space<vmem>>, vector<1x10x1xf32>
    %471 = vector.shape_cast %470 : vector<1x10x1xf32> to vector<10x1xf32>
    %472 = vector.shape_cast %469 : vector<10x1xf32> to vector<1x10x1xf32>
    tpu.vector_store %arg24[%c0_362, %c0_363, %c0_364], %472 {strides = array<i32>} : memref<1x10x1xf32, #tpu.memory_space<vmem>>, vector<1x10x1xf32>,
    return
  }
  func.func @transform_0(%arg0: i32) -> (i32, i32, i32) {
    %c0_i32 = arith.constant 0 : i32
    %c0_i32_0 = arith.constant 0 : i32
    %c0_i32_1 = arith.constant 0 : i32
    return %arg0, %c0_i32, %c0_i32_0 : i32, i32, i32
  }
  func.func @transform_1(%arg0: i32) -> (i32, i32, i32) {
    %c0_i32 = arith.constant 0 : i32
    %c0_i32_0 = arith.constant 0 : i32
    %c0_i32_1 = arith.constant 0 : i32
    %c0_i32_2 = arith.constant 0 : i32
    return %c0_i32, %c0_i32_0, %c0_i32_1 : i32, i32, i32
  }
  func.func @transform_2(%arg0: i32) -> (i32, i32) {
    %c0_i32 = arith.constant 0 : i32
    %c0_i32_0 = arith.constant 0 : i32
    %c0_i32_1 = arith.constant 0 : i32
    return %c0_i32, %c0_i32_0 : i32, i32
  }
  func.func @transform_3(%arg0: i32) -> (i32, i32, i32) {
    %c0_i32 = arith.constant 0 : i32
    %c0_i32_0 = arith.constant 0 : i32
    %c0_i32_1 = arith.constant 0 : i32
    %c0_i32_2 = arith.constant 0 : i32
    return %c0_i32, %c0_i32_0, %c0_i32_1 : i32, i32, i32
  }
  func.func @transform_4(%arg0: i32) -> (i32, i32) {
    %c0_i32 = arith.constant 0 : i32
    %c0_i32_0 = arith.constant 0 : i32
    %c0_i32_1 = arith.constant 0 : i32
    return %c0_i32, %c0_i32_0 : i32, i32
  }
  func.func @transform_5(%arg0: i32) -> (i32, i32, i32) {
    %c0_i32 = arith.constant 0 : i32
    %c0_i32_0 = arith.constant 0 : i32
    %c0_i32_1 = arith.constant 0 : i32
    %c0_i32_2 = arith.constant 0 : i32
    return %c0_i32, %c0_i32_0, %c0_i32_1 : i32, i32, i32
  }
  func.func @transform_6(%arg0: i32) -> (i32, i32) {
    %c0_i32 = arith.constant 0 : i32
    %c0_i32_0 = arith.constant 0 : i32
    %c0_i32_1 = arith.constant 0 : i32
    return %c0_i32, %c0_i32_0 : i32, i32
  }
  func.func @transform_7(%arg0: i32) -> (i32, i32, i32) {
    %c0_i32 = arith.constant 0 : i32
    %c0_i32_0 = arith.constant 0 : i32
    %c0_i32_1 = arith.constant 0 : i32
    %c0_i32_2 = arith.constant 0 : i32
    return %c0_i32, %c0_i32_0, %c0_i32_1 : i32, i32, i32
  }
  func.func @transform_8(%arg0: i32) -> (i32, i32) {
    %c0_i32 = arith.constant 0 : i32
    %c0_i32_0 = arith.constant 0 : i32
    %c0_i32_1 = arith.constant 0 : i32
    return %c0_i32, %c0_i32_0 : i32, i32
  }
  func.func @transform_9(%arg0: i32) -> (i32, i32, i32) {
    %c0_i32 = arith.constant 0 : i32
    %c0_i32_0 = arith.constant 0 : i32
    %c0_i32_1 = arith.constant 0 : i32
    %c0_i32_2 = arith.constant 0 : i32
    return %c0_i32, %c0_i32_0, %c0_i32_1 : i32, i32, i32
  }
  func.func @transform_10(%arg0: i32) -> (i32, i32) {
    %c0_i32 = arith.constant 0 : i32
    %c0_i32_0 = arith.constant 0 : i32
    %c0_i32_1 = arith.constant 0 : i32
    return %c0_i32, %c0_i32_0 : i32, i32
  }
  func.func @transform_11(%arg0: i32) -> (i32, i32) {
    %c0_i32 = arith.constant 0 : i32
    %c0_i32_0 = arith.constant 0 : i32
    %c0_i32_1 = arith.constant 0 : i32
    return %c0_i32, %c0_i32_0 : i32, i32
  }
  func.func @transform_12(%arg0: i32) -> (i32, i32) {
    %c0_i32 = arith.constant 0 : i32
    %c0_i32_0 = arith.constant 0 : i32
    %c0_i32_1 = arith.constant 0 : i32
    return %c0_i32, %c0_i32_0 : i32, i32
  }
  func.func @transform_13(%arg0: i32) -> (i32, i32) {
    %c0_i32 = arith.constant 0 : i32
    %c0_i32_0 = arith.constant 0 : i32
    %c0_i32_1 = arith.constant 0 : i32
    return %c0_i32, %c0_i32_0 : i32, i32
  }
  func.func @transform_14(%arg0: i32) -> (i32, i32) {
    %c0_i32 = arith.constant 0 : i32
    %c0_i32_0 = arith.constant 0 : i32
    %c0_i32_1 = arith.constant 0 : i32
    return %c0_i32, %c0_i32_0 : i32, i32
  }
  func.func @transform_15(%arg0: i32) -> (i32, i32) {
    %c0_i32 = arith.constant 0 : i32
    %c0_i32_0 = arith.constant 0 : i32
    %c0_i32_1 = arith.constant 0 : i32
    return %c0_i32, %c0_i32_0 : i32, i32
  }
  func.func @transform_16(%arg0: i32) -> (i32, i32, i32) {
    %c0_i32 = arith.constant 0 : i32
    %c0_i32_0 = arith.constant 0 : i32
    %c0_i32_1 = arith.constant 0 : i32
    %c0_i32_2 = arith.constant 0 : i32
    return %c0_i32, %c0_i32_0, %c0_i32_1 : i32, i32, i32
  }
  func.func @transform_17(%arg0: i32) -> (i32, i32, i32) {
    %c0_i32 = arith.constant 0 : i32
    %c0_i32_0 = arith.constant 0 : i32
    %c0_i32_1 = arith.constant 0 : i32
    %c0_i32_2 = arith.constant 0 : i32
    return %c0_i32, %c0_i32_0, %c0_i32_1 : i32, i32, i32
  }
  func.func @transform_18(%arg0: i32) -> (i32, i32, i32) {
    %c0_i32 = arith.constant 0 : i32
    %c0_i32_0 = arith.constant 0 : i32
    %c0_i32_1 = arith.constant 0 : i32
    %c0_i32_2 = arith.constant 0 : i32
    return %c0_i32, %c0_i32_0, %c0_i32_1 : i32, i32, i32
  }
  func.func @transform_19(%arg0: i32) -> (i32, i32, i32) {
    %c0_i32 = arith.constant 0 : i32
    %c0_i32_0 = arith.constant 0 : i32
    %c0_i32_1 = arith.constant 0 : i32
    %c0_i32_2 = arith.constant 0 : i32
    return %c0_i32, %c0_i32_0, %c0_i32_1 : i32, i32, i32
  }
  func.func @transform_20(%arg0: i32) -> (i32, i32) {
    %c0_i32 = arith.constant 0 : i32
    %c0_i32_0 = arith.constant 0 : i32
    %c0_i32_1 = arith.constant 0 : i32
    return %c0_i32, %c0_i32_0 : i32, i32
  }
  func.func @transform_21(%arg0: i32) -> (i32, i32) {
    %c0_i32 = arith.constant 0 : i32
    %c0_i32_0 = arith.constant 0 : i32
    %c0_i32_1 = arith.constant 0 : i32
    return %c0_i32, %c0_i32_0 : i32, i32
  }
  func.func @transform_22(%arg0: i32) -> (i32, i32) {
    %c0_i32 = arith.constant 0 : i32
    %c0_i32_0 = arith.constant 0 : i32
    %c0_i32_1 = arith.constant 0 : i32
    return %c0_i32, %c0_i32_0 : i32, i32
  }
  func.func @transform_23(%arg0: i32) -> (i32, i32, i32) {
    %c0_i32 = arith.constant 0 : i32
    %c0_i32_0 = arith.constant 0 : i32
    %c0_i32_1 = arith.constant 0 : i32
    return %arg0, %c0_i32, %c0_i32_0 : i32, i32, i32
  }
}

</mosaic_0001>

<bundles_post_ra>
// kernel: fused_forward.1
= control target key start
LH: loop header
LB: loop body
LE: loop exit
PB: predicated region body
PF: predicated region fallthrough
CT: control target
= control target key end

     0   :  { %s9482_s0 = inlined_call_operand.vmem [shape: f32[2,4,290], index: 0, kind: input, shape index: {}]   ;;  %s9483_s1 = inlined_call_operand.vmem [shape: f32[9,8,4], index: 1, kind: input, shape index: {}]   ;;  %s9484_s2 = inlined_call_operand.vmem [shape: f32[8,1], index: 2, kind: input, shape index: {}]   ;;  %s9485_s3 = inlined_call_operand.vmem [shape: f32[9,8,8], index: 3, kind: input, shape index: {}]   ;;  %s9486_s4 = inlined_call_operand.vmem [shape: f32[8,1], index: 4, kind: input, shape index: {}]   ;;  %s9487_s5 = inlined_call_operand.vmem [shape: f32[9,8,8], index: 5, kind: input, shape index: {}]   ;;  %s9488_s6 = inlined_call_operand.vmem [shape: f32[8,1], index: 6, kind: input, shape index: {}]   ;;  %s9489_s7 = inlined_call_operand.vmem [shape: f32[9,16,8], index: 7, kind: input, shape index: {}]   ;;  %s9490_s8 = inlined_call_operand.vmem [shape: f32[16,1], index: 8, kind: input, shape index: {}]   ;;  %s9491_s9 = inlined_call_operand.vmem [shape: f32[9,16,16], index: 9, kind: input, shape index: {}]   ;;  %s9492_s10 = inlined_call_operand.vmem [shape: f32[16,1], index: 10, kind: input, shape index: {}]   ;;  %s9493_s11 = inlined_call_operand.vmem [shape: f32[9,256], index: 11, kind: input, shape index: {}]   ;;  %s9494_s12 = inlined_call_operand.vmem [shape: f32[9,64], index: 12, kind: input, shape index: {}]   ;;  %s9495_s13 = inlined_call_operand.vmem [shape: f32[9,16], index: 13, kind: input, shape index: {}]   ;;  %s9496_s14 = inlined_call_operand.vmem [shape: f32[64,82], index: 14, kind: input, shape index: {}]   ;;  %s9497_s15 = inlined_call_operand.vmem [shape: f32[16,26], index: 15, kind: input, shape index: {}]   ;;  %s9498_s16 = inlined_call_operand.vmem [shape: f32[4,256,82], index: 16, kind: input, shape index: {}]   ;;  %s9499_s17 = inlined_call_operand.vmem [shape: f32[4,64,26], index: 17, kind: input, shape index: {}]   ;;  %s9500_s18 = inlined_call_operand.vmem [shape: f32[4,16,4], index: 18, kind: input, shape index: {}]   ;;  %s9501_s19 = inlined_call_operand.vmem [shape: f32[4,32,16], index: 19, kind: input, shape index: {}]   ;;  %s9502_s20 = inlined_call_operand.vmem [shape: f32[32,1], index: 20, kind: input, shape index: {}]   ;;  %s9503_s21 = inlined_call_operand.vmem [shape: f32[10,32], index: 21, kind: input, shape index: {}]   ;;  %s9504_s22 = inlined_call_operand.vmem [shape: f32[10,1], index: 22, kind: input, shape index: {}]   ;;  %s9505_s23 = inlined_call_operand.vmem [shape: f32[2,10,1], index: 23, kind: output, shape index: {}]  }
   0x1   :  { %9537 = sst [smem:[#allocation2_spill]] %s9482_s0 }
   0x2   :  { %9538 = sst [smem:[#allocation3_spill]] %s9483_s1 }
   0x3   :  { %9539 = sst [smem:[#allocation4_spill]] %s9484_s2 }
   0x4   :  { %9540 = sst [smem:[#allocation5_spill]] %s9485_s3 }
   0x5   :  { %9541 = sst [smem:[#allocation6_spill]] %s9486_s4  ;;  %s8119_s4 = smov 0  }
   0x6   :  { %9542 = sst [smem:[#allocation7_spill]] %s9487_s5 }
   0x7   :  { %9543 = sst [smem:[#allocation8_spill]] %s9488_s6 }
   0x8   :  { %9544 = sst [smem:[#allocation9_spill]] %s9489_s7 }
   0x9   :  { %9545 = sst [smem:[#allocation10_spill]] %s9493_s11 }
   0xa   :  { %9546 = sst [smem:[#allocation11_spill]] %s9494_s12 }
   0xb   :  { %9547 = sst [smem:[#allocation12_spill]] %s9496_s14 }
   0xc   :  { %9548 = sst [smem:[#allocation13_spill]] %s9498_s16 }
   0xd LB: > { %s6858_s30 = sadd.s32 4294967295, %s7965_s4   ;;  %p6862_p0 = scmp.ge.s32.totalorder %s7965_s4, 1  ;;  %s7965_s4 = sphi %s8119_s4, %s33_s4  }
   0xe   : > { %p637_p1 = scmp.lt.s32.totalorder %s7965_s4, 3 }
  0x10   : > { %p638_p2 = pnand %p6862_p0, %p637_p1 }
  0x11   : > { %s9549_s11 = sld [smem:[#allocation10_spill]] (!%p638_p2)  ;;  %s9527_s0 = smov (!%p638_p2), 1  }
  0x12   : > { %641 = sbr.rel (%p638_p2) target bundleno = 3454 (0xd7e), region = 112  ;;  %s9511_s24 = smov (!%p638_p2), 16  }
  0x13   : > { %s9526_s2 = smov (!%p638_p2), 2   ;;  %s9522_s6 = smov (!%p638_p2), 17  }
  0x14   : > { %s9510_s27 = smov (!%p638_p2), 18   ;;  %s7972_s7 = smov (!%p638_p2), 32  }
  0x15   : > { %s7973_s28 = smov (!%p638_p2), 33   ;;  %s7974_s29 = smov (!%p638_p2), 34  }
  0x16   : > { %p701_p3 = scmp.lt.s32.totalorder (!%p638_p2), %s6858_s30, 1  ;;  %s9550_s1 = sld [smem:[#allocation2_spill]] (!%p638_p2) }
  0x17   : > { %v715_v0 = vlaneseq  ;;  %v6866_v2 = vld [vmem:[%s9549_s11 + $0x1] ss:$8 sm:$0x3]  ;;  %v6879_v3 = vld [vmem:[%s9549_s11 + $0x3] ss:$8 sm:$0x3] }
  0x18   : > { %v6874_v4 = vld [vmem:[%s9549_s11 + $0x2] ss:$8 sm:$0x3]  ;;  %v6884_v7 = vld [vmem:[%s9549_s11 + $0x4] ss:$8 sm:$0x3] }
  0x19   : > { %v716_v1 = vshrl.u32 %v715_v0, 7  ;;  %v6889_v12 = vld [vmem:[%s9549_s11 + $0x5] ss:$8 sm:$0x3]  ;;  %s9578_s30 = smov (!%p701_p3, %s6858_s30), 1  ;;  %vm742_vm0 = vcmask 7168  }
  0x1a   : > { %v6894_v17 = vld [vmem:[%s9549_s11 + $0x6] ss:$8 sm:$0x3]  ;;  %v6899_v26 = vld [vmem:[%s9549_s11 + $0x7] ss:$8 sm:$0x3] }
  0x1b   : > { %v8136_v5 = vsub.s32 0, %v716_v1  ;;  %v8138_v6 = vsub.s32 1, %v716_v1  ;;  %v6904_v27 = vld [vmem:[%s9549_s11 + $0x10] ss:$8 sm:$0x3]  ;;  %s7916_s3 = smul.u32 12, %s9578_s30 }
  0x1c   : > { %vm937_vm1 = vcmask 15360   ;;  %s9514_s25 = smov 110   ;;  %v713_v61 = vld [vmem:[%s9549_s11] ss:$8 sm:$0x3]  ;;  %vm1052_vm2 = vcmask 130048  }
  0x1d   : > { %v733_v8 = vrot.slane %v6866_v2, %v8136_v5  ;;  %v737_v9 = vrot.slane %v6866_v2, %v8138_v6  ;;  %v1043_v10 = vrot.slane %v6879_v3, %v8136_v5  ;;  %v1047_v11 = vrot.slane %v6879_v3, %v8138_v6  ;;  %s8186_s26 = scalar_lea.vmem %s9550_s1, %s7916_s3  ;;  %s9512_s3 = smov 111  }
  0x1e   : > { %v928_v13 = vrot.slane %v6874_v4, %v8136_v5  ;;  %v932_v14 = vrot.slane %v6874_v4, %v8138_v6  ;;  %v1158_v15 = vrot.slane %v6884_v7, %v8136_v5  ;;  %v1162_v16 = vrot.slane %v6884_v7, %v8138_v6  ;;  %v8189_v38 = vld [vmem:[%s8186_s26 + $0x8] sm:$0xf]  ;;  %v711_v59 = vld [vmem:[%s8186_s26] sm:$0xff]  ;;  %s9551_s1 = sld [smem:[#allocation3_spill]]  ;;  %s7984_s26 = smov 94  }
  0x1f   : > { %v738_v18 = vcombine.low %v733_v8, %v737_v9  ;;  %v1048_v19 = vcombine.low %v1043_v10, %v1047_v11  ;;  %v1273_v21 = vrot.slane %v6889_v12, %v8136_v5  ;;  %v1277_v22 = vrot.slane %v6889_v12, %v8138_v6  ;;  %s9553_s16 = sld [smem:[#allocation13_spill]]  ;;  %s9530_s5 = smov 119  }
  0x20   : > { %v933_v20 = vcombine.low %v928_v13, %v932_v14  ;;  %v1163_v23 = vcombine.low %v1158_v15, %v1162_v16  ;;  %v1388_v24 = vrot.slane %v6894_v17, %v8136_v5  ;;  %v1392_v25 = vrot.slane %v6894_v17, %v8138_v6  ;;  %s9554_s12 = sld [smem:[#allocation11_spill]] }
  0x21   : > { %739 = vrot.lane.b32.xlu0 %v738_v18, %s9527_s0  ;;  %1049 = vrot.lane.b32.xlu1 %v1048_v19, %s9511_s24  ;;  %v1278_v28 = vcombine.low %v1273_v21, %v1277_v22  ;;  %v1503_v29 = vrot.slane %v6899_v26, %v8136_v5  ;;  %v1507_v30 = vrot.slane %v6899_v26, %v8138_v6  ;;  %vm1167_vm3 = vcmask 138240   ;;  %s7981_s24 = smov 95   ;;  %s9565_s14 = sld [smem:[#allocation12_spill]] }
  0x22   : > { %v1393_v31 = vcombine.low %v1388_v24, %v1392_v25  ;;  %v1618_v32 = vrot.slane %v6904_v27, %v8136_v5  ;;  %v1622_v33 = vrot.slane %v6904_v27, %v8138_v6  ;;  %v718_v62 = vrot.slane %v713_v61, %v8136_v5  ;;  %s9570_s11 = sld [smem:[#allocation7_spill]] }
  0x23   : > { %v1508_v34 = vcombine.low %v1503_v29, %v1507_v30  ;;  %v722_v63 = vrot.slane %v713_v61, %v8138_v6  ;;  %vm1282_vm4 = vcmask 146432   ;;  %vm1397_vm5 = vcmask 261120  }
  0x24   : > { %v1623_v35 = vcombine.low %v1618_v32, %v1622_v33  ;;  %vm766_vm6 = vcmask 1043456   ;;  %vm1512_vm7 = vcmask 269312   ;;  %v7982_v6 = vmov 0.0   ;;  %v726_v12 = vld [vmem:[%s9551_s1] sm:$0xff] }
  0x25   : > { %934 = vrot.lane.b32.xlu0 %v933_v20, %s9526_s2  ;;  %1164 = vrot.lane.b32.xlu1 %v1163_v23, %s9522_s6  ;;  %v723_v2 = vcombine.low %v718_v62, %v722_v63  ;;  %vm762_vm8 = vcmask 31744   ;;  %vm1627_vm9 = vcmask 277504   ;;  %vm759_vm10 = vcmask 1039360   ;;  %s9558_s6 = sld [smem:[#allocation5_spill]] }
  0x26   : > { %835 = vmatprep.mubr.f32.mxu0 %v7982_v6  ;;  %915 = vmatprep.mubr.f32.mxu1 %v7982_v6  ;;  %vm954_vm11 = vcmask 1031168   ;;  %vm1184_vm12 = vcmask 908288   ;;  %vm1069_vm13 = vcmask 916480   ;;  %vm1414_vm14 = vcmask 785408  }
  0x27   : > { %v725_v7 = vmul.f32 %v723_v2, %v711_v59  ;;  %vm1299_vm15 = vcmask 900096  }
  0x29   : > { %1279 = vrot.lane.b32.xlu0 %v1278_v28, %s9510_s27  ;;  %1394 = vrot.lane.b32.xlu1 %v1393_v31, %s7972_s7  ;;  %s9518_s7 = smov 127   ;;  %s7980_s27 = smov 96   ;;  %v843_v10 = vcombine.high %v725_v7, %v725_v7  ;;  %v7983_v28 = vmov 0  }
  0x2a   : > { %7957 = vset.pattern.permute.xlu0 %v7983_v28  ;;  %7958 = vset.pattern.permute.xlu1 %v7983_v28  ;;  %v1765_v28 = vld [vmem:[%s9553_s16 + $0xe0] sm:$0xff] }
  0x2b   : > { %6871 = vmatprep.subr.msk.mxu1 %vm766_vm6, %v843_v10 }
  0x2c   : > { %6872 = vmatpush1.msk.msra.mxu1 %vm766_vm6, %v725_v7 }
  0x2d   : > { %1509 = vrot.lane.b32.xlu0 %v1508_v34, %s7973_s28  ;;  %1624 = vrot.lane.b32.xlu1 %v1623_v35, %s7974_s29  ;;  %s9520_s28 = smov 126   ;;  %s9516_s29 = smov 112  }
  0x2e   : > { %6873 = vmatmul.mubr.msk.f32.vlgmr.msra.gmra.mxu1 %vm762_vm8, %v726_v12  ;;  %v1768_v12 = vld [vmem:[%s9553_s16 + $0xf8] sm:$0xff] }
  0x2f   : > { %1143 = vmatprep.mubr.f32.mxu1 %v7982_v6 }
  0x93   : > { %v740_v36 = vpop.permute.xlu0 %739  ;;  %v1050_v37 = vpop.permute.xlu1 %1049 }
  0x94   : > { %v741_v39 = vrot.slane %v740_v36, 4  ;;  %v1051_v40 = vrot.slane %v1050_v37, 4 }
  0x96   : > { %v747_v41 = vmul.f32 %v741_v39, %v8189_v38  ;;  %v1057_v45 = vmul.f32 %v1051_v40, %v8189_v38  ;;  %v743_v58 = vsel %vm742_vm0, %v741_v39, %v740_v36  ;;  %v1053_v3 = vsel %vm1052_vm2, %v1051_v40, %v1050_v37 }
  0x97   : > { %v935_v42 = vpop.permute.xlu0 %934  ;;  %v1165_v43 = vpop.permute.xlu1 %1164  ;;  %v746_v1 = vmul.f32 %v743_v58, %v711_v59  ;;  %v1056_v9 = vmul.f32 %v1053_v3, %v711_v59  ;;  %v6885_v3 = vld [vmem:[%s9551_s1 + $0x20] sm:$0xff] }
  0x98   : > { %v936_v44 = vrot.slane %v935_v42, 4  ;;  %757 = vrot.lane.b32.xlu1 %v747_v41, %s9518_s7  ;;  %v1166_v47 = vrot.slane %v1165_v43, 4 }
  0x99   : > { %v752_v22 = vcombine.high %v746_v1, %v746_v1  ;;  %v1062_v25 = vcombine.high %v1056_v9, %v1056_v9 }
  0x9a   : > { %v942_v46 = vmul.f32 %v936_v44, %v8189_v38  ;;  %v1172_v51 = vmul.f32 %v1166_v47, %v8189_v38  ;;  %v938_v60 = vsel %vm937_vm1, %v936_v44, %v935_v42  ;;  %v1168_v4 = vsel %vm1167_vm3, %v1166_v47, %v1165_v43 }
  0x9b   : > { %v1280_v48 = vpop.permute.xlu0 %1279  ;;  %v1395_v49 = vpop.permute.xlu1 %1394  ;;  %v941_v0 = vmul.f32 %v938_v60, %v711_v59  ;;  %v1171_v8 = vmul.f32 %v1168_v4, %v711_v59  ;;  %v6880_v60 = vld [vmem:[%s9551_s1 + $0x18] sm:$0xff]  ;;  %v6890_v4 = vld [vmem:[%s9551_s1 + $0x28] sm:$0xff]  ;;  %vm1529_vm1 = vcmask 777216   ;;  %vm1644_vm3 = vcmask 769024  }
  0x9c   : > { %v1281_v50 = vrot.slane %v1280_v48, 4  ;;  %952 = vrot.lane.b32.xlu0 %v942_v46, %s9520_s28  ;;  %1067 = vrot.lane.b32.xlu1 %v1057_v45, %s9516_s29  ;;  %v1396_v53 = vrot.slane %v1395_v49, 4 }
  0x9d   : > { %v947_v19 = vcombine.high %v941_v0, %v941_v0  ;;  %v1177_v21 = vcombine.high %v1171_v8, %v1171_v8 }
  0x9e   : > { %v1287_v52 = vmul.f32 %v1281_v50, %v8189_v38  ;;  %v1402_v55 = vmul.f32 %v1396_v53, %v8189_v38  ;;  %v1283_v11 = vsel %vm1282_vm4, %v1281_v50, %v1280_v48  ;;  %v1398_v5 = vsel %vm1397_vm5, %v1396_v53, %v1395_v49 }
  0x9f   : > { %v1510_v54 = vpop.permute.xlu0 %1509  ;;  %v1286_v13 = vmul.f32 %v1283_v11, %v711_v59  ;;  %v1401_v14 = vmul.f32 %v1398_v5, %v711_v59  ;;  %v1625_v15 = vpop.permute.xlu1 %1624  ;;  %v6895_v11 = vld [vmem:[%s9551_s1 + $0x30] sm:$0xff]  ;;  %v6900_v5 = vld [vmem:[%s9551_s1 + $0x38] sm:$0xff]  ;;  %vm7988_vm4 = vmmov 0  }
  0xa0   : > { %v1511_v56 = vrot.slane %v1510_v54, 4  ;;  %1182 = vrot.lane.b32.xlu0 %v1172_v51, %s9512_s3  ;;  %1297 = vrot.lane.b32.xlu1 %v1287_v52, %s9514_s25  ;;  %v1626_v17 = vrot.slane %v1625_v15, 4  ;;  %v6867_v51 = vld [vmem:[%s9551_s1 + $0x8] sm:$0xff] }
  0xa1   : > { %v1407_v24 = vcombine.high %v1401_v14, %v1401_v14  ;;  %v1292_v27 = vcombine.high %v1286_v13, %v1286_v13 }
  0xa2   : > { %v1517_v57 = vmul.f32 %v1511_v56, %v8189_v38  ;;  %v1513_v16 = vsel %vm1512_vm7, %v1511_v56, %v1510_v54  ;;  %v1628_v20 = vsel %vm1627_vm9, %v1626_v17, %v1625_v15  ;;  %v1632_v30 = vmul.f32 %v1626_v17, %v8189_v38 }
  0xa3   : > { %v1516_v18 = vmul.f32 %v1513_v16, %v711_v59  ;;  %v1631_v23 = vmul.f32 %v1628_v20, %v711_v59  ;;  %v6875_v59 = vld [vmem:[%s9551_s1 + $0x10] sm:$0xff]  ;;  %vm2967_vm7 = vcmask 523264  }
  0xa4   : > { %1412 = vrot.lane.b32.xlu0 %v1402_v55, %s7980_s27  ;;  %1527 = vrot.lane.b32.xlu1 %v1517_v57, %s7981_s24  ;;  %v1767_v16 = vld [vmem:[%s9553_s16 + $0xf0] sm:$0xff] }
  0xa5   : > { %v1637_v26 = vcombine.high %v1631_v23, %v1631_v23  ;;  %v1522_v29 = vcombine.high %v1516_v18, %v1516_v18 }
  0xa8   : > { %948 = vrot.lane.b32.xlu1 %v941_v0, %s9520_s28  ;;  %753 = vrot.lane.b32.xlu0 %v746_v1, %s9518_s7 }
  0xac   : > { %1178 = vrot.lane.b32.xlu1 %v1171_v8, %s9512_s3  ;;  %1063 = vrot.lane.b32.xlu0 %v1056_v9, %s9516_s29 }
  0xb0   : > { %1408 = vrot.lane.b32.xlu1 %v1401_v14, %s7980_s27  ;;  %1293 = vrot.lane.b32.xlu0 %v1286_v13, %s9514_s25  ;;  %v1752_v14 = vld [vmem:[%s9553_s16 + $0x78] sm:$0xff] }
  0xb4   : > { %950 = vrot.lane.b32.xlu1 %v947_v19, %s9520_s28  ;;  %1523 = vrot.lane.b32.xlu0 %v1516_v18, %s7981_s24  ;;  %v6905_v18 = vld [vmem:[%s9551_s1 + $0x40] sm:$0xff]  ;;  %v6940_v19 = vld [vmem:[%s9553_s16 + $0x1f8] sm:$0xff]  ;;  %s9523_s28 = smov 8  }
  0xb8   : > { %1180 = vrot.lane.b32.xlu1 %v1177_v21, %s9512_s3  ;;  %755 = vrot.lane.b32.xlu0 %v752_v22, %s9518_s7  ;;  %s9552_s3 = sld [smem:[#allocation4_spill]]  ;;  %v6924_v21 = vld [vmem:[%s9553_s16 + $0x178] sm:$0xff]  ;;  %v1751_v22 = vld [vmem:[%s9553_s16 + $0x70] sm:$0xff]  ;;  %s9528_s7 = smov 120  }
  0xbc   : > { %1410 = vrot.lane.b32.xlu1 %v1407_v24, %s7980_s27  ;;  %1065 = vrot.lane.b32.xlu0 %v1062_v25, %s9516_s29  ;;  %v1766_v24 = vld [vmem:[%s9553_s16 + $0xe8] sm:$0xff]  ;;  %v6923_v25 = vld [vmem:[%s9553_s16 + $0x170] sm:$0xff]  ;;  %s9525_s29 = smov 9   ;;  %s9561_s27 = smov 112  }
  0xbe   : > { %v1727_v31 = vld [vmem:[%s9552_s3] sm:$0xff]  ;;  %s9556_s3 = smov 16  }
  0xc0   : > { %1640 = vrot.lane.b32.xlu1 %v1637_v26, %s7984_s26  ;;  %1295 = vrot.lane.b32.xlu0 %v1292_v27, %s9514_s25  ;;  %v1750_v26 = vld [vmem:[%s9553_s16 + $0x68] sm:$0xff]  ;;  %s9567_s25 = smov 120  }
  0xc1   : > { %v6938_v27 = vld [vmem:[%s9553_s16 + $0x1e8] sm:$0xff] }
  0xc4   : > { %1638 = vrot.lane.b32.xlu1 %v1631_v23, %s7984_s26  ;;  %1525 = vrot.lane.b32.xlu0 %v1522_v29, %s7981_s24  ;;  %v6939_v23 = vld [vmem:[%s9553_s16 + $0x1f0] sm:$0xff]  ;;  %v6922_v29 = vld [vmem:[%s9553_s16 + $0x168] sm:$0xff]  ;;  %s9555_s24 = smov 17  }
  0xc8   : > { %1642 = vrot.lane.b32.xlu0 %v1632_v30, %s7984_s26  ;;  %v6937_v30 = vld [vmem:[%s9553_s16 + $0x1e0] sm:$0xff]  ;;  %s9524_s26 = smov 10  }
  0xcc   : > { %1730 = vperm.xlu0 %7957, %v1727_v31   ;;  %v1749_v31 = vld [vmem:[%s9553_s16 + $0x60] sm:$0xff] }
 0x10a   : > { %v758_v32 = vpop.permute.xlu1 %757 }
 0x10e   : > { %v953_v33 = vpop.permute.xlu0 %952  ;;  %v1068_v34 = vpop.permute.xlu1 %1067 }
 0x112   : > { %v1183_v35 = vpop.permute.xlu0 %1182  ;;  %v1298_v36 = vpop.permute.xlu1 %1297 }
 0x116   : > { %v1413_v37 = vpop.permute.xlu0 %1412  ;;  %v1528_v39 = vpop.permute.xlu1 %1527 }
 0x11a   : > { %v949_v40 = vpop.permute.xlu1 %948  ;;  %v754_v41 = vpop.permute.xlu0 %753 }
 0x11e   : > { %v1179_v42 = vpop.permute.xlu1 %1178  ;;  %v1064_v43 = vpop.permute.xlu0 %1063 }
 0x122   : > { %v1409_v44 = vpop.permute.xlu1 %1408  ;;  %v1294_v45 = vpop.permute.xlu0 %1293 }
 0x126   : > { %v951_v38 = vpop.permute.xlu1 %950  ;;  %v1524_v46 = vpop.permute.xlu0 %1523 }
 0x127   : > { %v956_v52 = vsel %vm954_vm11, %v951_v38, %v953_v33  ;;  %v955_v53 = vsel %vm954_vm11, %v949_v40, %v951_v38  ;;  %v1764_v33 = vld [vmem:[%s9553_s16 + $0xd8] sm:$0xff]  ;;  %v1747_v40 = vld [vmem:[%s9553_s16 + $0x50] sm:$0xff]  ;;  %v1761_v38 = vld [vmem:[%s9553_s16 + $0xc0] sm:$0xff] }
 0x12a   : > { %v1181_v47 = vpop.permute.xlu1 %1180  ;;  %v756_v48 = vpop.permute.xlu0 %755 }
 0x12b   : > { %v761_v49 = vsel %vm759_vm10, %v756_v48, %v758_v32  ;;  %v760_v50 = vsel %vm759_vm10, %v754_v41, %v756_v48  ;;  %v1186_v56 = vsel %vm1184_vm12, %v1181_v47, %v1183_v35  ;;  %v1185_v61 = vsel %vm1184_vm12, %v1179_v42, %v1181_v47  ;;  %v6921_v32 = vld [vmem:[%s9553_s16 + $0x160] sm:$0xff]  ;;  %v1748_v35 = vld [vmem:[%s9553_s16 + $0x58] sm:$0xff]  ;;  %v6919_v41 = vld [vmem:[%s9553_s16 + $0x150] sm:$0xff] }
 0x12c   : > { %6868 = vmatprep.subr.msk.mxu0 %vm766_vm6, %v761_v49  ;;  %v1762_v42 = vld [vmem:[%s9553_s16 + $0xc8] sm:$0xff]  ;;  %v1745_v47 = vld [vmem:[%s9553_s16 + $0x40] sm:$0xff]  ;;  %v1760_v49 = vld [vmem:[%s9553_s16 + $0xb8] sm:$0xff] }
 0x12d   : > { %6869 = vmatpush1.msk.msra.mxu0 %vm766_vm6, %v760_v50  ;;  %v6917_v48 = vld [vmem:[%s9553_s16 + $0x140] sm:$0xff]  ;;  %v6932_v50 = vld [vmem:[%s9553_s16 + $0x1b8] sm:$0xff] }
 0x12e   : > { %v1411_v54 = vpop.permute.xlu1 %1410  ;;  %6870 = vmatmul.mubr.msk.f32.vlgmr.msra.gmra.mxu0 %vm762_vm8, %v6867_v51  ;;  %6876 = vmatprep.subr.msk.mxu0 %vm766_vm6, %v956_v52  ;;  %v1066_v55 = vpop.permute.xlu0 %1065  ;;  %v1744_v51 = vld [vmem:[%s9553_s16 + $0x38] sm:$0xff] }
 0x12f   : > { %v1070_v57 = vsel %vm1069_vm13, %v1064_v43, %v1066_v55  ;;  %v1071_v58 = vsel %vm1069_vm13, %v1066_v55, %v1068_v34  ;;  %6877 = vmatpush1.msk.msra.mxu0 %vm766_vm6, %v955_v53  ;;  %1028 = vmatprep.mubr.f32.mxu0 %v7982_v6  ;;  %v1416_v63 = vsel %vm1414_vm14, %v1411_v54, %v1413_v37  ;;  %v6936_v34 = vld [vmem:[%s9553_s16 + $0x1d8] sm:$0xff]  ;;  %v1763_v37 = vld [vmem:[%s9553_s16 + $0xd0] sm:$0xff]  ;;  %v6934_v43 = vld [vmem:[%s9553_s16 + $0x1c8] sm:$0xff] }
 0x130   : > { %6881 = vmatprep.subr.msk.mxu1 %vm766_vm6, %v1071_v58  ;;  %6886 = vmatprep.subr.msk.mxu0 %vm766_vm6, %v1186_v56  ;;  %v1415_v7 = vsel %vm1414_vm14, %v1409_v44, %v1411_v54  ;;  %v1746_v44 = vld [vmem:[%s9553_s16 + $0x48] sm:$0xff]  ;;  %v6916_v52 = vld [vmem:[%s9553_s16 + $0x138] sm:$0xff]  ;;  %v1759_v53 = vld [vmem:[%s9553_s16 + $0xb0] sm:$0xff] }
 0x131   : > { %6882 = vmatpush1.msk.msra.mxu1 %vm766_vm6, %v1070_v57  ;;  %v6931_v54 = vld [vmem:[%s9553_s16 + $0x1b0] sm:$0xff]  ;;  %v1758_v57 = vld [vmem:[%s9553_s16 + $0xa8] sm:$0xff] }
 0x132   : > { %6878 = vmatmul.mubr.msk.f32.vlgmr.msra.gmra.mxu0 %vm762_vm8, %v6875_v59  ;;  %v1296_v62 = vpop.permute.xlu0 %1295  ;;  %6883 = vmatmul.mubr.msk.f32.vlgmr.msra.gmra.mxu1 %vm762_vm8, %v6880_v60  ;;  %v1641_v0 = vpop.permute.xlu1 %1640  ;;  %v1743_v55 = vld [vmem:[%s9553_s16 + $0x30] sm:$0xff]  ;;  %v6930_v58 = vld [vmem:[%s9553_s16 + $0x1a8] sm:$0xff] }
 0x133   : > { %6887 = vmatpush1.msk.msra.mxu0 %vm766_vm6, %v1185_v61  ;;  %v1300_v1 = vsel %vm1299_vm15, %v1294_v45, %v1296_v62  ;;  %v1301_v2 = vsel %vm1299_vm15, %v1296_v62, %v1298_v36  ;;  %1258 = vmatprep.mubr.f32.mxu0 %v7982_v6  ;;  %v6920_v36 = vld [vmem:[%s9553_s16 + $0x158] sm:$0xff]  ;;  %v6918_v45 = vld [vmem:[%s9553_s16 + $0x148] sm:$0xff]  ;;  %v6915_v56 = vld [vmem:[%s9553_s16 + $0x130] sm:$0xff] }
 0x134   : > { %6896 = vmatprep.subr.msk.mxu0 %vm766_vm6, %v1416_v63  ;;  %6891 = vmatprep.subr.msk.mxu1 %vm766_vm6, %v1301_v2  ;;  %v1742_v59 = vld [vmem:[%s9553_s16 + $0x28] sm:$0xff]  ;;  %v1757_v61 = vld [vmem:[%s9553_s16 + $0xa0] sm:$0xff]  ;;  %v6928_v2 = vld [vmem:[%s9553_s16 + $0x198] sm:$0xff] }
 0x135   : > { %6892 = vmatpush1.msk.msra.mxu1 %vm766_vm6, %v1300_v1  ;;  %1373 = vmatprep.mubr.f32.mxu1 %v7982_v6  ;;  %v6914_v60 = vld [vmem:[%s9553_s16 + $0x128] sm:$0xff]  ;;  %v6929_v62 = vld [vmem:[%s9553_s16 + $0x1a0] sm:$0xff]  ;;  %v1756_v1 = vld [vmem:[%s9553_s16 + $0x98] sm:$0xff] }
 0x136   : > { %6888 = vmatmul.mubr.msk.f32.vlgmr.msra.gmra.mxu0 %vm762_vm8, %v6885_v3  ;;  %v1526_v8 = vpop.permute.xlu0 %1525  ;;  %6893 = vmatmul.mubr.msk.f32.vlgmr.msra.gmra.mxu1 %vm762_vm8, %v6890_v4  ;;  %v1639_v13 = vpop.permute.xlu1 %1638  ;;  %v1741_v63 = vld [vmem:[%s9553_s16 + $0x20] sm:$0xff]  ;;  %v6912_v3 = vld [vmem:[%s9553_s16 + $0x118] sm:$0xff] }
 0x137   : > { %6897 = vmatpush1.msk.msra.mxu0 %vm766_vm6, %v1415_v7  ;;  %v1530_v9 = vsel %vm1529_vm1, %v1524_v46, %v1526_v8  ;;  %v1531_v10 = vsel %vm1529_vm1, %v1526_v8, %v1528_v39  ;;  %1488 = vmatprep.mubr.f32.mxu0 %v7982_v6  ;;  %v1645_v20 = vsel %vm1644_vm3, %v1639_v13, %v1641_v0  ;;  %v6935_v39 = vld [vmem:[%s9553_s16 + $0x1d0] sm:$0xff]  ;;  %v6933_v46 = vld [vmem:[%s9553_s16 + $0x1c0] sm:$0xff]  ;;  %v1740_v4 = vld [vmem:[%s9553_s16 + $0x18] sm:$0xff] }
 0x138   : > { %6901 = vmatprep.subr.msk.mxu1 %vm766_vm6, %v1531_v10  ;;  %1603 = vmatprep.mubr.f32.mxu1 %v7982_v6  ;;  %v1755_v7 = vld [vmem:[%s9553_s16 + $0x90] sm:$0xff]  ;;  %v6910_v13 = vld [vmem:[%s9553_s16 + $0x108] sm:$0xff] }
 0x139   : > { %6902 = vmatpush1.msk.msra.mxu1 %vm766_vm6, %v1530_v9  ;;  %v6927_v8 = vld [vmem:[%s9553_s16 + $0x190] sm:$0xff] }
 0x13a   : > { %6898 = vmatmul.mubr.msk.f32.vlgmr.msra.gmra.mxu0 %vm762_vm8, %v6895_v11  ;;  %v1643_v15 = vpop.permute.xlu0 %1642  ;;  %6903 = vmatmul.mubr.msk.f32.vlgmr.msra.gmra.mxu1 %vm762_vm8, %v6900_v5  ;;  %v1739_v9 = vld [vmem:[%s9553_s16 + $0x10] sm:$0xff]  ;;  %v1754_v11 = vld [vmem:[%s9553_s16 + $0x88] sm:$0xff] }
 0x13b   : > { %v1646_v17 = vsel %vm1644_vm3, %v1641_v0, %v1643_v15  ;;  %1718 = vmatprep.mubr.f32.mxu0 %v7982_v6  ;;  %7203 = vmatprep.subr.mxu1 %v1768_v12  ;;  %v6913_v0 = vld [vmem:[%s9553_s16 + $0x120] sm:$0xff]  ;;  %v6911_v10 = vld [vmem:[%s9553_s16 + $0x110] sm:$0xff]  ;;  %v6926_v5 = vld [vmem:[%s9553_s16 + $0x188] sm:$0xff] }
 0x13c   : > { %6906 = vmatprep.subr.msk.mxu0 %vm766_vm6, %v1646_v17  ;;  %7204 = vmatpush3.msra.mxu1 %v1752_v14  ;;  %v1738_v12 = vld [vmem:[%s9553_s16 + $0x8] sm:$0xff]  ;;  %v1753_v14 = vld [vmem:[%s9553_s16 + $0x80] sm:$0xff] }
 0x13d   : > { %6907 = vmatpush1.msk.msra.mxu0 %vm766_vm6, %v1645_v20  ;;  %7205 = vmatprep.subr.mxu1 %v1767_v16  ;;  %v6925_v15 = vld [vmem:[%s9553_s16 + $0x180] sm:$0xff]  ;;  %vm2174_vm6 = vcmask 64512  }
 0x13e   : > { %6908 = vmatmul.mubr.msk.f32.vlgmr.msra.gmra.mxu0 %vm762_vm8, %v6905_v18  ;;  %7238 = vmatprep.subr.mxu0 %v6940_v19  ;;  %v1737_v16 = vld [vmem:[%s9553_s16] sm:$0xff]  ;;  %v6972_v18 = vld [vmem:[%s9553_s16 + $0x2f8] sm:$0xff] }
 0x13f   : > { %7239 = vmatpush3.msra.mxu0 %v6924_v21  ;;  %7206 = vmatpush3.msra.mxu1 %v1751_v22  ;;  %v6909_v17 = vld [vmem:[%s9553_s16 + $0x100] sm:$0xff]  ;;  %v7004_v19 = vld [vmem:[%s9553_s16 + $0x3f8] sm:$0xff] }
 0x140   : > { %7240 = vmatprep.subr.mxu0 %v6939_v23  ;;  %7207 = vmatprep.subr.mxu1 %v1766_v24  ;;  %v7006_v20 = vld [vmem:[%s9554_s12 + $0x1] ss:$0 sm:$0xff]  ;;  %v7013_v21 = vld [vmem:[%s9554_s12 + $0x3] ss:$0 sm:$0xff]  ;;  %v7010_v22 = vld [vmem:[%s9554_s12 + $0x2] ss:$0 sm:$0xff] }
 0x141   : > { %7241 = vmatpush3.msra.mxu0 %v6923_v25  ;;  %7208 = vmatpush3.msra.mxu1 %v1750_v26  ;;  %v7019_v23 = vld [vmem:[%s9554_s12 + $0x5] ss:$0 sm:$0xff]  ;;  %v7016_v24 = vld [vmem:[%s9554_s12 + $0x4] ss:$0 sm:$0xff]  ;;  %v7025_v25 = vld [vmem:[%s9554_s12 + $0x7] ss:$0 sm:$0xff] }
 0x142   : > { %7242 = vmatprep.subr.mxu0 %v6938_v27  ;;  %7209 = vmatprep.subr.mxu1 %v1765_v28  ;;  %v7022_v26 = vld [vmem:[%s9554_s12 + $0x6] ss:$0 sm:$0xff]  ;;  %v7028_v27 = vld [vmem:[%s9554_s12 + $0x8] ss:$0 sm:$0xff]  ;;  %v917_v28 = vpop.f32.mrf.mxu1 }
 0x143   : > { %7243 = vmatpush3.msra.mxu0 %v6922_v29  ;;  %7210 = vmatpush3.msra.mxu1 %v1749_v31 }
 0x144   : > { %7244 = vmatprep.subr.mxu0 %v6937_v30  ;;  %7211 = vmatprep.subr.mxu1 %v1764_v33  ;;  %v919_v30 = vpop.f32.mrf.mxu1 }
 0x145   : > { %7245 = vmatpush3.msra.mxu0 %v6921_v32  ;;  %7212 = vmatpush3.msra.mxu1 %v1748_v35 }
 0x146   : > { %7246 = vmatprep.subr.mxu0 %v6936_v34  ;;  %7213 = vmatprep.subr.mxu1 %v1763_v37 }
 0x147   : > { %7247 = vmatpush3.msra.mxu0 %v6920_v36  ;;  %7214 = vmatpush3.msra.mxu1 %v1747_v40 }
 0x148   : > { %7248 = vmatprep.subr.mxu0 %v6935_v39  ;;  %7215 = vmatprep.subr.mxu1 %v1762_v42 }
 0x149   : > { %7249 = vmatpush3.msra.mxu0 %v6919_v41  ;;  %7216 = vmatpush3.msra.mxu1 %v1746_v44 }
 0x14a   : > { %7250 = vmatprep.subr.mxu0 %v6934_v43  ;;  %7217 = vmatprep.subr.mxu1 %v1761_v38 }
 0x14b   : > { %7251 = vmatpush3.msra.mxu0 %v6918_v45  ;;  %7218 = vmatpush3.msra.mxu1 %v1745_v47 }
 0x14c   : > { %7252 = vmatprep.subr.mxu0 %v6933_v46  ;;  %7219 = vmatprep.subr.mxu1 %v1760_v49 }
 0x14d   : > { %7253 = vmatpush3.msra.mxu0 %v6917_v48  ;;  %7220 = vmatpush3.msra.mxu1 %v1744_v51 }
 0x14e   : > { %7254 = vmatprep.subr.mxu0 %v6932_v50  ;;  %7221 = vmatprep.subr.mxu1 %v1759_v53 }
 0x14f   : > { %7255 = vmatpush3.msra.mxu0 %v6916_v52  ;;  %7222 = vmatpush3.msra.mxu1 %v1743_v55 }
 0x150   : > { %7256 = vmatprep.subr.mxu0 %v6931_v54  ;;  %7223 = vmatprep.subr.mxu1 %v1758_v57 }
 0x151   : > { %7257 = vmatpush3.msra.mxu0 %v6915_v56  ;;  %7224 = vmatpush3.msra.mxu1 %v1742_v59 }
 0x152   : > { %7258 = vmatprep.subr.mxu0 %v6930_v58  ;;  %7225 = vmatprep.subr.mxu1 %v1757_v61 }
 0x153   : > { %7259 = vmatpush3.msra.mxu0 %v6914_v60  ;;  %7226 = vmatpush3.msra.mxu1 %v1741_v63  ;;  %v1731_v60 = vpop.permute.xlu0 %1730 }
 0x154   : > { %7260 = vmatprep.subr.mxu0 %v6929_v62  ;;  %7227 = vmatprep.subr.mxu1 %v1756_v1 }
 0x155   : > { %7261 = vmatpush3.msra.mxu0 %v6913_v0  ;;  %7228 = vmatpush3.msra.mxu1 %v1740_v4  ;;  %v6988_v4 = vld [vmem:[%s9553_s16 + $0x378] sm:$0xff] }
 0x156   : > { %7262 = vmatprep.subr.mxu0 %v6928_v2  ;;  %7229 = vmatprep.subr.mxu1 %v1755_v7  ;;  %v6971_v7 = vld [vmem:[%s9553_s16 + $0x2f0] sm:$0xff] }
 0x157   : > { %7263 = vmatpush3.msra.mxu0 %v6912_v3  ;;  %7230 = vmatpush3.msra.mxu1 %v1739_v9  ;;  %v6956_v3 = vld [vmem:[%s9553_s16 + $0x278] sm:$0xff]  ;;  %v6955_v9 = vld [vmem:[%s9553_s16 + $0x270] sm:$0xff] }
 0x158   : > { %7264 = vmatprep.subr.mxu0 %v6927_v8  ;;  %7231 = vmatprep.subr.mxu1 %v1754_v11  ;;  %v7003_v8 = vld [vmem:[%s9553_s16 + $0x3f0] sm:$0xff]  ;;  %v6970_v11 = vld [vmem:[%s9553_s16 + $0x2e8] sm:$0xff] }
 0x159   : > { %7265 = vmatpush3.msra.mxu0 %v6911_v10  ;;  %7232 = vmatpush3.msra.mxu1 %v1738_v12  ;;  %v6987_v10 = vld [vmem:[%s9553_s16 + $0x370] sm:$0xff]  ;;  %v6954_v12 = vld [vmem:[%s9553_s16 + $0x268] sm:$0xff] }
 0x15a   : > { %7266 = vmatprep.subr.mxu0 %v6926_v5  ;;  %7233 = vmatprep.subr.mxu1 %v1753_v14  ;;  %v7002_v5 = vld [vmem:[%s9553_s16 + $0x3e8] sm:$0xff]  ;;  %v6969_v14 = vld [vmem:[%s9553_s16 + $0x2e0] sm:$0xff] }
 0x15b   : > { %7267 = vmatpush3.msra.mxu0 %v6910_v13  ;;  %7234 = vmatpush3.msra.mxu1 %v1737_v16  ;;  %v6986_v13 = vld [vmem:[%s9553_s16 + $0x368] sm:$0xff]  ;;  %v6953_v16 = vld [vmem:[%s9553_s16 + $0x260] sm:$0xff] }
 0x15c   : > { %7268 = vmatprep.subr.mxu0 %v6925_v15  ;;  %7273 = vmatprep.subr.mxu1 %v6972_v18  ;;  %v7001_v15 = vld [vmem:[%s9553_s16 + $0x3e0] sm:$0xff]  ;;  %v6968_v18 = vld [vmem:[%s9553_s16 + $0x2d8] sm:$0xff] }
 0x15d   : > { %7269 = vmatpush3.msra.mxu0 %v6909_v17  ;;  %2164 = vrot.lane.b32.xlu1 %v7006_v20, %s9527_s0  ;;  %v6985_v17 = vld [vmem:[%s9553_s16 + $0x360] sm:$0xff]  ;;  %v6952_v20 = vld [vmem:[%s9553_s16 + $0x258] sm:$0xff]  ;;  %s9564_s0 = sld [smem:[#allocation6_spill]] }
 0x15e   : > { %7308 = vmatprep.subr.mxu0 %v7004_v19  ;;  %2417 = vrot.lane.b32.xlu0 %v7013_v21, %s9523_s28  ;;  %v7000_v19 = vld [vmem:[%s9553_s16 + $0x3d8] sm:$0xff]  ;;  %s9559_s28 = smov 126  }
 0x15f   : > { %v6984_v21 = vld [vmem:[%s9553_s16 + $0x358] sm:$0xff] }
 0x161   : > { %2327 = vrot.lane.b32.xlu1 %v7010_v22, %s9526_s2  ;;  %v6967_v22 = vld [vmem:[%s9553_s16 + $0x2d0] sm:$0xff] }
 0x162   : > { %2597 = vrot.lane.b32.xlu0 %v7019_v23, %s9524_s26  ;;  %s9557_s26 = smov 18   ;;  %v6999_v23 = vld [vmem:[%s9553_s16 + $0x3d0] sm:$0xff] }
 0x165   : > { %2507 = vrot.lane.b32.xlu1 %v7016_v24, %s9525_s29  ;;  %v6951_v24 = vld [vmem:[%s9553_s16 + $0x250] sm:$0xff]  ;;  %s9532_s29 = smov 118  }
 0x166   : > { %2777 = vrot.lane.b32.xlu0 %v7025_v25, %s9555_s24  ;;  %v6983_v25 = vld [vmem:[%s9553_s16 + $0x350] sm:$0xff]  ;;  %s9562_s24 = smov 110  }
 0x169   : > { %2687 = vrot.lane.b32.xlu1 %v7022_v26, %s9556_s3  ;;  %v6966_v26 = vld [vmem:[%s9553_s16 + $0x2c8] sm:$0xff]  ;;  %s9563_s3 = smov 111  }
 0x16d   : > { %2867 = vrot.lane.b32.xlu1 %v7028_v27, %s9557_s26  ;;  %v6998_v27 = vld [vmem:[%s9553_s16 + $0x3c8] sm:$0xff]  ;;  %s9560_s26 = smov 127  }
 0x1ee   : > { %v837_v29 = vpop.f32.mrf.mxu0 }
 0x1ef   : > { %v918_v32 = vadd.f32 %v917_v28, %v837_v29  ;;  %v6950_v28 = vld [vmem:[%s9553_s16 + $0x248] sm:$0xff] }
 0x1f0   : > { %v839_v31 = vpop.f32.mrf.mxu0  ;;  %v6982_v29 = vld [vmem:[%s9553_s16 + $0x348] sm:$0xff] }
 0x1f1   : > { %v920_v35 = vadd.f32 %v919_v30, %v839_v31  ;;  %v6965_v30 = vld [vmem:[%s9553_s16 + $0x2c0] sm:$0xff] }
 0x1f2   : > { %v1030_v33 = vpop.f32.mrf.mxu0  ;;  %v1145_v34 = vpop.f32.mrf.mxu1  ;;  %v6997_v31 = vld [vmem:[%s9553_s16 + $0x3c0] sm:$0xff] }
 0x1f3   : > { %v1035_v36 = vadd.f32 %v1030_v33, %v918_v32  ;;  %v6949_v32 = vld [vmem:[%s9553_s16 + $0x240] sm:$0xff] }
 0x1f4   : > { %v1032_v37 = vpop.f32.mrf.mxu0  ;;  %v1147_v39 = vpop.f32.mrf.mxu1  ;;  %v6981_v33 = vld [vmem:[%s9553_s16 + $0x340] sm:$0xff] }
 0x1f5   : > { %v1150_v40 = vadd.f32 %v1145_v34, %v1035_v36  ;;  %v1036_v41 = vadd.f32 %v1032_v37, %v920_v35  ;;  %v6964_v34 = vld [vmem:[%s9553_s16 + $0x2b8] sm:$0xff] }
 0x1f6   : > { %v1260_v42 = vpop.f32.mrf.mxu0  ;;  %v1375_v43 = vpop.f32.mrf.mxu1  ;;  %v6996_v35 = vld [vmem:[%s9553_s16 + $0x3b8] sm:$0xff] }
 0x1f7   : > { %v1151_v44 = vadd.f32 %v1147_v39, %v1036_v41  ;;  %v1265_v45 = vadd.f32 %v1260_v42, %v1150_v40  ;;  %v6948_v36 = vld [vmem:[%s9553_s16 + $0x238] sm:$0xff]  ;;  %v6963_v39 = vld [vmem:[%s9553_s16 + $0x2b0] sm:$0xff] }
 0x1f8   : > { %v1262_v38 = vpop.f32.mrf.mxu0  ;;  %v1377_v46 = vpop.f32.mrf.mxu1  ;;  %v6980_v37 = vld [vmem:[%s9553_s16 + $0x338] sm:$0xff]  ;;  %v6995_v40 = vld [vmem:[%s9553_s16 + $0x3b0] sm:$0xff] }
 0x1f9   : > { %v1380_v47 = vadd.f32 %v1375_v43, %v1265_v45  ;;  %v1266_v48 = vadd.f32 %v1262_v38, %v1151_v44  ;;  %v6947_v41 = vld [vmem:[%s9553_s16 + $0x230] sm:$0xff]  ;;  %v6962_v43 = vld [vmem:[%s9553_s16 + $0x2a8] sm:$0xff] }
 0x1fa   : > { %v1490_v49 = vpop.f32.mrf.mxu0  ;;  %v1605_v50 = vpop.f32.mrf.mxu1  ;;  %v6979_v42 = vld [vmem:[%s9553_s16 + $0x330] sm:$0xff]  ;;  %v6994_v44 = vld [vmem:[%s9553_s16 + $0x3a8] sm:$0xff] }
 0x1fb   : > { %v1381_v51 = vadd.f32 %v1377_v46, %v1266_v48  ;;  %v1495_v52 = vadd.f32 %v1490_v49, %v1380_v47  ;;  %v6946_v45 = vld [vmem:[%s9553_s16 + $0x228] sm:$0xff]  ;;  %v6961_v46 = vld [vmem:[%s9553_s16 + $0x2a0] sm:$0xff] }
 0x1fc   : > { %v1492_v53 = vpop.f32.mrf.mxu0  ;;  %v1607_v56 = vpop.f32.mrf.mxu1  ;;  %v6978_v38 = vld [vmem:[%s9553_s16 + $0x328] sm:$0xff]  ;;  %v6993_v47 = vld [vmem:[%s9553_s16 + $0x3a0] sm:$0xff] }
 0x1fd   : > { %v1610_v54 = vadd.f32 %v1605_v50, %v1495_v52  ;;  %v1496_v55 = vadd.f32 %v1492_v53, %v1381_v51  ;;  %v6945_v48 = vld [vmem:[%s9553_s16 + $0x220] sm:$0xff]  ;;  %v6960_v50 = vld [vmem:[%s9553_s16 + $0x298] sm:$0xff] }
 0x1fe   : > { %v1720_v57 = vpop.f32.mrf.mxu0  ;;  %v6977_v49 = vld [vmem:[%s9553_s16 + $0x320] sm:$0xff]  ;;  %v6992_v51 = vld [vmem:[%s9553_s16 + $0x398] sm:$0xff] }
 0x1ff   : > { %v1611_v58 = vadd.f32 %v1607_v56, %v1496_v55  ;;  %v1725_v59 = vadd.f32 %v1720_v57, %v1610_v54  ;;  %v6944_v52 = vld [vmem:[%s9553_s16 + $0x218] sm:$0xff]  ;;  %v6959_v54 = vld [vmem:[%s9553_s16 + $0x290] sm:$0xff] }
 0x200   : > { %v1722_v61 = vpop.f32.mrf.mxu0  ;;  %v6976_v53 = vld [vmem:[%s9553_s16 + $0x318] sm:$0xff]  ;;  %v6991_v55 = vld [vmem:[%s9553_s16 + $0x390] sm:$0xff] }
 0x201   : > { %v1726_v62 = vadd.f32 %v1722_v61, %v1611_v58  ;;  %v1733_v63 = vadd.f32 %v1731_v60, %v1725_v59  ;;  %v6943_v56 = vld [vmem:[%s9553_s16 + $0x210] sm:$0xff]  ;;  %v6958_v58 = vld [vmem:[%s9553_s16 + $0x288] sm:$0xff] }
 0x202   : > { %v6975_v57 = vld [vmem:[%s9553_s16 + $0x310] sm:$0xff]  ;;  %v6990_v59 = vld [vmem:[%s9553_s16 + $0x388] sm:$0xff] }
 0x203   : > { %v1734_v0 = vadd.f32 %v1731_v60, %v1726_v62  ;;  %v8529_v2 = vmax.f32 %v1733_v63, 0.0  ;;  %v6942_v60 = vld [vmem:[%s9553_s16 + $0x208] sm:$0xff]  ;;  %v6957_v62 = vld [vmem:[%s9553_s16 + $0x280] sm:$0xff] }
 0x204   : > { %v6974_v61 = vld [vmem:[%s9553_s16 + $0x308] sm:$0xff]  ;;  %v6989_v63 = vld [vmem:[%s9553_s16 + $0x380] sm:$0xff] }
 0x205   : > { %v1736_v1 = vmax.f32 %v1734_v0, 0.0  ;;  %v6941_v0 = vld [vmem:[%s9553_s16 + $0x200] sm:$0xff] }
 0x207   : > { %1833 = vmatprep.mubr.f32.mxu1 %v1736_v1  ;;  %1936 = vmatprep.mubr.f32.mxu0 %v1736_v1 }
 0x208   : > { %1834 = vmatmul.mubr.f32.vlgmr.msra.gmra.mxu1 %v8529_v2  ;;  %1937 = vmatmul.mubr.f32.vlgmr.msra.gmra.mxu0 %v8529_v2 }
 0x209   : > { %7274 = vmatpush3.msra.mxu1 %v6956_v3  ;;  %7309 = vmatpush3.msra.mxu0 %v6988_v4 }
 0x20a   : > { %7275 = vmatprep.subr.mxu1 %v6971_v7  ;;  %2040 = vmatprep.mubr.f32.mxu1 %v1736_v1  ;;  %v8723_v7 = vpop.permute.xlu1 %2164 }
 0x20b   : > { %7310 = vmatprep.subr.mxu0 %v7003_v8  ;;  %2144 = vmatprep.mubr.f32.mxu0 %v1736_v1  ;;  %v6973_v1 = vld [vmem:[%s9553_s16 + $0x300] sm:$0xff]  ;;  %s9575_s16 = smov 10  }
 0x20c   : > { %7276 = vmatpush3.msra.mxu1 %v6955_v9  ;;  %7311 = vmatpush3.msra.mxu0 %v6987_v10 }
 0x20d   : > { %7277 = vmatprep.subr.mxu1 %v6970_v11  ;;  %7312 = vmatprep.subr.mxu0 %v7002_v5 }
 0x20e   : > { %7278 = vmatpush3.msra.mxu1 %v6954_v12  ;;  %7313 = vmatpush3.msra.mxu0 %v6986_v13 }
 0x20f   : > { %7279 = vmatprep.subr.mxu1 %v6969_v14  ;;  %7314 = vmatprep.subr.mxu0 %v7001_v15 }
 0x210   : > { %7280 = vmatpush3.msra.mxu1 %v6953_v16  ;;  %7315 = vmatpush3.msra.mxu0 %v6985_v17 }
 0x211   : > { %7281 = vmatprep.subr.mxu1 %v6968_v18  ;;  %7316 = vmatprep.subr.mxu0 %v7000_v19 }
 0x212   : > { %7282 = vmatpush3.msra.mxu1 %v6952_v20  ;;  %7317 = vmatpush3.msra.mxu0 %v6984_v21  ;;  %v8733_v20 = vpop.permute.xlu0 %2417 }
 0x213   : > { %7283 = vmatprep.subr.mxu1 %v6967_v22  ;;  %7318 = vmatprep.subr.mxu0 %v6999_v23  ;;  %v8738_v22 = vld [vmem:[%s9554_s12] ss:$0 sm:$0xff]  ;;  %s7997_s12 = smov 122  }
 0x214   : > { %7284 = vmatpush3.msra.mxu1 %v6951_v24  ;;  %7319 = vmatpush3.msra.mxu0 %v6983_v25 }
 0x215   : > { %7285 = vmatprep.subr.mxu1 %v6966_v26  ;;  %7320 = vmatprep.subr.mxu0 %v6998_v27  ;;  %v2157_v26 = vld [vmem:[%s9558_s6] sm:$0xff] }
 0x216   : > { %7286 = vmatpush3.msra.mxu1 %v6950_v28  ;;  %7321 = vmatpush3.msra.mxu0 %v6982_v29  ;;  %v8750_v28 = vpop.permute.xlu0 %2597 }
 0x217   : > { %7287 = vmatprep.subr.mxu1 %v6965_v30  ;;  %7322 = vmatprep.subr.mxu0 %v6997_v31 }
 0x218   : > { %7288 = vmatpush3.msra.mxu1 %v6949_v32  ;;  %7323 = vmatpush3.msra.mxu0 %v6981_v33 }
 0x219   : > { %7289 = vmatprep.subr.mxu1 %v6964_v34  ;;  %7324 = vmatprep.subr.mxu0 %v6996_v35 }
 0x21a   : > { %7290 = vmatpush3.msra.mxu1 %v6948_v36  ;;  %7325 = vmatpush3.msra.mxu0 %v6980_v37  ;;  %v8764_v34 = vpop.permute.xlu0 %2777  ;;  %v2951_v37 = vld [vmem:[%s9564_s0] sm:$0xff]  ;;  %s9568_s0 = smov 118  }
 0x21b   : > { %7291 = vmatprep.subr.mxu1 %v6963_v39  ;;  %7326 = vmatprep.subr.mxu0 %v6995_v40  ;;  %v7007_v39 = vld [vmem:[%s9558_s6 + $0x8] sm:$0xff] }
 0x21c   : > { %7292 = vmatpush3.msra.mxu1 %v6947_v41  ;;  %7327 = vmatpush3.msra.mxu0 %v6979_v42  ;;  %v7011_v42 = vld [vmem:[%s9558_s6 + $0x10] sm:$0xff] }
 0x21d   : > { %7293 = vmatprep.subr.mxu1 %v6962_v43  ;;  %7328 = vmatprep.subr.mxu0 %v6994_v44  ;;  %v7014_v43 = vld [vmem:[%s9558_s6 + $0x18] sm:$0xff] }
 0x21e   : > { %7294 = vmatpush3.msra.mxu1 %v6946_v45  ;;  %7329 = vmatpush3.msra.mxu0 %v6978_v38  ;;  %v7017_v38 = vld [vmem:[%s9558_s6 + $0x20] sm:$0xff] }
 0x21f   : > { %7295 = vmatprep.subr.mxu1 %v6961_v46  ;;  %7330 = vmatprep.subr.mxu0 %v6993_v47  ;;  %v7020_v46 = vld [vmem:[%s9558_s6 + $0x28] sm:$0xff] }
 0x220   : > { %7296 = vmatpush3.msra.mxu1 %v6945_v48  ;;  %7331 = vmatpush3.msra.mxu0 %v6977_v49  ;;  %v7023_v49 = vld [vmem:[%s9558_s6 + $0x30] sm:$0xff] }
 0x221   : > { %7297 = vmatprep.subr.mxu1 %v6960_v50  ;;  %7332 = vmatprep.subr.mxu0 %v6992_v51  ;;  %v7026_v50 = vld [vmem:[%s9558_s6 + $0x38] sm:$0xff] }
 0x222   : > { %7298 = vmatpush3.msra.mxu1 %v6944_v52  ;;  %7333 = vmatpush3.msra.mxu0 %v6976_v53  ;;  %v7029_v53 = vld [vmem:[%s9558_s6 + $0x40] sm:$0xff]  ;;  %s9566_s6 = smov 119  }
 0x223   : > { %7299 = vmatprep.subr.mxu1 %v6959_v54  ;;  %7334 = vmatprep.subr.mxu0 %v6991_v55  ;;  %v2966_v54 = vld [vmem:[%s9565_s14 + $0x38] sm:$0xff]  ;;  %v2965_v55 = vld [vmem:[%s9565_s14 + $0x30] sm:$0xff] }
 0x224   : > { %7300 = vmatpush3.msra.mxu1 %v6943_v56  ;;  %7335 = vmatpush3.msra.mxu0 %v6975_v57  ;;  %v2964_v56 = vld [vmem:[%s9565_s14 + $0x28] sm:$0xff] }
 0x225   : > { %7301 = vmatprep.subr.mxu1 %v6958_v58  ;;  %7336 = vmatprep.subr.mxu0 %v6990_v59  ;;  %v2963_v58 = vld [vmem:[%s9565_s14 + $0x20] sm:$0xff] }
 0x226   : > { %7302 = vmatpush3.msra.mxu1 %v6942_v60  ;;  %7337 = vmatpush3.msra.mxu0 %v6974_v61  ;;  %v2962_v60 = vld [vmem:[%s9565_s14 + $0x18] sm:$0xff]  ;;  %v2961_v61 = vld [vmem:[%s9565_s14 + $0x10] sm:$0xff] }
 0x227   : > { %7303 = vmatprep.subr.mxu1 %v6957_v62  ;;  %7338 = vmatprep.subr.mxu0 %v6989_v63  ;;  %v2960_v62 = vld [vmem:[%s9565_s14 + $0x8] sm:$0xff]  ;;  %v2959_v63 = vld [vmem:[%s9565_s14] sm:$0xff]  ;;  %s7992_s14 = smov 4  }
 0x228   : > { %7304 = vmatpush3.msra.mxu1 %v6941_v0  ;;  %7339 = vmatpush3.msra.mxu0 %v6973_v1 }
 0x229   : > { %2041 = vmatmul.mubr.f32.vlgmr.msra.gmra.mxu1 %v8529_v2  ;;  %2145 = vmatmul.mubr.f32.vlgmr.msra.gmra.mxu0 %v8529_v2  ;;  %v8729_v2 = vpop.permute.xlu1 %2327 }
 0x22a   : > { %7542 = vmatprep.subr.mxu0 %v7982_v6  ;;  %7537 = vmatprep.subr.mxu1 %v7982_v6 }
 0x22b   : > { %7539 = vmatprep.mubr.msk.f32.mxu1 %vm7988_vm4, %v7982_v6  ;;  %7544 = vmatprep.mubr.msk.f32.mxu0 %vm7988_vm4, %v7982_v6 }
 0x22d   : > { %v8731_v19 = vpop.permute.xlu1 %2507 }
 0x231   : > { %v8748_v27 = vpop.permute.xlu1 %2687 }
 0x235   : > { %v8762_v33 = vpop.permute.xlu1 %2867 }
 0x2c8   : > { %v7235_v3 = vpop.f32.mrf.mxu1  ;;  %v7270_v4 = vpop.f32.mrf.mxu0 }
 0x2ca   : > { %v7236_v8 = vpop.f32.mrf.mxu1  ;;  %v7271_v9 = vpop.f32.mrf.mxu0 }
 0x2cb   : > { %v7237_v10 = vadd.f32 %v7236_v8, %v7235_v3  ;;  %v7272_v11 = vadd.f32 %v7271_v9, %v7270_v4 }
 0x2cd   : > { %v1942_v15 = vmax.f32 %v7237_v10, %v7272_v11 }
 0x2e9   : > { %v7305_v5 = vpop.f32.mrf.mxu1  ;;  %v7340_v12 = vpop.f32.mrf.mxu0 }
 0x2eb   : > { %v7306_v13 = vpop.f32.mrf.mxu1  ;;  %v7341_v14 = vpop.f32.mrf.mxu0 }
 0x2ec   : > { %v7307_v16 = vadd.f32 %v7306_v13, %v7305_v5  ;;  %v7342_v18 = vadd.f32 %v7341_v14, %v7340_v12 }
 0x2ee   : > { %v2046_v17 = vmax.f32 %v1942_v15, %v7307_v16 }
 0x2f0   : > { %v2150_v21 = vmax.f32 %v2046_v17, %v7342_v18 }
 0x2f2   : > { %v2330_v23 = vmul.f32 %v8729_v2, %v2150_v21  ;;  %v2167_v24 = vmul.f32 %v8723_v7, %v2150_v21  ;;  %v2156_v25 = vmul.f32 %v8738_v22, %v2150_v21  ;;  %v2510_v29 = vmul.f32 %v8731_v19, %v2150_v21 }
 0x2f3   : > { %v2420_v30 = vmul.f32 %v8733_v20, %v2150_v21  ;;  %v2690_v31 = vmul.f32 %v8748_v27, %v2150_v21  ;;  %v2600_v32 = vmul.f32 %v8750_v28, %v2150_v21  ;;  %v2870_v35 = vmul.f32 %v8762_v33, %v2150_v21 }
 0x2f4   : > { %2334 = vrot.lane.b32.xlu1 %v2330_v23, %s9559_s28  ;;  %2171 = vrot.lane.b32.xlu0 %v2167_v24, %s9560_s26  ;;  %v2780_v36 = vmul.f32 %v8764_v34, %v2150_v21 }
 0x2f5   : > { %7543 = vmatpush3.msra.mxu0 %v2156_v25 }
 0x2f6   : > { %7545 = vmatmul.mubr.msk.f32.vlgmr.msra.gmra.mxu0 %vm2174_vm6, %v2157_v26  ;;  %7552 = vmatprep.subr.mxu0 %v7982_v6 }
 0x2f7   : > { %7554 = vmatprep.mubr.msk.f32.mxu0 %vm7988_vm4, %v7982_v6 }
 0x2f8   : > { %2514 = vrot.lane.b32.xlu1 %v2510_v29, %s9530_s5  ;;  %2424 = vrot.lane.b32.xlu0 %v2420_v30, %s9528_s7  ;;  %s9569_s7 = sld [smem:[#allocation8_spill]]  ;;  %s9571_s5 = smov 1  }
 0x2fc   : > { %2694 = vrot.lane.b32.xlu1 %v2690_v31, %s9561_s27  ;;  %2604 = vrot.lane.b32.xlu0 %v2600_v32, %s9532_s29  ;;  %s7995_s29 = smov 123  }
 0x300   : > { %2874 = vrot.lane.b32.xlu1 %v2870_v35, %s9562_s24  ;;  %2784 = vrot.lane.b32.xlu0 %v2780_v36, %s9563_s3 }
 0x304   : > { %2954 = vperm.xlu0 %7957, %v2951_v37  }
 0x366   : > { %v2335_v40 = vpop.permute.xlu1 %2334  ;;  %v2172_v41 = vpop.permute.xlu0 %2171 }
 0x367   : > { %7538 = vmatpush3.msra.mxu1 %v2172_v41 }
 0x368   : > { %7540 = vmatmul.mubr.msk.f32.vlgmr.msra.gmra.mxu1 %vm2174_vm6, %v7007_v39  ;;  %7547 = vmatprep.subr.mxu1 %v7982_v6 }
 0x369   : > { %7548 = vmatpush3.msra.mxu1 %v2335_v40  ;;  %7549 = vmatprep.mubr.msk.f32.mxu1 %vm7988_vm4, %v7982_v6 }
 0x36a   : > { %v2515_v44 = vpop.permute.xlu1 %2514  ;;  %v2425_v45 = vpop.permute.xlu0 %2424  ;;  %7557 = vmatprep.subr.mxu1 %v7982_v6 }
 0x36b   : > { %7553 = vmatpush3.msra.mxu0 %v2425_v45 }
 0x36c   : > { %7550 = vmatmul.mubr.msk.f32.vlgmr.msra.gmra.mxu1 %vm2174_vm6, %v7011_v42  ;;  %7555 = vmatmul.mubr.msk.f32.vlgmr.msra.gmra.mxu0 %vm2174_vm6, %v7014_v43 }
 0x36d   : > { %7558 = vmatpush3.msra.mxu1 %v2515_v44  ;;  %7562 = vmatprep.subr.mxu0 %v7982_v6 }
 0x36e   : > { %v2695_v47 = vpop.permute.xlu1 %2694  ;;  %v2605_v48 = vpop.permute.xlu0 %2604  ;;  %7559 = vmatprep.mubr.msk.f32.mxu1 %vm7988_vm4, %v7982_v6  ;;  %7564 = vmatprep.mubr.msk.f32.mxu0 %vm7988_vm4, %v7982_v6 }
 0x36f   : > { %7563 = vmatpush3.msra.mxu0 %v2605_v48  ;;  %7567 = vmatprep.subr.mxu1 %v7982_v6 }
 0x370   : > { %7560 = vmatmul.mubr.msk.f32.vlgmr.msra.gmra.mxu1 %vm2174_vm6, %v7017_v38  ;;  %7565 = vmatmul.mubr.msk.f32.vlgmr.msra.gmra.mxu0 %vm2174_vm6, %v7020_v46 }
 0x371   : > { %7568 = vmatpush3.msra.mxu1 %v2695_v47  ;;  %7572 = vmatprep.subr.mxu0 %v7982_v6  ;;  %v7035_v47 = vld [vmem:[%s9570_s11 + $0x10] sm:$0xff] }
 0x372   : > { %v2875_v51 = vpop.permute.xlu1 %2874  ;;  %v2785_v52 = vpop.permute.xlu0 %2784  ;;  %7569 = vmatprep.mubr.msk.f32.mxu1 %vm7988_vm4, %v7982_v6  ;;  %7574 = vmatprep.mubr.msk.f32.mxu0 %vm7988_vm4, %v7982_v6 }
 0x373   : > { %7573 = vmatpush3.msra.mxu0 %v2785_v52  ;;  %7577 = vmatprep.subr.mxu1 %v7982_v6 }
 0x374   : > { %7570 = vmatmul.mubr.msk.f32.vlgmr.msra.gmra.mxu1 %vm2174_vm6, %v7023_v49  ;;  %7575 = vmatmul.mubr.msk.f32.vlgmr.msra.gmra.mxu0 %vm2174_vm6, %v7026_v50  ;;  %v7043_v49 = vld [vmem:[%s9570_s11 + $0x30] sm:$0xff]  ;;  %v7037_v50 = vld [vmem:[%s9570_s11 + $0x18] sm:$0xff] }
 0x375   : > { %7578 = vmatpush3.msra.mxu1 %v2875_v51  ;;  %7579 = vmatprep.mubr.msk.f32.mxu1 %vm7988_vm4, %v7982_v6 }
 0x376   : > { %7582 = vmatprep.subr.mxu0 %v7982_v6  ;;  %7598 = vmatprep.mubr.msk.f32.mxu0 %vm7988_vm4, %v7982_v6 }
 0x377   : > { %7601 = vmatprep.subr.mxu1 %v7982_v6  ;;  %7583 = vmatpush3.msra.mxu0 %v2966_v54  ;;  %v7041_v54 = vld [vmem:[%s9570_s11 + $0x28] sm:$0xff] }
 0x378   : > { %7580 = vmatmul.mubr.msk.f32.vlgmr.msra.gmra.mxu1 %vm2174_vm6, %v7029_v53  ;;  %7584 = vmatprep.subr.mxu0 %v7982_v6  ;;  %v7047_v53 = vld [vmem:[%s9570_s11 + $0x40] sm:$0xff] }
 0x379   : > { %7603 = vmatprep.mubr.msk.f32.mxu1 %vm7988_vm4, %v7982_v6  ;;  %7585 = vmatpush3.msra.mxu0 %v2965_v55 }
 0x37a   : > { %7586 = vmatprep.subr.mxu0 %v7982_v6 }
 0x37b   : > { %7587 = vmatpush3.msra.mxu0 %v2964_v56  ;;  %v7045_v56 = vld [vmem:[%s9570_s11 + $0x38] sm:$0xff] }
 0x37c   : > { %7588 = vmatprep.subr.mxu0 %v7982_v6 }
 0x37d   : > { %7589 = vmatpush3.msra.mxu0 %v2963_v58  ;;  %v7057_v58 = vld [vmem:[%s9499_s17 + $0x78] sm:$0xff] }
 0x37e   : > { %7590 = vmatprep.subr.mxu0 %v7982_v6 }
 0x37f   : > { %7591 = vmatpush3.msra.mxu0 %v2962_v60  ;;  %v2955_v31 = vpop.permute.xlu0 %2954  ;;  %v7056_v60 = vld [vmem:[%s9499_s17 + $0x70] sm:$0xff] }
 0x380   : > { %7592 = vmatprep.subr.mxu0 %v7982_v6 }
 0x381   : > { %7593 = vmatpush3.msra.mxu0 %v2961_v61  ;;  %v3776_v61 = vld [vmem:[%s9499_s17 + $0x28] sm:$0xff] }
 0x382   : > { %7594 = vmatprep.subr.mxu0 %v7982_v6 }
 0x383   : > { %7595 = vmatpush3.msra.mxu0 %v2960_v62  ;;  %v7055_v62 = vld [vmem:[%s9499_s17 + $0x68] sm:$0xff] }
 0x384   : > { %7596 = vmatprep.subr.mxu0 %v7982_v6 }
 0x385   : > { %7597 = vmatpush3.msra.mxu0 %v2959_v63  ;;  %v3775_v63 = vld [vmem:[%s9499_s17 + $0x20] sm:$0xff] }
 0x386   : > { %7621 = vmatprep.subr.mxu0 %v7982_v6 }
 0x3b6   : > { %v2317_v57 = vpop.f32.mrf.mxu0 }
 0x3b8   : > { %v7546_v59 = vpop.f32.mrf.mxu0 }
 0x3b9   : > { %v3777_v59 = vld [vmem:[%s9499_s17 + $0x30] sm:$0xff] }
 0x428   : > { %v2244_v0 = vpop.f32.mrf.mxu1 }
 0x429   : > { %v2318_v3 = vadd.f32 %v2317_v57, %v2244_v0  ;;  %v3778_v57 = vld [vmem:[%s9499_s17 + $0x38] sm:$0xff]  ;;  %v7054_v0 = vld [vmem:[%s9499_s17 + $0x60] sm:$0xff] }
 0x42a   : > { %v7541_v1 = vpop.f32.mrf.mxu1 }
 0x42b   : > { %v3774_v1 = vld [vmem:[%s9499_s17 + $0x18] sm:$0xff] }
 0x42c   : > { %v2406_v4 = vpop.f32.mrf.mxu1  ;;  %v2496_v8 = vpop.f32.mrf.mxu0 }
 0x42d   : > { %v2410_v9 = vadd.f32 %v2406_v4, %v2318_v3  ;;  %v7053_v3 = vld [vmem:[%s9499_s17 + $0x58] sm:$0xff]  ;;  %v3773_v4 = vld [vmem:[%s9499_s17 + $0x10] sm:$0xff] }
 0x42e   : > { %v7551_v10 = vpop.f32.mrf.mxu1  ;;  %v7556_v11 = vpop.f32.mrf.mxu0 }
 0x42f   : > { %v2500_v5 = vadd.f32 %v2496_v8, %v2410_v9  ;;  %v7052_v8 = vld [vmem:[%s9499_s17 + $0x50] sm:$0xff]  ;;  %v3772_v9 = vld [vmem:[%s9499_s17 + $0x8] sm:$0xff]  ;;  %v3771_v11 = vld [vmem:[%s9499_s17] sm:$0xff] }
 0x430   : > { %v2586_v12 = vpop.f32.mrf.mxu1  ;;  %v2676_v13 = vpop.f32.mrf.mxu0  ;;  %v7051_v10 = vld [vmem:[%s9499_s17 + $0x48] sm:$0xff] }
 0x431   : > { %v2590_v14 = vadd.f32 %v2586_v12, %v2500_v5  ;;  %v7050_v5 = vld [vmem:[%s9499_s17 + $0x40] sm:$0xff] }
 0x432   : > { %v7561_v15 = vpop.f32.mrf.mxu1  ;;  %v7566_v16 = vpop.f32.mrf.mxu0  ;;  %v7078_v12 = vld [vmem:[%s9495_s13 + $0x1] ss:$0 sm:$0xff] }
 0x433   : > { %v2680_v17 = vadd.f32 %v2676_v13, %v2590_v14  ;;  %v7085_v13 = vld [vmem:[%s9495_s13 + $0x2] ss:$0 sm:$0xff]  ;;  %v7090_v14 = vld [vmem:[%s9495_s13 + $0x3] ss:$0 sm:$0xff]  ;;  %v7095_v15 = vld [vmem:[%s9495_s13 + $0x4] ss:$0 sm:$0xff] }
 0x434   : > { %v2766_v18 = vpop.f32.mrf.mxu1  ;;  %v2856_v21 = vpop.f32.mrf.mxu0  ;;  %v7100_v16 = vld [vmem:[%s9495_s13 + $0x5] ss:$0 sm:$0xff] }
 0x435   : > { %v2770_v23 = vadd.f32 %v2766_v18, %v2680_v17  ;;  %v7105_v17 = vld [vmem:[%s9495_s13 + $0x6] ss:$0 sm:$0xff]  ;;  %v7110_v18 = vld [vmem:[%s9495_s13 + $0x7] ss:$0 sm:$0xff] }
 0x436   : > { %v7571_v24 = vpop.f32.mrf.mxu1  ;;  %v7576_v25 = vpop.f32.mrf.mxu0 }
 0x437   : > { %v2860_v26 = vadd.f32 %v2856_v21, %v2770_v23  ;;  %v7115_v21 = vld [vmem:[%s9495_s13 + $0x8] ss:$0 sm:$0xff] }
 0x438   : > { %v2946_v29 = vpop.f32.mrf.mxu1 }
 0x439   : > { %v2950_v30 = vadd.f32 %v2946_v29, %v2860_v26 }
 0x43a   : > { %v7581_v32 = vpop.f32.mrf.mxu1 }
 0x43b   : > { %v2957_v35 = vadd.f32 %v2955_v31, %v2950_v30 }
 0x43d   : > { %v2958_v36 = vmax.f32 %v2957_v35, 0.0 }
 0x43f   : > { %7599 = vmatmul.mubr.msk.f32.vlgmr.msra.gmra.mxu0 %vm2967_vm7, %v2958_v36 }
 0x440   : > { %7623 = vmatprep.mubr.msk.f32.mxu0 %vm7988_vm4, %v7982_v6 }
 0x4ff   : > { %v3037_v37 = vpop.f32.mrf.mxu0 }
 0x500   : > { %v3196_v39 = vmul.f32 %v3037_v37, %v8729_v2  ;;  %v3043_v40 = vmul.f32 %v3037_v37, %v8723_v7  ;;  %v3358_v42 = vmul.f32 %v3037_v37, %v8731_v19  ;;  %v3277_v43 = vmul.f32 %v3037_v37, %v8733_v20  ;;  %v3763_v19 = vld [vmem:[%s9569_s7] sm:$0xff]  ;;  %v7032_v20 = vld [vmem:[%s9570_s11 + $0x8] sm:$0xff]  ;;  %s9572_s7 = smov 2  }
 0x501   : > { %v7600_v41 = vpop.f32.mrf.mxu0  ;;  %v3520_v44 = vmul.f32 %v3037_v37, %v8748_v27  ;;  %v3439_v45 = vmul.f32 %v3037_v37, %v8750_v28  ;;  %v3682_v7 = vmul.f32 %v3037_v37, %v8762_v33  ;;  %v3601_v2 = vmul.f32 %v3037_v37, %v8764_v34  ;;  %v3042_v34 = vld [vmem:[%s9570_s11] sm:$0xff] }
 0x502   : > { %3200 = vrot.lane.b32.xlu0 %v3196_v39, %s9559_s28  ;;  %3047 = vrot.lane.b32.xlu1 %v3043_v40, %s9560_s26  ;;  %v3041_v33 = vmul.f32 %v8738_v22, %v3037_v37  ;;  %v7039_v22 = vld [vmem:[%s9570_s11 + $0x20] sm:$0xff]  ;;  %s7996_s11 = smov 124  }
 0x506   : > { %3362 = vrot.lane.b32.xlu0 %v3358_v42, %s9566_s6  ;;  %3281 = vrot.lane.b32.xlu1 %v3277_v43, %s9567_s25 }
 0x50a   : > { %3524 = vrot.lane.b32.xlu0 %v3520_v44, %s9561_s27  ;;  %3443 = vrot.lane.b32.xlu1 %v3439_v45, %s9568_s0  ;;  %s7993_s27 = smov 5  }
 0x50e   : > { %3686 = vrot.lane.b32.xlu0 %v3682_v7, %s9562_s24  ;;  %3605 = vrot.lane.b32.xlu1 %v3601_v2, %s9563_s3 }
 0x512   : > { %3766 = vperm.xlu1 %7958, %v3763_v19   ;;  %4106 = vrot.lane.b32.xlu0 %v7078_v12, %s9571_s5  ;;  %s7994_s5 = smov 6  }
 0x516   : > { %4285 = vrot.lane.b32.xlu1 %v7085_v13, %s9572_s7  ;;  %4385 = vrot.lane.b32.xlu0 %v7090_v14, %s7992_s14  ;;  %s9573_s7 = smov 8   ;;  %s9574_s14 = smov 9  }
 0x51a   : > { %4485 = vrot.lane.b32.xlu1 %v7095_v15, %s7993_s27  ;;  %4585 = vrot.lane.b32.xlu0 %v7100_v16, %s7994_s5 }
 0x51e   : > { %4685 = vrot.lane.b32.xlu1 %v7105_v17, %s9573_s7  ;;  %4785 = vrot.lane.b32.xlu0 %v7110_v18, %s9574_s14  ;;  %s9576_s14 = sld [smem:[#allocation9_spill]]  ;;  %v9131_v18 = vld [vmem:[%s9495_s13] ss:$0 sm:$0xff] }
 0x522   : > { %4885 = vrot.lane.b32.xlu1 %v7115_v21, %s9575_s16 }
 0x574   : > { %v3201_v27 = vpop.permute.xlu0 %3200  ;;  %v3048_v28 = vpop.permute.xlu1 %3047 }
 0x575   : > { %7602 = vmatpush3.msra.mxu1 %v3048_v28 }
 0x576   : > { %7604 = vmatmul.mubr.msk.f32.vlgmr.msra.gmra.mxu1 %vm2174_vm6, %v7032_v20  ;;  %7606 = vmatprep.subr.mxu1 %v7982_v6 }
 0x577   : > { %7607 = vmatpush3.msra.mxu1 %v3041_v33  ;;  %7608 = vmatprep.mubr.msk.f32.mxu1 %vm7988_vm4, %v7982_v6 }
 0x578   : > { %v3363_v38 = vpop.permute.xlu0 %3362  ;;  %7611 = vmatprep.subr.mxu1 %v7982_v6  ;;  %v3282_v46 = vpop.permute.xlu1 %3281 }
 0x579   : > { %7622 = vmatpush3.msra.mxu0 %v3363_v38 }
 0x57a   : > { %7609 = vmatmul.mubr.msk.f32.vlgmr.msra.gmra.mxu1 %vm2174_vm6, %v3042_v34  ;;  %7631 = vmatprep.subr.mxu0 %v7982_v6 }
 0x57b   : > { %7612 = vmatpush3.msra.mxu1 %v3201_v27  ;;  %7613 = vmatprep.mubr.msk.f32.mxu1 %vm7988_vm4, %v7982_v6 }
 0x57c   : > { %v3525_v48 = vpop.permute.xlu0 %3524  ;;  %7616 = vmatprep.subr.mxu1 %v7982_v6  ;;  %7624 = vmatmul.mubr.msk.f32.vlgmr.msra.gmra.mxu0 %vm2174_vm6, %v7039_v22  ;;  %v3444_v51 = vpop.permute.xlu1 %3443 }
 0x57d   : > { %7632 = vmatpush3.msra.mxu0 %v3525_v48  ;;  %7633 = vmatprep.mubr.msk.f32.mxu0 %vm7988_vm4, %v7982_v6  ;;  %v7075_v48 = vld [vmem:[%s9499_s17 + $0xf8] sm:$0xff] }
 0x57e   : > { %7614 = vmatmul.mubr.msk.f32.vlgmr.msra.gmra.mxu1 %vm2174_vm6, %v7035_v47  ;;  %7641 = vmatprep.subr.mxu0 %v7982_v6  ;;  %v7066_v47 = vld [vmem:[%s9499_s17 + $0xb8] sm:$0xff] }
 0x57f   : > { %7617 = vmatpush3.msra.mxu1 %v3282_v46  ;;  %7618 = vmatprep.mubr.msk.f32.mxu1 %vm7988_vm4, %v7982_v6 }
 0x580   : > { %v3687_v52 = vpop.permute.xlu0 %3686  ;;  %7626 = vmatprep.subr.mxu1 %v7982_v6  ;;  %7634 = vmatmul.mubr.msk.f32.vlgmr.msra.gmra.mxu0 %vm2174_vm6, %v7043_v49  ;;  %v3606_v55 = vpop.permute.xlu1 %3605  ;;  %v7065_v49 = vld [vmem:[%s9499_s17 + $0xb0] sm:$0xff] }
 0x581   : > { %7642 = vmatpush3.msra.mxu0 %v3687_v52  ;;  %7643 = vmatprep.mubr.msk.f32.mxu0 %vm7988_vm4, %v7982_v6  ;;  %v7073_v52 = vld [vmem:[%s9499_s17 + $0xe8] sm:$0xff] }
 0x582   : > { %7619 = vmatmul.mubr.msk.f32.vlgmr.msra.gmra.mxu1 %vm2174_vm6, %v7037_v50  ;;  %7665 = vmatprep.subr.mxu0 %v7982_v6  ;;  %v7074_v50 = vld [vmem:[%s9499_s17 + $0xf0] sm:$0xff] }
 0x583   : > { %7627 = vmatpush3.msra.mxu1 %v3444_v51  ;;  %7628 = vmatprep.mubr.msk.f32.mxu1 %vm7988_vm4, %v7982_v6  ;;  %v7064_v51 = vld [vmem:[%s9499_s17 + $0xa8] sm:$0xff] }
 0x584   : > { %7636 = vmatprep.subr.mxu1 %v7982_v6  ;;  %7644 = vmatmul.mubr.msk.f32.vlgmr.msra.gmra.mxu0 %vm2174_vm6, %v7047_v53  ;;  %v7063_v53 = vld [vmem:[%s9499_s17 + $0xa0] sm:$0xff] }
 0x585   : > { %7681 = vmatprep.mubr.msk.f32.mxu0 %vm7988_vm4, %v7982_v6  ;;  %7666 = vmatpush3.msra.mxu0 %v7057_v58  ;;  %v7070_v58 = vld [vmem:[%s9499_s17 + $0xd0] sm:$0xff] }
 0x586   : > { %7629 = vmatmul.mubr.msk.f32.vlgmr.msra.gmra.mxu1 %vm2174_vm6, %v7041_v54  ;;  %7667 = vmatprep.subr.mxu0 %v7982_v6  ;;  %v7072_v54 = vld [vmem:[%s9499_s17 + $0xe0] sm:$0xff] }
 0x587   : > { %7637 = vmatpush3.msra.mxu1 %v3606_v55  ;;  %7638 = vmatprep.mubr.msk.f32.mxu1 %vm7988_vm4, %v7982_v6  ;;  %v7062_v55 = vld [vmem:[%s9499_s17 + $0x98] sm:$0xff] }
 0x588   : > { %7646 = vmatprep.subr.mxu1 %v7982_v6  ;;  %7668 = vmatpush3.msra.mxu0 %v7056_v60  ;;  %v7069_v60 = vld [vmem:[%s9499_s17 + $0xc8] sm:$0xff] }
 0x589   : > { %7669 = vmatprep.subr.mxu0 %v7982_v6 }
 0x58a   : > { %7639 = vmatmul.mubr.msk.f32.vlgmr.msra.gmra.mxu1 %vm2174_vm6, %v7045_v56  ;;  %7670 = vmatpush3.msra.mxu0 %v7055_v62  ;;  %v7071_v56 = vld [vmem:[%s9499_s17 + $0xd8] sm:$0xff]  ;;  %v7068_v62 = vld [vmem:[%s9499_s17 + $0xc0] sm:$0xff] }
 0x58b   : > { %7662 = vmatprep.mubr.msk.f32.mxu1 %vm7988_vm4, %v7982_v6  ;;  %7647 = vmatpush3.msra.mxu1 %v3778_v57  ;;  %v7061_v57 = vld [vmem:[%s9499_s17 + $0x90] sm:$0xff] }
 0x58c   : > { %7648 = vmatprep.subr.mxu1 %v7982_v6  ;;  %7671 = vmatprep.subr.mxu0 %v7982_v6 }
 0x58d   : > { %7649 = vmatpush3.msra.mxu1 %v3777_v59  ;;  %7672 = vmatpush3.msra.mxu0 %v7054_v0  ;;  %v3767_v34 = vpop.permute.xlu1 %3766  ;;  %v7060_v59 = vld [vmem:[%s9499_s17 + $0x88] sm:$0xff] }
 0x58e   : > { %7650 = vmatprep.subr.mxu1 %v7982_v6  ;;  %7673 = vmatprep.subr.mxu0 %v7982_v6 }
 0x58f   : > { %7651 = vmatpush3.msra.mxu1 %v3776_v61  ;;  %7674 = vmatpush3.msra.mxu0 %v7053_v3  ;;  %v7059_v61 = vld [vmem:[%s9499_s17 + $0x80] sm:$0xff] }
 0x590   : > { %7652 = vmatprep.subr.mxu1 %v7982_v6  ;;  %7675 = vmatprep.subr.mxu0 %v7982_v6 }
 0x591   : > { %7653 = vmatpush3.msra.mxu1 %v3775_v63  ;;  %7676 = vmatpush3.msra.mxu0 %v7052_v8  ;;  %v9114_v8 = vpop.permute.xlu1 %4285 }
 0x592   : > { %7654 = vmatprep.subr.mxu1 %v7982_v6  ;;  %7677 = vmatprep.subr.mxu0 %v7982_v6 }
 0x593   : > { %7655 = vmatpush3.msra.mxu1 %v3774_v1  ;;  %7678 = vmatpush3.msra.mxu0 %v7051_v10 }
 0x594   : > { %7656 = vmatprep.subr.mxu1 %v7982_v6  ;;  %7679 = vmatprep.subr.mxu0 %v7982_v6 }
 0x595   : > { %7657 = vmatpush3.msra.mxu1 %v3773_v4  ;;  %7680 = vmatpush3.msra.mxu0 %v7050_v5  ;;  %v9112_v4 = vpop.permute.xlu0 %4106  ;;  %v9126_v13 = vpop.permute.xlu1 %4485 }
 0x596   : > { %7658 = vmatprep.subr.mxu1 %v7982_v6  ;;  %7703 = vmatprep.subr.mxu0 %v7982_v6 }
 0x597   : > { %7659 = vmatpush3.msra.mxu1 %v3772_v9  ;;  %v7079_v9 = vld [vmem:[%s9576_s14 + $0x10] sm:$0xff] }
 0x598   : > { %7660 = vmatprep.subr.mxu1 %v7982_v6 }
 0x599   : > { %7661 = vmatpush3.msra.mxu1 %v3771_v11  ;;  %v9124_v12 = vpop.permute.xlu0 %4385 }
 0x59a   : > { %7684 = vmatprep.subr.mxu1 %v7982_v6 }
 0x636   : > { %v3119_v23 = vpop.f32.mrf.mxu1 }
 0x638   : > { %v7605_v24 = vpop.f32.mrf.mxu1 }
 0x63a   : > { %v3192_v25 = vpop.f32.mrf.mxu1 }
 0x63b   : > { %v3193_v32 = vadd.f32 %v3192_v25, %v3119_v23  ;;  %v4099_v25 = vld [vmem:[%s9576_s14 + $0x8] sm:$0xff] }
 0x63c   : > { %v7610_v26 = vpop.f32.mrf.mxu1  ;;  %v3434_v29 = vpop.f32.mrf.mxu0 }
 0x63d   : > { %v9141_v26 = vpop.permute.xlu0 %4585 }
 0x63e   : > { %v3272_v30 = vpop.f32.mrf.mxu1  ;;  %v7625_v31 = vpop.f32.mrf.mxu0 }
 0x63f   : > { %v3276_v37 = vadd.f32 %v3272_v30, %v3193_v32  ;;  %v7091_v32 = vld [vmem:[%s9576_s14 + $0x30] sm:$0xff] }
 0x640   : > { %v7615_v35 = vpop.f32.mrf.mxu1  ;;  %v3596_v36 = vpop.f32.mrf.mxu0 }
 0x642   : > { %v3353_v39 = vpop.f32.mrf.mxu1  ;;  %v7635_v40 = vpop.f32.mrf.mxu0 }
 0x643   : > { %v3357_v41 = vadd.f32 %v3353_v39, %v3276_v37  ;;  %v9156_v37 = vpop.permute.xlu0 %4785 }
 0x644   : > { %v7620_v42 = vpop.f32.mrf.mxu1  ;;  %v3758_v43 = vpop.f32.mrf.mxu0 }
 0x645   : > { %v3438_v44 = vadd.f32 %v3434_v29, %v3357_v41  ;;  %v9143_v29 = vpop.permute.xlu1 %4685  ;;  %v4980_v42 = vld [vmem:[%s9490_s8 + $0x8] sm:$0xff] }
 0x646   : > { %v3515_v45 = vpop.f32.mrf.mxu1  ;;  %v7645_v7 = vpop.f32.mrf.mxu0 }
 0x647   : > { %v3519_v2 = vadd.f32 %v3515_v45, %v3438_v44  ;;  %v7080_v7 = vld [vmem:[%s9576_s14 + $0x18] sm:$0xff] }
 0x648   : > { %v7630_v19 = vpop.f32.mrf.mxu1 }
 0x649   : > { %v3600_v20 = vadd.f32 %v3596_v36, %v3519_v2  ;;  %v9158_v39 = vpop.permute.xlu1 %4885  ;;  %v7086_v2 = vld [vmem:[%s9576_s14 + $0x20] sm:$0xff] }
 0x64a   : > { %v3677_v27 = vpop.f32.mrf.mxu1 }
 0x64b   : > { %v3681_v28 = vadd.f32 %v3677_v27, %v3600_v20  ;;  %v7087_v27 = vld [vmem:[%s9576_s14 + $0x28] sm:$0xff] }
 0x64c   : > { %v7640_v33 = vpop.f32.mrf.mxu1 }
 0x64d   : > { %v3762_v38 = vadd.f32 %v3758_v43, %v3681_v28  ;;  %v4979_v43 = vld [vmem:[%s9490_s8] sm:$0xff]  ;;  %v7092_v28 = vld [vmem:[%s9576_s14 + $0x38] sm:$0xff] }
 0x64e   : > { %v7096_v33 = vld [vmem:[%s9576_s14 + $0x40] sm:$0xff] }
 0x64f   : > { %v3769_v22 = vadd.f32 %v3767_v34, %v3762_v38  ;;  %v7101_v34 = vld [vmem:[%s9576_s14 + $0x50] sm:$0xff] }
 0x651   : > { %v3770_v46 = vmax.f32 %v3769_v22, 0.0 }
 0x653   : > { %7663 = vmatmul.mubr.msk.f32.vlgmr.msra.gmra.mxu1 %vm2967_vm7, %v3770_v46  ;;  %7682 = vmatmul.mubr.msk.f32.vlgmr.msra.gmra.mxu0 %vm2967_vm7, %v3770_v46 }
 0x654   : > { %7685 = vmatpush3.msra.mxu1 %v7066_v47  ;;  %7704 = vmatpush3.msra.mxu0 %v7075_v48  ;;  %v7102_v47 = vld [vmem:[%s9576_s14 + $0x58] sm:$0xff]  ;;  %v7106_v48 = vld [vmem:[%s9576_s14 + $0x60] sm:$0xff] }
 0x655   : > { %7686 = vmatprep.subr.mxu1 %v7982_v6  ;;  %7705 = vmatprep.subr.mxu0 %v7982_v6 }
 0x656   : > { %7687 = vmatpush3.msra.mxu1 %v7065_v49  ;;  %7706 = vmatpush3.msra.mxu0 %v7074_v50  ;;  %v7111_v49 = vld [vmem:[%s9576_s14 + $0x70] sm:$0xff] }
 0x657   : > { %7688 = vmatprep.subr.mxu1 %v7982_v6  ;;  %7707 = vmatprep.subr.mxu0 %v7982_v6 }
 0x658   : > { %7689 = vmatpush3.msra.mxu1 %v7064_v51  ;;  %7708 = vmatpush3.msra.mxu0 %v7073_v52  ;;  %v7107_v52 = vld [vmem:[%s9576_s14 + $0x68] sm:$0xff] }
 0x659   : > { %7690 = vmatprep.subr.mxu1 %v7982_v6  ;;  %7709 = vmatprep.subr.mxu0 %v7982_v6 }
 0x65a   : > { %7691 = vmatpush3.msra.mxu1 %v7063_v53  ;;  %7710 = vmatpush3.msra.mxu0 %v7072_v54  ;;  %v7112_v53 = vld [vmem:[%s9576_s14 + $0x78] sm:$0xff]  ;;  %v7116_v54 = vld [vmem:[%s9576_s14 + $0x80] sm:$0xff] }
 0x65b   : > { %7692 = vmatprep.subr.mxu1 %v7982_v6  ;;  %7711 = vmatprep.subr.mxu0 %v7982_v6 }
 0x65c   : > { %7693 = vmatpush3.msra.mxu1 %v7062_v55  ;;  %7712 = vmatpush3.msra.mxu0 %v7071_v56  ;;  %v7117_v55 = vld [vmem:[%s9576_s14 + $0x88] sm:$0xff] }
 0x65d   : > { %7694 = vmatprep.subr.mxu1 %v7982_v6  ;;  %7713 = vmatprep.subr.mxu0 %v7982_v6  ;;  %v4996_v56 = vld [vmem:[%s9497_s15 + $0x8] sm:$0xff] }
 0x65e   : > { %7695 = vmatpush3.msra.mxu1 %v7061_v57  ;;  %7714 = vmatpush3.msra.mxu0 %v7070_v58  ;;  %v4995_v57 = vld [vmem:[%s9497_s15] sm:$0xff] }
 0x65f   : > { %7696 = vmatprep.subr.mxu1 %v7982_v6  ;;  %7715 = vmatprep.subr.mxu0 %v7982_v6 }
 0x660   : > { %7697 = vmatpush3.msra.mxu1 %v7060_v59  ;;  %7716 = vmatpush3.msra.mxu0 %v7069_v60 }
 0x661   : > { %7698 = vmatprep.subr.mxu1 %v7982_v6  ;;  %7717 = vmatprep.subr.mxu0 %v7982_v6 }
 0x662   : > { %7699 = vmatpush3.msra.mxu1 %v7059_v61  ;;  %7700 = vmatprep.mubr.msk.f32.mxu1 %vm7988_vm4, %v7982_v6 }
 0x663   : > { %7718 = vmatpush3.msra.mxu0 %v7068_v62  ;;  %7719 = vmatprep.mubr.msk.f32.mxu0 %vm7988_vm4, %v7982_v6  ;;  %v4098_v6 = vld [vmem:[%s9576_s14] sm:$0xff] }
 0x664   : > { %7701 = vmatmul.mubr.msk.f32.vlgmr.msra.gmra.mxu1 %vm2967_vm7, %v3770_v46  ;;  %7720 = vmatmul.mubr.msk.f32.vlgmr.msra.gmra.mxu0 %vm2967_vm7, %v3770_v46  ;;  %v7097_v46 = vld [vmem:[%s9576_s14 + $0x48] sm:$0xff] }
 0x665   : > { %7724 = vmatprep.mubr.msk.f32.mxu1 %vm2174_vm6, %v7079_v9  ;;  %7729 = vmatprep.mubr.msk.f32.mxu0 %vm2174_vm6, %v4098_v6 }
 0x713   : > { %v3848_v63 = vpop.f32.mrf.mxu1  ;;  %v3927_v0 = vpop.f32.mrf.mxu0 }
 0x714   : > { %v3931_v10 = vmax.f32 %v3848_v63, %v3927_v0 }
 0x715   : > { %v7664_v1 = vpop.f32.mrf.mxu1  ;;  %v7683_v3 = vpop.f32.mrf.mxu0 }
 0x724   : > { %v4007_v11 = vpop.f32.mrf.mxu1  ;;  %v4087_v5 = vpop.f32.mrf.mxu0 }
 0x725   : > { %v4011_v14 = vmax.f32 %v3931_v10, %v4007_v11 }
 0x726   : > { %v7702_v15 = vpop.f32.mrf.mxu1  ;;  %v7721_v16 = vpop.f32.mrf.mxu0 }
 0x727   : > { %v4091_v17 = vmax.f32 %v4011_v14, %v4087_v5 }
 0x729   : > { %v4288_v21 = vmul.f32 %v9114_v8, %v4091_v17  ;;  %v4109_v23 = vmul.f32 %v9112_v4, %v4091_v17  ;;  %v4097_v24 = vmul.f32 %v9131_v18, %v4091_v17  ;;  %v4488_v30 = vmul.f32 %v9126_v13, %v4091_v17 }
 0x72a   : > { %v4388_v31 = vmul.f32 %v9124_v12, %v4091_v17  ;;  %v4688_v35 = vmul.f32 %v9143_v29, %v4091_v17  ;;  %v4588_v36 = vmul.f32 %v9141_v26, %v4091_v17  ;;  %v4788_v40 = vmul.f32 %v9156_v37, %v4091_v17 }
 0x72b   : > { %4293 = vrot.lane.b32.xlu1 %v4288_v21, %s9559_s28  ;;  %4114 = vrot.lane.b32.xlu0 %v4109_v23, %s9560_s26  ;;  %v4888_v41 = vmul.f32 %v9158_v39, %v4091_v17 }
 0x72c   : > { %7727 = vmatprep.subr.mxu0 %v4097_v24 }
 0x72d   : > { %7728 = vmatpush3.msra.mxu0 %v4097_v24 }
 0x72e   : > { %7730 = vmatmul.mubr.msk.f32.vlgmr.msra.gmra.mxu0 %vm2174_vm6, %v4099_v25 }
 0x72f   : > { %4493 = vrot.lane.b32.xlu1 %v4488_v30, %s7995_s29  ;;  %4393 = vrot.lane.b32.xlu0 %v4388_v31, %s7996_s11 }
 0x730   : > { %7739 = vmatprep.mubr.msk.f32.mxu0 %vm2174_vm6, %v7091_v32 }
 0x733   : > { %4693 = vrot.lane.b32.xlu1 %v4688_v35, %s9567_s25  ;;  %4593 = vrot.lane.b32.xlu0 %v4588_v36, %s7997_s12 }
 0x737   : > { %4893 = vrot.lane.b32.xlu1 %v4888_v41, %s9568_s0  ;;  %4793 = vrot.lane.b32.xlu0 %v4788_v40, %s9566_s6 }
 0x73b   : > { %4988 = vperm.xlu1 %7958, %v4980_v42   ;;  %4983 = vperm.xlu0 %7957, %v4979_v43  }
 0x79d   : > { %v4294_v44 = vpop.permute.xlu1 %4293  ;;  %v4115_v45 = vpop.permute.xlu0 %4114 }
 0x79e   : > { %7722 = vmatprep.subr.mxu1 %v4115_v45 }
 0x79f   : > { %7723 = vmatpush3.msra.mxu1 %v4115_v45 }
 0x7a0   : > { %7725 = vmatmul.mubr.msk.f32.vlgmr.msra.gmra.mxu1 %vm2174_vm6, %v7080_v7  ;;  %7732 = vmatprep.subr.mxu1 %v4294_v44 }
 0x7a1   : > { %v4494_v19 = vpop.permute.xlu1 %4493  ;;  %7733 = vmatpush3.msra.mxu1 %v4294_v44  ;;  %v4394_v20 = vpop.permute.xlu0 %4393  ;;  %7734 = vmatprep.mubr.msk.f32.mxu1 %vm2174_vm6, %v7086_v2 }
 0x7a2   : > { %7737 = vmatprep.subr.mxu0 %v4394_v20  ;;  %7742 = vmatprep.subr.mxu1 %v4494_v19 }
 0x7a3   : > { %7738 = vmatpush3.msra.mxu0 %v4394_v20 }
 0x7a4   : > { %7735 = vmatmul.mubr.msk.f32.vlgmr.msra.gmra.mxu1 %vm2174_vm6, %v7087_v27  ;;  %7740 = vmatmul.mubr.msk.f32.vlgmr.msra.gmra.mxu0 %vm2174_vm6, %v7092_v28 }
 0x7a5   : > { %7743 = vmatpush3.msra.mxu1 %v4494_v19  ;;  %v4694_v38 = vpop.permute.xlu1 %4693  ;;  %v4594_v22 = vpop.permute.xlu0 %4593  ;;  %7744 = vmatprep.mubr.msk.f32.mxu1 %vm2174_vm6, %v7096_v33 }
 0x7a6   : > { %7747 = vmatprep.subr.mxu0 %v4594_v22  ;;  %7752 = vmatprep.subr.mxu1 %v4694_v38 }
 0x7a7   : > { %7748 = vmatpush3.msra.mxu0 %v4594_v22  ;;  %7749 = vmatprep.mubr.msk.f32.mxu0 %vm2174_vm6, %v7101_v34  ;;  %v7122_v34 = vld [vmem:[%s9491_s9 + $0x10] sm:$0xff] }
 0x7a8   : > { %7745 = vmatmul.mubr.msk.f32.vlgmr.msra.gmra.mxu1 %vm2174_vm6, %v7097_v46  ;;  %7750 = vmatmul.mubr.msk.f32.vlgmr.msra.gmra.mxu0 %vm2174_vm6, %v7102_v47 }
 0x7a9   : > { %7753 = vmatpush3.msra.mxu1 %v4694_v38  ;;  %v4894_v50 = vpop.permute.xlu1 %4893  ;;  %v4794_v51 = vpop.permute.xlu0 %4793  ;;  %7754 = vmatprep.mubr.msk.f32.mxu1 %vm2174_vm6, %v7106_v48  ;;  %v5080_v38 = vld [vmem:[%s9491_s9] sm:$0xff] }
 0x7aa   : > { %7757 = vmatprep.subr.mxu0 %v4794_v51  ;;  %7762 = vmatprep.subr.mxu1 %v4894_v50 }
 0x7ab   : > { %7758 = vmatpush3.msra.mxu0 %v4794_v51  ;;  %7759 = vmatprep.mubr.msk.f32.mxu0 %vm2174_vm6, %v7111_v49  ;;  %v5081_v51 = vld [vmem:[%s9491_s9 + $0x8] sm:$0xff] }
 0x7ac   : > { %7755 = vmatmul.mubr.msk.f32.vlgmr.msra.gmra.mxu1 %vm2174_vm6, %v7107_v52  ;;  %7760 = vmatmul.mubr.msk.f32.vlgmr.msra.gmra.mxu0 %vm2174_vm6, %v7112_v53  ;;  %v7132_v53 = vld [vmem:[%s9491_s9 + $0x30] sm:$0xff] }
 0x7ad   : > { %7763 = vmatpush3.msra.mxu1 %v4894_v50  ;;  %7764 = vmatprep.mubr.msk.f32.mxu1 %vm2174_vm6, %v7116_v54 }
 0x7ae   : > { %7767 = vmatprep.subr.mxu0 %v4996_v56 }
 0x7af   : > { %7768 = vmatpush3.msra.mxu0 %v4996_v56 }
 0x7b0   : > { %7765 = vmatmul.mubr.msk.f32.vlgmr.msra.gmra.mxu1 %vm2174_vm6, %v7117_v55  ;;  %7769 = vmatprep.subr.mxu0 %v4995_v57 }
 0x7b1   : > { %7770 = vmatpush3.msra.mxu0 %v4995_v57  ;;  %7778 = vmatprep.mubr.msk.f32.mxu1 %vm1052_vm2, %v7122_v34 }
 0x7b6   : > { %v4989_v7 = vpop.permute.xlu1 %4988  ;;  %v4984_v19 = vpop.permute.xlu0 %4983 }
 0x7ee   : > { %v7731_v58 = vpop.f32.mrf.mxu0 }
 0x7f0   : > { %v4270_v60 = vpop.f32.mrf.mxu0 }
 0x860   : > { %v7726_v59 = vpop.f32.mrf.mxu1 }
 0x861   : > { %v4276_v62 = vadd.f32 %v7731_v58, %v7726_v59 }
 0x862   : > { %v4189_v61 = vpop.f32.mrf.mxu1 }
 0x863   : > { %v4271_v1 = vadd.f32 %v4270_v60, %v4189_v61  ;;  %v5930_v61 = vld [vmem:[%s9492_s10 + $0x8] sm:$0xff] }
 0x864   : > { %v7736_v63 = vpop.f32.mrf.mxu1  ;;  %v7741_v0 = vpop.f32.mrf.mxu0 }
 0x865   : > { %v4378_v3 = vadd.f32 %v7736_v63, %v4276_v62  ;;  %v7128_v63 = vld [vmem:[%s9491_s9 + $0x20] sm:$0xff] }
 0x866   : > { %v4368_v9 = vpop.f32.mrf.mxu1  ;;  %v4468_v6 = vpop.f32.mrf.mxu0 }
 0x867   : > { %v4478_v10 = vadd.f32 %v7741_v0, %v4378_v3  ;;  %v4377_v11 = vadd.f32 %v4368_v9, %v4271_v1  ;;  %v7129_v3 = vld [vmem:[%s9491_s9 + $0x28] sm:$0xff]  ;;  %v7136_v9 = vld [vmem:[%s9491_s9 + $0x40] sm:$0xff] }
 0x868   : > { %v7746_v5 = vpop.f32.mrf.mxu1  ;;  %v7751_v14 = vpop.f32.mrf.mxu0 }
 0x869   : > { %v4477_v15 = vadd.f32 %v4468_v6, %v4377_v11  ;;  %v4578_v16 = vadd.f32 %v7746_v5, %v4478_v10  ;;  %v7133_v11 = vld [vmem:[%s9491_s9 + $0x38] sm:$0xff]  ;;  %v7140_v5 = vld [vmem:[%s9491_s9 + $0x50] sm:$0xff] }
 0x86a   : > { %v4568_v17 = vpop.f32.mrf.mxu1  ;;  %v4668_v21 = vpop.f32.mrf.mxu0 }
 0x86b   : > { %v4678_v23 = vadd.f32 %v7751_v14, %v4578_v16  ;;  %v4577_v24 = vadd.f32 %v4568_v17, %v4477_v15  ;;  %v7137_v16 = vld [vmem:[%s9491_s9 + $0x48] sm:$0xff]  ;;  %v7144_v17 = vld [vmem:[%s9491_s9 + $0x60] sm:$0xff] }
 0x86c   : > { %v7756_v25 = vpop.f32.mrf.mxu1  ;;  %v7761_v30 = vpop.f32.mrf.mxu0 }
 0x86d   : > { %v4677_v31 = vadd.f32 %v4668_v21, %v4577_v24  ;;  %v4778_v32 = vadd.f32 %v7756_v25, %v4678_v23  ;;  %v7141_v24 = vld [vmem:[%s9491_s9 + $0x58] sm:$0xff]  ;;  %v7148_v25 = vld [vmem:[%s9491_s9 + $0x70] sm:$0xff] }
 0x86e   : > { %v4768_v35 = vpop.f32.mrf.mxu1  ;;  %v4868_v41 = vpop.f32.mrf.mxu0 }
 0x86f   : > { %v4878_v36 = vadd.f32 %v7761_v30, %v4778_v32  ;;  %v4777_v40 = vadd.f32 %v4768_v35, %v4677_v31  ;;  %v7145_v32 = vld [vmem:[%s9491_s9 + $0x68] sm:$0xff]  ;;  %v7152_v35 = vld [vmem:[%s9491_s9 + $0x80] sm:$0xff] }
 0x870   : > { %v7766_v42 = vpop.f32.mrf.mxu1 }
 0x871   : > { %v4877_v43 = vadd.f32 %v4868_v41, %v4777_v40  ;;  %v4978_v44 = vadd.f32 %v7766_v42, %v4878_v36  ;;  %v7149_v41 = vld [vmem:[%s9491_s9 + $0x78] sm:$0xff] }
 0x872   : > { %v4968_v45 = vpop.f32.mrf.mxu1 }
 0x873   : > { %v4977_v2 = vadd.f32 %v4968_v45, %v4877_v43  ;;  %v4992_v20 = vadd.f32 %v4989_v7, %v4978_v44  ;;  %v7153_v44 = vld [vmem:[%s9491_s9 + $0x88] sm:$0xff]  ;;  %v7159_v7 = vld [vmem:[%s9500_s18 + $0x18] sm:$0xff] }
 0x874   : > { %v5946_v45 = vld [vmem:[%s9500_s18 + $0x8] sm:$0xff] }
 0x875   : > { %v4991_v27 = vadd.f32 %v4984_v19, %v4977_v2  ;;  %v4994_v33 = vmax.f32 %v4992_v20, 0.0  ;;  %v5945_v2 = vld [vmem:[%s9500_s18] sm:$0xff]  ;;  %v7158_v19 = vld [vmem:[%s9500_s18 + $0x10] sm:$0xff]  ;;  %v7163_v20 = vld [vmem:[%s9500_s18 + $0x28] sm:$0xff] }
 0x877   : > { %v4993_v28 = vmax.f32 %v4991_v27, 0.0  ;;  %v7167_v27 = vld [vmem:[%s9500_s18 + $0x38] sm:$0xff] }
 0x879   : > { %7771 = vmatprep.mubr.msk.f32.mxu0 %vm1052_vm2, %v4993_v28 }
 0x87a   : > { %7772 = vmatmul.mubr.msk.f32.vlgmr.msra.gmra.mxu0 %vm1052_vm2, %v4994_v33 }
 0x87b   : > { %7785 = vmatprep.mubr.msk.f32.mxu0 %vm1052_vm2, %v5080_v38 }
 0x93a   : > { %v7773_v22 = vpop.f32.mrf.mxu0 }
 0x93b   : > { %v5083_v46 = vmul.f32 %v7773_v22, %v9112_v4  ;;  %v5079_v47 = vmul.f32 %v7773_v22, %v9131_v18  ;;  %v5258_v52 = vmul.f32 %v7773_v22, %v9114_v8  ;;  %v5450_v55 = vmul.f32 %v7773_v22, %v9126_v13 }
 0x93c   : > { %v5069_v48 = vpop.f32.mrf.mxu0  ;;  %v5546_v56 = vmul.f32 %v7773_v22, %v9141_v26 }
 0x93d   : > { %5091 = vrot.lane.b32.xlu0 %v5083_v46, %s9560_s26  ;;  %7781 = vmatprep.subr.mxu0 %v5079_v47  ;;  %v5082_v49 = vmul.f32 %v5069_v48, %v9112_v4  ;;  %v5078_v50 = vmul.f32 %v9131_v18, %v5069_v48  ;;  %v5257_v4 = vmul.f32 %v5069_v48, %v9114_v8 }
 0x93e   : > { %7782 = vmatpush3.msra.mxu0 %v5079_v47  ;;  %v5354_v18 = vmul.f32 %v7773_v22, %v9124_v12  ;;  %v5353_v54 = vmul.f32 %v5069_v48, %v9124_v12  ;;  %v5449_v8 = vmul.f32 %v5069_v48, %v9126_v13  ;;  %v5545_v57 = vmul.f32 %v5069_v48, %v9141_v26 }
 0x93f   : > { %5089 = vrot.lane.b32.xlu1 %v5082_v49, %s9560_s26  ;;  %7783 = vmatprep.subr.mxu0 %v5078_v50  ;;  %v5642_v12 = vmul.f32 %v7773_v22, %v9143_v29  ;;  %v5641_v58 = vmul.f32 %v5069_v48, %v9143_v29  ;;  %v5738_v13 = vmul.f32 %v7773_v22, %v9156_v37  ;;  %v5929_v29 = vld [vmem:[%s9492_s10] sm:$0xff] }
 0x940   : > { %7784 = vmatpush3.msra.mxu0 %v5078_v50  ;;  %v5737_v59 = vmul.f32 %v5069_v48, %v9156_v37  ;;  %v5834_v26 = vmul.f32 %v7773_v22, %v9158_v39  ;;  %v5833_v60 = vmul.f32 %v5069_v48, %v9158_v39  ;;  %v7123_v39 = vld [vmem:[%s9491_s9 + $0x18] sm:$0xff] }
 0x941   : > { %5266 = vrot.lane.b32.xlu0 %v5258_v52, %s9559_s28  ;;  %7786 = vmatmul.mubr.msk.f32.vlgmr.msra.gmra.mxu0 %vm1052_vm2, %v5081_v51 }
 0x942   : > { %7799 = vmatprep.mubr.msk.f32.mxu0 %vm1052_vm2, %v7132_v53 }
 0x943   : > { %5264 = vrot.lane.b32.xlu1 %v5257_v4, %s9559_s28 }
 0x945   : > { %5362 = vrot.lane.b32.xlu0 %v5354_v18, %s7996_s11 }
 0x947   : > { %5360 = vrot.lane.b32.xlu1 %v5353_v54, %s7996_s11 }
 0x949   : > { %5458 = vrot.lane.b32.xlu0 %v5450_v55, %s7995_s29 }
 0x94b   : > { %5456 = vrot.lane.b32.xlu1 %v5449_v8, %s7995_s29 }
 0x94d   : > { %5554 = vrot.lane.b32.xlu0 %v5546_v56, %s7997_s12 }
 0x94f   : > { %5552 = vrot.lane.b32.xlu1 %v5545_v57, %s7997_s12  ;;  %s7998_s12 = smov 125  }
 0x951   : > { %5650 = vrot.lane.b32.xlu0 %v5642_v12, %s9567_s25 }
 0x953   : > { %5648 = vrot.lane.b32.xlu1 %v5641_v58, %s9567_s25 }
 0x955   : > { %5746 = vrot.lane.b32.xlu0 %v5738_v13, %s9566_s6 }
 0x957   : > { %5744 = vrot.lane.b32.xlu1 %v5737_v59, %s9566_s6  ;;  %s7202_s6 = sshll.u32 %s9578_s30, 4 }
 0x959   : > { %5842 = vrot.lane.b32.xlu0 %v5834_v26, %s9568_s0 }
 0x95b   : > { %5840 = vrot.lane.b32.xlu1 %v5833_v60, %s9568_s0  ;;  %s710_s0 = scalar_lea.vmem %s9505_s23, %s7202_s6 }
 0x95d   : > { %5933 = vperm.xlu0 %7957, %v5929_v29  }
 0x95f   : > { %5938 = vperm.xlu1 %7958, %v5930_v61  }
 0x9af   : > { %v5092_v37 = vpop.permute.xlu0 %5091 }
 0x9b0   : > { %7774 = vmatprep.subr.mxu1 %v5092_v37 }
 0x9b1   : > { %7775 = vmatpush3.msra.mxu1 %v5092_v37  ;;  %v5090_v62 = vpop.permute.xlu1 %5089 }
 0x9b2   : > { %7776 = vmatprep.subr.mxu1 %v5090_v62 }
 0x9b3   : > { %v5267_v0 = vpop.permute.xlu0 %5266  ;;  %7777 = vmatpush3.msra.mxu1 %v5090_v62 }
 0x9b4   : > { %7788 = vmatprep.subr.mxu1 %v5267_v0  ;;  %7779 = vmatmul.mubr.msk.f32.vlgmr.msra.gmra.mxu1 %vm1052_vm2, %v7123_v39 }
 0x9b5   : > { %7789 = vmatpush3.msra.mxu1 %v5267_v0  ;;  %v5265_v1 = vpop.permute.xlu1 %5264  ;;  %7792 = vmatprep.mubr.msk.f32.mxu1 %vm1052_vm2, %v7128_v63 }
 0x9b6   : > { %7790 = vmatprep.subr.mxu1 %v5265_v1 }
 0x9b7   : > { %v5363_v6 = vpop.permute.xlu0 %5362  ;;  %7791 = vmatpush3.msra.mxu1 %v5265_v1 }
 0x9b8   : > { %7795 = vmatprep.subr.mxu0 %v5363_v6  ;;  %7793 = vmatmul.mubr.msk.f32.vlgmr.msra.gmra.mxu1 %vm1052_vm2, %v7129_v3 }
 0x9b9   : > { %v5361_v10 = vpop.permute.xlu1 %5360  ;;  %7796 = vmatpush3.msra.mxu0 %v5363_v6  ;;  %7806 = vmatprep.mubr.msk.f32.mxu1 %vm1052_vm2, %v7136_v9 }
 0x9ba   : > { %7797 = vmatprep.subr.mxu0 %v5361_v10 }
 0x9bb   : > { %v5459_v14 = vpop.permute.xlu0 %5458  ;;  %7798 = vmatpush3.msra.mxu0 %v5361_v10 }
 0x9bc   : > { %7802 = vmatprep.subr.mxu1 %v5459_v14  ;;  %7800 = vmatmul.mubr.msk.f32.vlgmr.msra.gmra.mxu0 %vm1052_vm2, %v7133_v11 }
 0x9bd   : > { %7803 = vmatpush3.msra.mxu1 %v5459_v14  ;;  %v5457_v15 = vpop.permute.xlu1 %5456  ;;  %7813 = vmatprep.mubr.msk.f32.mxu0 %vm1052_vm2, %v7140_v5  ;;  %v7162_v14 = vld [vmem:[%s9500_s18 + $0x20] sm:$0xff] }
 0x9be   : > { %7804 = vmatprep.subr.mxu1 %v5457_v15 }
 0x9bf   : > { %v5555_v21 = vpop.permute.xlu0 %5554  ;;  %7805 = vmatpush3.msra.mxu1 %v5457_v15  ;;  %v7166_v15 = vld [vmem:[%s9500_s18 + $0x30] sm:$0xff] }
 0x9c0   : > { %7809 = vmatprep.subr.mxu0 %v5555_v21  ;;  %7807 = vmatmul.mubr.msk.f32.vlgmr.msra.gmra.mxu1 %vm1052_vm2, %v7137_v16  ;;  %v7170_v16 = vld [vmem:[%s9501_s19 + $0x20] sm:$0xff] }
 0x9c1   : > { %v5553_v23 = vpop.permute.xlu1 %5552  ;;  %7810 = vmatpush3.msra.mxu0 %v5555_v21  ;;  %7820 = vmatprep.mubr.msk.f32.mxu1 %vm1052_vm2, %v7144_v17  ;;  %v6268_v17 = vld [vmem:[%s9501_s19] sm:$0xff] }
 0x9c2   : > { %7811 = vmatprep.subr.mxu0 %v5553_v23 }
 0x9c3   : > { %v5651_v30 = vpop.permute.xlu0 %5650  ;;  %7812 = vmatpush3.msra.mxu0 %v5553_v23 }
 0x9c4   : > { %7816 = vmatprep.subr.mxu1 %v5651_v30  ;;  %7814 = vmatmul.mubr.msk.f32.vlgmr.msra.gmra.mxu0 %vm1052_vm2, %v7141_v24 }
 0x9c5   : > { %7817 = vmatpush3.msra.mxu1 %v5651_v30  ;;  %v5649_v31 = vpop.permute.xlu1 %5648  ;;  %7827 = vmatprep.mubr.msk.f32.mxu0 %vm1052_vm2, %v7148_v25 }
 0x9c6   : > { %7818 = vmatprep.subr.mxu1 %v5649_v31 }
 0x9c7   : > { %v5747_v36 = vpop.permute.xlu0 %5746  ;;  %7819 = vmatpush3.msra.mxu1 %v5649_v31 }
 0x9c8   : > { %7821 = vmatmul.mubr.msk.f32.vlgmr.msra.gmra.mxu1 %vm1052_vm2, %v7145_v32  ;;  %7823 = vmatprep.subr.mxu0 %v5747_v36 }
 0x9c9   : > { %v5745_v40 = vpop.permute.xlu1 %5744  ;;  %7824 = vmatpush3.msra.mxu0 %v5747_v36  ;;  %7834 = vmatprep.mubr.msk.f32.mxu1 %vm1052_vm2, %v7152_v35 }
 0x9ca   : > { %7825 = vmatprep.subr.mxu0 %v5745_v40 }
 0x9cb   : > { %v5843_v42 = vpop.permute.xlu0 %5842  ;;  %7826 = vmatpush3.msra.mxu0 %v5745_v40 }
 0x9cc   : > { %7828 = vmatmul.mubr.msk.f32.vlgmr.msra.gmra.mxu0 %vm1052_vm2, %v7149_v41  ;;  %7830 = vmatprep.subr.mxu1 %v5843_v42 }
 0x9cd   : > { %7831 = vmatpush3.msra.mxu1 %v5843_v42  ;;  %v5841_v43 = vpop.permute.xlu1 %5840  ;;  %7837 = vmatprep.subr.mxu0 %v5946_v45 }
 0x9ce   : > { %7832 = vmatprep.subr.mxu1 %v5841_v43  ;;  %7838 = vmatpush3.msra.mxu0 %v5946_v45  ;;  %v6269_v45 = vld [vmem:[%s9501_s19 + $0x8] sm:$0xff] }
 0x9cf   : > { %7833 = vmatpush3.msra.mxu1 %v5841_v43  ;;  %7839 = vmatprep.subr.mxu0 %v5945_v2 }
 0x9d0   : > { %7835 = vmatmul.mubr.msk.f32.vlgmr.msra.gmra.mxu1 %vm1052_vm2, %v7153_v44  ;;  %7844 = vmatprep.subr.mxu1 %v7159_v7 }
 0x9d1   : > { %7845 = vmatpush3.msra.mxu1 %v7159_v7  ;;  %7840 = vmatpush3.msra.mxu0 %v5945_v2  ;;  %v6270_v7 = vld [vmem:[%s9501_s19 + $0x10] sm:$0xff]  ;;  %v6271_v2 = vld [vmem:[%s9501_s19 + $0x18] sm:$0xff] }
 0x9d2   : > { %7846 = vmatprep.subr.mxu1 %v7158_v19  ;;  %7851 = vmatprep.subr.mxu0 %v7163_v20 }
 0x9d3   : > { %7847 = vmatpush3.msra.mxu1 %v7158_v19  ;;  %v7190_v19 = vld [vmem:[%s9501_s19 + $0x60] sm:$0xff] }
 0x9d4   : > { %7858 = vmatprep.subr.mxu1 %v7167_v27 }
 0x9d8   : > { %v5934_v9 = vpop.permute.xlu0 %5933 }
 0x9da   : > { %v5939_v1 = vpop.permute.xlu1 %5938 }
 0xa01   : > { %v7787_v33 = vpop.f32.mrf.mxu0 }
 0xa03   : > { %v5248_v22 = vpop.f32.mrf.mxu0 }
 0xa74   : > { %v7780_v28 = vpop.f32.mrf.mxu1 }
 0xa75   : > { %v5254_v38 = vadd.f32 %v7787_v33, %v7780_v28  ;;  %v7171_v28 = vld [vmem:[%s9501_s19 + $0x28] sm:$0xff]  ;;  %v7172_v33 = vld [vmem:[%s9501_s19 + $0x30] sm:$0xff] }
 0xa76   : > { %v5167_v34 = vpop.f32.mrf.mxu1 }
 0xa77   : > { %v5249_v47 = vadd.f32 %v5248_v22, %v5167_v34  ;;  %v7173_v22 = vld [vmem:[%s9501_s19 + $0x38] sm:$0xff] }
 0xa78   : > { %v7794_v46 = vpop.f32.mrf.mxu1 }
 0xa79   : > { %v5352_v48 = vadd.f32 %v7794_v46, %v5254_v38  ;;  %v7182_v46 = vld [vmem:[%s9501_s19 + $0x40] sm:$0xff] }
 0xa7a   : > { %v5342_v49 = vpop.f32.mrf.mxu1 }
 0xa7b   : > { %v5351_v51 = vadd.f32 %v5342_v49, %v5249_v47  ;;  %v7183_v49 = vld [vmem:[%s9501_s19 + $0x48] sm:$0xff] }
 0xa7c   : > { %v7801_v50 = vpop.f32.mrf.mxu0 }
 0xa7d   : > { %v5448_v52 = vadd.f32 %v7801_v50, %v5352_v48  ;;  %v7191_v50 = vld [vmem:[%s9501_s19 + $0x68] sm:$0xff] }
 0xa7e   : > { %v5438_v53 = vpop.f32.mrf.mxu0 }
 0xa7f   : > { %v5447_v18 = vadd.f32 %v5438_v53, %v5351_v51  ;;  %v7184_v51 = vld [vmem:[%s9501_s19 + $0x50] sm:$0xff]  ;;  %v7185_v53 = vld [vmem:[%s9501_s19 + $0x58] sm:$0xff] }
 0xa80   : > { %v7808_v4 = vpop.f32.mrf.mxu1 }
 0xa81   : > { %v5544_v54 = vadd.f32 %v7808_v4, %v5448_v52  ;;  %v7192_v52 = vld [vmem:[%s9501_s19 + $0x70] sm:$0xff]  ;;  %v7193_v4 = vld [vmem:[%s9501_s19 + $0x78] sm:$0xff] }
 0xa82   : > { %v5534_v55 = vpop.f32.mrf.mxu1 }
 0xa83   : > { %v5543_v56 = vadd.f32 %v5534_v55, %v5447_v18  ;;  %v6715_v18 = vld [vmem:[%s9503_s21] sm:$0xff] }
 0xa84   : > { %v7815_v8 = vpop.f32.mrf.mxu0 }
 0xa85   : > { %v5640_v57 = vadd.f32 %v7815_v8, %v5544_v54 }
 0xa86   : > { %v5630_v12 = vpop.f32.mrf.mxu0 }
 0xa87   : > { %v5639_v13 = vadd.f32 %v5630_v12, %v5543_v56 }
 0xa88   : > { %v7822_v58 = vpop.f32.mrf.mxu1 }
 0xa89   : > { %v5736_v59 = vadd.f32 %v7822_v58, %v5640_v57 }
 0xa8a   : > { %v5726_v26 = vpop.f32.mrf.mxu1 }
 0xa8b   : > { %v5735_v61 = vadd.f32 %v5726_v26, %v5639_v13 }
 0xa8c   : > { %v7829_v60 = vpop.f32.mrf.mxu0 }
 0xa8d   : > { %v5832_v37 = vadd.f32 %v7829_v60, %v5736_v59 }
 0xa8e   : > { %v5822_v29 = vpop.f32.mrf.mxu0 }
 0xa8f   : > { %v5831_v39 = vadd.f32 %v5822_v29, %v5735_v61 }
 0xa90   : > { %v7836_v62 = vpop.f32.mrf.mxu1 }
 0xa91   : > { %v5928_v63 = vadd.f32 %v7836_v62, %v5832_v37 }
 0xa92   : > { %v5918_v0 = vpop.f32.mrf.mxu1 }
 0xa93   : > { %v5927_v3 = vadd.f32 %v5918_v0, %v5831_v39  ;;  %v5942_v6 = vadd.f32 %v5939_v1, %v5928_v63 }
 0xa95   : > { %v5941_v10 = vadd.f32 %v5934_v9, %v5927_v3  ;;  %v5944_v5 = vmax.f32 %v5942_v6, 0.0 }
 0xa97   : > { %v5943_v11 = vmax.f32 %v5941_v10, 0.0  ;;  %v6706_v10 = vld [vmem:[%s9502_s20 + $0x18] sm:$0xff] }
 0xa99   : > { %7841 = vmatprep.mubr.msk.f32.mxu0 %vm1052_vm2, %v5943_v11  ;;  %7848 = vmatprep.mubr.msk.f32.mxu1 %vm1052_vm2, %v5943_v11 }
 0xa9a   : > { %7842 = vmatmul.mubr.msk.f32.vlgmr.msra.gmra.mxu0 %vm1052_vm2, %v5944_v5  ;;  %7849 = vmatmul.mubr.msk.f32.vlgmr.msra.gmra.mxu1 %vm1052_vm2, %v5944_v5 }
 0xa9b   : > { %7852 = vmatpush3.msra.mxu0 %v7163_v20  ;;  %7855 = vmatprep.mubr.msk.f32.mxu0 %vm1052_vm2, %v5943_v11 }
 0xa9c   : > { %7859 = vmatpush3.msra.mxu1 %v7167_v27  ;;  %7862 = vmatprep.mubr.msk.f32.mxu1 %vm1052_vm2, %v5943_v11 }
 0xa9d   : > { %7853 = vmatprep.subr.mxu0 %v7162_v14  ;;  %7860 = vmatprep.subr.mxu1 %v7166_v15 }
 0xa9e   : > { %7854 = vmatpush3.msra.mxu0 %v7162_v14  ;;  %7861 = vmatpush3.msra.mxu1 %v7166_v15  ;;  %v6704_v15 = vld [vmem:[%s9502_s20 + $0x8] sm:$0xff] }
 0xa9f   : > { %7856 = vmatmul.mubr.msk.f32.vlgmr.msra.gmra.mxu0 %vm1052_vm2, %v5944_v5  ;;  %7863 = vmatmul.mubr.msk.f32.vlgmr.msra.gmra.mxu1 %vm1052_vm2, %v5944_v5 }
 0xaa0   : > { %7869 = vmatprep.mubr.msk.f32.mxu0 %vm1052_vm2, %v7170_v16  ;;  %7879 = vmatprep.mubr.msk.f32.mxu1 %vm1052_vm2, %v6268_v17  ;;  %v6705_v17 = vld [vmem:[%s9502_s20 + $0x10] sm:$0xff] }
 0xb5a   : > { %v7843_v21 = vpop.f32.mrf.mxu0  ;;  %v7850_v23 = vpop.f32.mrf.mxu1 }
 0xb5b   : > { %v6107_v30 = vmax.f32 %v7843_v21, %v7850_v23 }
 0xb5c   : > { %v6019_v24 = vpop.f32.mrf.mxu0  ;;  %v6097_v25 = vpop.f32.mrf.mxu1 }
 0xb5d   : > { %v6106_v35 = vmax.f32 %v6019_v24, %v6097_v25  ;;  %v6703_v25 = vld [vmem:[%s9502_s20] sm:$0xff] }
 0xb5f   : > { %v7857_v31 = vpop.f32.mrf.mxu0  ;;  %v7864_v32 = vpop.f32.mrf.mxu1 }
 0xb60   : > { %v6187_v36 = vmax.f32 %v6107_v30, %v7857_v31 }
 0xb61   : > { %v6177_v40 = vpop.f32.mrf.mxu0  ;;  %v6257_v43 = vpop.f32.mrf.mxu1 }
 0xb62   : > { %v6267_v41 = vmax.f32 %v6187_v36, %v7864_v32  ;;  %v6186_v42 = vmax.f32 %v6106_v35, %v6177_v40 }
 0xb64   : > { %v6266_v44 = vmax.f32 %v6186_v42, %v6257_v43  ;;  %6281 = vrot.lane.b32.xlu0 %v6267_v41, %s9560_s26  ;;  %7875 = vmatprep.subr.mxu1 %v6267_v41  ;;  %v6716_v42 = vld [vmem:[%s9503_s21 + $0x8] sm:$0x3] }
 0xb65   : > { %7876 = vmatpush3.msra.mxu1 %v6267_v41  ;;  %v6718_v43 = vld [vmem:[%s9504_s22 + $0x8] sm:$0x3] }
 0xb66   : > { %6279 = vrot.lane.b32.xlu1 %v6266_v44, %s9560_s26  ;;  %7877 = vmatprep.subr.mxu1 %v6266_v44 }
 0xb67   : > { %7878 = vmatpush3.msra.mxu1 %v6266_v44 }
 0xb68   : > { %6486 = vrot.lane.b32.xlu0 %v6267_v41, %s9559_s28  ;;  %7880 = vmatmul.mubr.msk.f32.vlgmr.msra.gmra.mxu1 %vm1052_vm2, %v6269_v45  ;;  %v6717_v45 = vld [vmem:[%s9504_s22] sm:$0xff] }
 0xb69   : > { %7882 = vmatprep.mubr.msk.f32.mxu1 %vm1052_vm2, %v6270_v7 }
 0xb6a   : > { %6484 = vrot.lane.b32.xlu1 %v6266_v44, %s9559_s28 }
 0xb6c   : > { %6598 = vrot.lane.b32.xlu0 %v6267_v41, %s7998_s12  ;;  %7883 = vmatmul.mubr.msk.f32.gmra.mxu1 %vm1052_vm2, %v6271_v2 }
 0xb6d   : > { %7899 = vmatprep.mubr.msk.f32.mxu1 %vm1052_vm2, %v7190_v19 }
 0xb6e   : > { %6596 = vrot.lane.b32.xlu1 %v6266_v44, %s7998_s12 }
 0xbd6   : > { %v6282_v20 = vpop.permute.xlu0 %6281 }
 0xbd7   : > { %7865 = vmatprep.subr.mxu0 %v6282_v20 }
 0xbd8   : > { %7866 = vmatpush3.msra.mxu0 %v6282_v20  ;;  %v6280_v27 = vpop.permute.xlu1 %6279 }
 0xbd9   : > { %7867 = vmatprep.subr.mxu0 %v6280_v27 }
 0xbda   : > { %v6487_v34 = vpop.permute.xlu0 %6486  ;;  %7868 = vmatpush3.msra.mxu0 %v6280_v27 }
 0xbdb   : > { %7870 = vmatmul.mubr.msk.f32.vlgmr.msra.gmra.mxu0 %vm1052_vm2, %v7171_v28  ;;  %7885 = vmatprep.subr.mxu0 %v6487_v34 }
 0xbdc   : > { %7886 = vmatpush3.msra.mxu0 %v6487_v34  ;;  %v6485_v38 = vpop.permute.xlu1 %6484  ;;  %7872 = vmatprep.mubr.msk.f32.mxu0 %vm1052_vm2, %v7172_v33 }
 0xbdd   : > { %7887 = vmatprep.subr.mxu0 %v6485_v38 }
 0xbde   : > { %v6599_v47 = vpop.permute.xlu0 %6598  ;;  %7888 = vmatpush3.msra.mxu0 %v6485_v38 }
 0xbdf   : > { %7873 = vmatmul.mubr.msk.f32.gmra.mxu0 %vm1052_vm2, %v7173_v22  ;;  %7895 = vmatprep.subr.mxu1 %v6599_v47 }
 0xbe0   : > { %v6597_v48 = vpop.permute.xlu1 %6596  ;;  %7896 = vmatpush3.msra.mxu1 %v6599_v47  ;;  %7889 = vmatprep.mubr.msk.f32.mxu0 %vm1052_vm2, %v7182_v46 }
 0xbe1   : > { %7897 = vmatprep.subr.mxu1 %v6597_v48 }
 0xbe2   : > { %7898 = vmatpush3.msra.mxu1 %v6597_v48 }
 0xbe3   : > { %7890 = vmatmul.mubr.msk.f32.vlgmr.msra.gmra.mxu0 %vm1052_vm2, %v7183_v49  ;;  %7900 = vmatmul.mubr.msk.f32.vlgmr.msra.gmra.mxu1 %vm1052_vm2, %v7191_v50 }
 0xbe4   : > { %7892 = vmatprep.mubr.msk.f32.mxu0 %vm1052_vm2, %v7184_v51  ;;  %7902 = vmatprep.mubr.msk.f32.mxu1 %vm1052_vm2, %v7192_v52 }
 0xbe7   : > { %7893 = vmatmul.mubr.msk.f32.gmra.mxu0 %vm1052_vm2, %v7185_v53  ;;  %7903 = vmatmul.mubr.msk.f32.gmra.mxu1 %vm1052_vm2, %v7193_v4  ;;  %vm6801_vm2 = vcmask 1024  }
 0xbe8   : > { %7913 = vmatprep.mubr.msk.f32.mxu0 %vm1397_vm5, %v6715_v18 }
 0xc28   : > { %v7881_v54 = vpop.f32.mrf.mxu1 }
 0xc2a   : > { %v6460_v55 = vpop.f32.mrf.mxu1 }
 0xc2c   : > { %v7884_v56 = vpop.f32.mrf.mxu1 }
 0xc2e   : > { %v6470_v58 = vpop.f32.mrf.mxu1 }
 0xc9b   : > { %v7871_v8 = vpop.f32.mrf.mxu0 }
 0xc9c   : > { %v6466_v60 = vadd.f32 %v7881_v54, %v7871_v8 }
 0xc9d   : > { %v6363_v57 = vpop.f32.mrf.mxu0 }
 0xc9e   : > { %v6461_v37 = vadd.f32 %v6460_v55, %v6363_v57 }
 0xc9f   : > { %v7874_v12 = vpop.f32.mrf.mxu0 }
 0xca0   : > { %v6476_v62 = vadd.f32 %v7884_v56, %v7874_v12 }
 0xca1   : > { %v6373_v13 = vpop.f32.mrf.mxu0 }
 0xca2   : > { %v6471_v1 = vadd.f32 %v6470_v58, %v6373_v13 }
 0xca3   : > { %v7891_v59 = vpop.f32.mrf.mxu0  ;;  %v7901_v26 = vpop.f32.mrf.mxu1 }
 0xca4   : > { %v6588_v39 = vadd.f32 %v7891_v59, %v6466_v60 }
 0xca5   : > { %v6568_v29 = vpop.f32.mrf.mxu0  ;;  %v6680_v61 = vpop.f32.mrf.mxu1 }
 0xca6   : > { %v6587_v3 = vadd.f32 %v6568_v29, %v6461_v37  ;;  %v6700_v11 = vadd.f32 %v7901_v26, %v6588_v39 }
 0xca7   : > { %v7894_v63 = vpop.f32.mrf.mxu0  ;;  %v7904_v0 = vpop.f32.mrf.mxu1 }
 0xca8   : > { %v6590_v9 = vadd.f32 %v7894_v63, %v6476_v62  ;;  %v6699_v21 = vadd.f32 %v6680_v61, %v6587_v3  ;;  %v6708_v30 = vadd.f32 %v6704_v15, %v6700_v11 }
 0xca9   : > { %v6578_v6 = vpop.f32.mrf.mxu0  ;;  %v6690_v16 = vpop.f32.mrf.mxu1 }
 0xcaa   : > { %v6589_v5 = vadd.f32 %v6578_v6, %v6471_v1  ;;  %v6702_v14 = vadd.f32 %v7904_v0, %v6590_v9  ;;  %v6707_v35 = vadd.f32 %v6703_v25, %v6699_v21  ;;  %v6712_v40 = vmax.f32 %v6708_v30, 0.0 }
 0xcac   : > { %v6710_v23 = vadd.f32 %v6706_v10, %v6702_v14  ;;  %v6701_v24 = vadd.f32 %v6690_v16, %v6589_v5  ;;  %v6711_v41 = vmax.f32 %v6707_v35, 0.0 }
 0xcae   : > { %v6714_v31 = vmax.f32 %v6710_v23, 0.0  ;;  %v6709_v32 = vadd.f32 %v6705_v17, %v6701_v24 }
 0xcb0   : > { %v6713_v36 = vmax.f32 %v6709_v32, 0.0  ;;  %7905 = vmatprep.subr.mxu0 %v6714_v31 }
 0xcb1   : > { %7906 = vmatpush3.msra.mxu0 %v6714_v31 }
 0xcb2   : > { %7907 = vmatprep.subr.mxu0 %v6713_v36 }
 0xcb3   : > { %7908 = vmatpush3.msra.mxu0 %v6713_v36 }
 0xcb4   : > { %7909 = vmatprep.subr.mxu0 %v6712_v40 }
 0xcb5   : > { %7910 = vmatpush3.msra.mxu0 %v6712_v40 }
 0xcb6   : > { %7911 = vmatprep.subr.mxu0 %v6711_v41 }
 0xcb7   : > { %7912 = vmatpush3.msra.mxu0 %v6711_v41 }
 0xcb8   : > { %7914 = vmatmul.mubr.msk.f32.vlgmr.msra.gmra.mxu0 %vm1397_vm5, %v6716_v42 }
 0xd78   : > { %v7915_v44 = vpop.f32.mrf.mxu0 }
 0xd79   : > { %v6797_v7 = vadd.f32 %v7915_v44, %v6718_v43 }
 0xd7a   : > { %v6791_v2 = vpop.f32.mrf.mxu0 }
 0xd7b   : > { %6802 = vst.msk [vmem:[%s710_s0 + $0x8] sm:$0x3] %vm6801_vm2, %v6797_v7  ;;  %v6792_v19 = vadd.f32 %v6791_v2, %v6717_v45 }
 0xd7d   : > { %6800 = vst.msk [vmem:[%s710_s0] sm:$0xff] %vm742_vm0, %v6792_v19 }
 0xd7e PF: > { %s33_s4 = sadd.s32 1, %s7965_s4  }
 0xd7f   : > { %p30_p4 = scmp.ge.s32.totalorder %s33_s4, 4  }
 0xd81   :  { %32 = sbr.rel (!%p30_p4) target bundleno = 13 (0xd), region = 202 }

</bundles_post_ra>
